<compile_context>
chip_gen: v7x
topology: tpu7x:2x2x1
jax: 0.10.0
libtpu: 0.0.40
codegen_flags: <defaults>
</compile_context>

<pallas_src>
import functools
import math

import jax
import jax.numpy as jnp
from jax import lax
from jax.experimental import pallas as pl
from jax.experimental.pallas import tpu as pltpu

HIDDEN = 768
INTERMEDIATE = 3072
_INV_SQRT2 = 1.0 / math.sqrt(2.0)
_SQRT_2_OVER_PI = math.sqrt(2.0 / math.pi)


def _bert_intermediate_kernel(x_ref, w_ref, b_ref, o_ref, *, approx_gelu):
    """One (tm, tn) output tile: full-K matmul + bias + GELU, fused."""
    y = jnp.dot(x_ref[...], w_ref[...], preferred_element_type=jnp.float32)
    y = y + b_ref[...]                                    # bias broadcast (1, tn), f32
    if approx_gelu:
        # tanh-approx GELU (EUP slot) -- opt-in fast path, NOT the torch-exact formula.
        g = 0.5 * y * (1.0 + jnp.tanh(_SQRT_2_OVER_PI * (y + 0.044715 * y * y * y)))
    else:
        # exact GELU: x * 0.5 * (1 + erf(x / sqrt(2)))  -- matches torch.erf path
        g = y * 0.5 * (1.0 + lax.erf(y * _INV_SQRT2))
    o_ref[...] = g.astype(o_ref.dtype)


def bert_intermediate(x, weight, bias, *, tm=512, tn=1536,
                      compute_dtype=jnp.bfloat16, out_dtype=None,
                      approx_gelu=False):
    """x: (B, S, 768); weight: (768, 3072) [torch weight transposed]; bias: (3072,).

    compute_dtype controls the MXU operand dtype (bf16 default for native MXU
    throughput + half the weight HBM stream); accumulation and the bias/GELU
    epilogue are always f32.  out_dtype defaults to compute_dtype (bf16 output
    halves the largest HBM stream); pass out_dtype=jnp.float32 together with
    compute_dtype=jnp.float32 for the exact PyTorch-parity path.
    """
    B, S, H = x.shape
    assert H == HIDDEN
    N = weight.shape[1]
    assert N == INTERMEDIATE
    assert N % tn == 0 and tn % 128 == 0

    if out_dtype is None:
        out_dtype = compute_dtype

    M = B * S
    x2 = x.reshape(M, H)
    if x2.dtype != compute_dtype:
        x2 = x2.astype(compute_dtype)
    # NOTE: for production, keep the weight cached in compute_dtype (bf16) so
    # this cast never appears on the per-call path (see __main__).
    w = weight if weight.dtype == compute_dtype else weight.astype(compute_dtype)
    b2 = bias.astype(jnp.float32).reshape(1, N)

    # M tiling: full-extent block when M is small, else cdiv grid with Pallas
    # boundary blocks (OOB rows of the last tile are masked on writeback; no
    # jnp.pad / slice copies of the big output tensor).
    tm_eff = M if M <= tm else tm
    m_tiles = pl.cdiv(M, tm_eff)
    n_tiles = N // tn

    # Grid order: (N tiles OUTER, M tiles INNER).  The weight / bias block
    # indices depend only on the outer index -> they stay resident in VMEM
    # across all inner M iterations (weight streamed from HBM n_tiles times
    # total, not once per M tile).
    grid = (n_tiles, m_tiles)

    bytes_per = {jnp.dtype(compute_dtype).itemsize, }
    cost = pl.CostEstimate(
        flops=2 * M * N * H,
        transcendentals=M * N,
        bytes_accessed=(M * H * jnp.dtype(compute_dtype).itemsize          # x
                        + H * N * jnp.dtype(compute_dtype).itemsize        # weight
                        + N * 4                                            # bias
                        + M * N * jnp.dtype(out_dtype).itemsize))          # out

    out = pl.pallas_call(
        functools.partial(_bert_intermediate_kernel, approx_gelu=approx_gelu),
        out_shape=jax.ShapeDtypeStruct((M, N), out_dtype),
        grid_spec=pltpu.PrefetchScalarGridSpec(
            num_scalar_prefetch=0,
            grid=grid,  # (N tiles, M tiles) -- no reduction axis, K fully resident
            in_specs=[
                pl.BlockSpec((tm_eff, H), lambda j, i: (i, 0)),   # x tile, full K
                pl.BlockSpec((H, tn), lambda j, i: (0, j)),       # weight: outer-only
                pl.BlockSpec((1, tn), lambda j, i: (0, j)),       # bias: outer-only
            ],
            out_specs=pl.BlockSpec((tm_eff, tn), lambda j, i: (i, j)),
        ),
        compiler_params=pltpu.CompilerParams(
            dimension_semantics=("parallel", "parallel"),
            vmem_limit_bytes=48 * 1024 * 1024,   # headroom, still < v7x 64 MiB/TC
        ),
        cost_estimate=cost,
    )(x2, w, b2)

    return out.reshape(B, S, N)


def _reference(x, weight, bias):
    """Exact f32 reference matching the PyTorch module."""
    y = jnp.einsum("bsh,hn->bsn", x, weight) + bias
    return y * 0.5 * (1.0 + lax.erf(y / math.sqrt(2.0)))


if __name__ == "__main__":
    key = jax.random.PRNGKey(0)
    kx, kw, kb = jax.random.split(key, 3)

    batch, seq = 2, 8
    x = jax.random.normal(kx, (batch, seq, HIDDEN), dtype=jnp.float32)

    # Deterministic parameter init (mimics nn.Linear's U(-1/sqrt(in), 1/sqrt(in))).
    bound = 1.0 / math.sqrt(HIDDEN)
    # Stored as (in=768, out=3072), i.e. torch weight transposed, so kernel does x @ W.
    weight = jax.random.uniform(
        kw, (HIDDEN, INTERMEDIATE), minval=-bound, maxval=bound, dtype=jnp.float32
    )
    bias = jax.random.uniform(
        kb, (INTERMEDIATE,), minval=-bound, maxval=bound, dtype=jnp.float32
    )

    ref = _reference(x, weight, bias)

    # Exact-f32 path: PyTorch-parity semantics (tight tolerance, f32 output).
    out_f32 = jax.block_until_ready(
        bert_intermediate(x, weight, bias,
                          compute_dtype=jnp.float32, out_dtype=jnp.float32)
    )
    assert out_f32.shape == (batch, seq, INTERMEDIATE)
    assert out_f32.dtype == jnp.float32
    assert jnp.allclose(out_f32, ref, atol=1e-4, rtol=1e-4), "f32 path mismatch"

    # Default fast path: bf16 MXU operands + bf16 output, f32 accumulate/epilogue.
    # Weight pre-cast once (hoisted out of the per-call path, as a cached bf16 param).
    weight_bf16 = weight.astype(jnp.bfloat16)
    out_bf16 = jax.block_until_ready(bert_intermediate(x, weight_bf16, bias))
    assert out_bf16.shape == (batch, seq, INTERMEDIATE)
    assert out_bf16.dtype == jnp.bfloat16
    assert jnp.allclose(out_bf16.astype(jnp.float32), ref, atol=5e-2, rtol=5e-2), \
        "bf16 path mismatch"

    print("KERNEL_OK")
</pallas_src>

<mosaic_0001>
module attributes {stable_mosaic.version = 11 : i64} {
  func.func @_bert_intermediate_kernel(%arg0: i32, %arg1: i32, %arg2: memref<16x768xf32, #tpu.memory_space<vmem>>, %arg3: memref<768x1536xf32, #tpu.memory_space<vmem>>, %arg4: memref<1x1536xf32, #tpu.memory_space<vmem>>, %arg5: memref<16x1536xf32, #tpu.memory_space<vmem>>) attributes {dimension_semantics = [#tpu.dimension_semantics<parallel>, #tpu.dimension_semantics<parallel>], iteration_bounds = array<i64: 2, 1>, scalar_prefetch = 0 : i64, scratch_operands = 0 : i64, tpu.core_type = #tpu.core_type<tc>, window_params = [{transform_indices = @transform_0, window_bounds = array<i64: 16, 768>}, {transform_indices = @transform_1, window_bounds = array<i64: 768, 1536>}, {transform_indices = @transform_2, window_bounds = array<i64: 1, 1536>}, {transform_indices = @transform_3, window_bounds = array<i64: 16, 1536>}]} {
    %c0 = arith.constant 0 : index
    %c0_0 = arith.constant 0 : index
    %0 = vector.load %arg2[%c0, %c0_0] : memref<16x768xf32, #tpu.memory_space<vmem>>, vector<16x768xf32>
    %c0_1 = arith.constant 0 : index
    %c0_2 = arith.constant 0 : index
    %1 = vector.load %arg3[%c0_1, %c0_2] : memref<768x1536xf32, #tpu.memory_space<vmem>>, vector<768x1536xf32>
    %cst = arith.constant dense<0.000000e+00> : vector<16x1536xf32>
    %2 = tpu.matmul %0, %1, %cst {dimension_numbers = #tpu.dot_dimension_numbers<[1], [0], [0], [1], [0, 0, 1, 1], [], []>} : vector<16x768xf32>, vector<768x1536xf32>, vector<16x1536xf32> -> vector<16x1536xf32>
    %c0_3 = arith.constant 0 : index
    %c0_4 = arith.constant 0 : index
    %3 = vector.load %arg4[%c0_3, %c0_4] : memref<1x1536xf32, #tpu.memory_space<vmem>>, vector<1x1536xf32>
    %4 = vector.broadcast %3 : vector<1x1536xf32> to vector<16x1536xf32>
    %5 = arith.addf %2, %4 : vector<16x1536xf32>
    %cst_5 = arith.constant 5.000000e-01 : f32
    %6 = vector.broadcast %cst_5 : f32 to vector<16x1536xf32>
    %7 = arith.mulf %5, %6 : vector<16x1536xf32>
    %cst_6 = arith.constant 0.707106769 : f32
    %8 = vector.broadcast %cst_6 : f32 to vector<16x1536xf32>
    %9 = arith.mulf %5, %8 : vector<16x1536xf32>
    %10 = math.erf %9 : vector<16x1536xf32>
    %cst_7 = arith.constant 1.000000e+00 : f32
    %11 = vector.broadcast %cst_7 : f32 to vector<16x1536xf32>
    %12 = arith.addf %11, %10 : vector<16x1536xf32>
    %13 = arith.mulf %7, %12 : vector<16x1536xf32>
    %c0_8 = arith.constant 0 : index
    %c0_9 = arith.constant 0 : index
    %14 = vector.load %arg5[%c0_8, %c0_9] : memref<16x1536xf32, #tpu.memory_space<vmem>>, vector<16x1536xf32>
    tpu.vector_store %arg5[%c0_8, %c0_9], %13 {strides = array<i32>} : memref<16x1536xf32, #tpu.memory_space<vmem>>, vector<16x1536xf32>,
    return
  }
  func.func @transform_0(%arg0: i32, %arg1: i32) -> (i32, i32) {
    %c0_i32 = arith.constant 0 : i32
    %c0_i32_0 = arith.constant 0 : i32
    return %arg1, %c0_i32 : i32, i32
  }
  func.func @transform_1(%arg0: i32, %arg1: i32) -> (i32, i32) {
    %c0_i32 = arith.constant 0 : i32
    %c0_i32_0 = arith.constant 0 : i32
    return %c0_i32, %arg0 : i32, i32
  }
  func.func @transform_2(%arg0: i32, %arg1: i32) -> (i32, i32) {
    %c0_i32 = arith.constant 0 : i32
    %c0_i32_0 = arith.constant 0 : i32
    return %c0_i32, %arg0 : i32, i32
  }
  func.func @transform_3(%arg0: i32, %arg1: i32) -> (i32, i32) {
    %c0_i32 = arith.constant 0 : i32
    return %arg1, %arg0 : i32, i32
  }
}

</mosaic_0001>

<bundles_post_ra>
// kernel: tpu_custom_call.1
= control target key start
LH: loop header
LB: loop body
LE: loop exit
PB: predicated region body
PF: predicated region fallthrough
CT: control target
= control target key end

     0   :  { %s6278_s0 = inlined_call_operand.hbm [shape: f32[16,768], index: 0, kind: input, shape index: {}]   ;;  %s6279_s1 = inlined_call_operand.hbm [shape: f32[768,3072], index: 1, kind: input, shape index: {}]   ;;  %s6280_s2 = inlined_call_operand.hbm [shape: f32[1,3072], index: 2, kind: input, shape index: {}]   ;;  %s6281_s3 = inlined_call_operand.hbm [shape: f32[16,3072], index: 3, kind: output, shape index: {}]  }
   0x1   :  { %6290 = sst [smem:[#allocation13_spill]] %s6279_s1 }
   0x2   :  { %8 = vsyncpa [#allocation3], 0 }
   0x3   :  { %9 = vsyncpa [#allocation6], 0 }
   0x4   :  { %11 = vsyncpa [#allocation6 + $0x1], 0 }
   0x5   :  { %12 = vsyncpa [#allocation4], 0 }
   0x6   :  { %14 = vsyncpa [#allocation4 + $0x1], 0  ;;  %s4771_s12 = smov 0   ;;  %s4773_s13 = smov 0  }
   0x7   :  { %s4775_s14 = smov 0   ;;  %s4777_s15 = smov 0  }
   0x8   :  { %s4779_s16 = smov 0   ;;  %s4781_s17 = smov 0  }
   0x9 LB: > { %s32_s18 = sadd.s32 1, %s4733_s16  ;;  %s65_s19 = sadd.s32 1, %s4725_s14  ;;  %s4737_s17 = sphi %s4781_s17, %s20_s17   ;;  %s4733_s16 = sphi %s4779_s16, %s6314_s16   ;;  %s4729_s15 = sphi %s4777_s15, %s6313_s15   ;;  %s4725_s14 = sphi %s4775_s14, %s6312_s14   ;;  %s4721_s13 = sphi %s4773_s13, %s6311_s13   ;;  %s4717_s12 = sphi %s4771_s12, %s6310_s12  }
   0xa   : > { %p34_p0 = scmp.ge.s32.totalorder %s32_s18, 2  ;;  %p72_p1 = scmp.ne.s32.totalorder %s4725_s14, %s4721_s13 }
   0xb   : > { %p73_p2 = scmp.eq.s32.totalorder %s4737_s17, 0  ;;  %p4430_p5 = scmp.lt.s32.totalorder %s4737_s17, 2 }
   0xc   : > { %s6316_s18 = smov (%p34_p0, %s32_s18), 0  ;;  %s173_s21 = sand.u32 1, %s4737_s17  }
   0xd   : > { %6291 = sst [smem:[#allocation12_spill]] %s6316_s18  ;;  %p74_p4 = por %p73_p2, %p72_p1 }
   0xe   : > { %s62_s20 = ssub.s32 %s4733_s16, %s6316_s18  ;;  %s175_s22 = sand.u32 1, %s4725_s14  }
   0xf   : > { %p63_p6 = scmp.eq.s32.totalorder %s62_s20, 0  ;;  %s3172_s23 = smul.u32 1536, %s4733_s16 }
  0x10   : > { %s4399_s25 = smul.u32 9216, %s175_s22  ;;  %s6292_s1 = sld [smem:[#allocation13_spill]] }
  0x11   : > { %s4819_s24 = scalar_select %p63_p6, %s4725_s14, %s65_s19  }
  0x12   : > { %p4828_p7 = pnand %p4430_p5, %p74_p4  ;;  %s177_s30 = scalar_lea.vmem [#allocation5], %s4399_s25 }
  0x13   : > { %s184_s4 = sshll.u32 %s177_s30, 4  ;;  %s4834_s5 = scalar_lea.sflag [#allocation6], %s173_s21  ;;  %s4832_s4 = int_to_ptr.vmem [resolvable:$true] %s184_s4 }
  0x14   : > { %s6293_s29 = scalar_select %p4828_p7, 1, 0 }
  0x15   : > { %p6284_p9 = pneg %p4828_p7 }
  0x16   : > { %s4826_s28 = scalar_lea.hbm %s6292_s1, %s3172_s23  ;;  %s4568_s9 = scalar_lea.hbm %s6292_s1, 294912 }
  0x17   : > { %s4563_s6 = scalar_lea.hbm %s4826_s28, 147456  ;;  %p4569_p12 = scmp.lt.u32.totalorder %s4826_s28, %s6292_s1 }
  0x18   : > { %p4564_p8 = scmp.ne.s32.totalorder %s4826_s28, %s4563_s6  ;;  %p4570_p13 = scmp.lt.u32.totalorder %s4568_s9, %s4563_s6 }
  0x19   : > { %p4572_p2 = scmp.lt.u32.totalorder %s4563_s6, %s4826_s28 }
  0x1a   : > { %p4566_p10 = pnand %p6284_p9, %p4564_p8  ;;  %p4571_p0 = por %p4570_p13, %p4569_p12 }
  0x1c   : > { %p4567_p11 = pneg %p4566_p10  ;;  %p4573_p4 = por %p4572_p2, %p4571_p0 }
  0x1e   : > { %p4574_p5 = pnand %p4573_p4, %p4567_p11 }
  0x20   : > { %4577 = shalt.err (!%p4574_p5)
}
  0x21   : > { %s4578_s19 = scalar_lea.vmem %s4832_s4, 147456  ;;  %s4739_s20 = smov [#allocation5]  }
  0x22   : > { %p4579_p6 = scmp.ne.s32.totalorder %s4832_s4, %s4578_s19  ;;  %s4583_s21 = sshll.u32 %s4739_s20, 4  ;;  %s4584_s21 = int_to_ptr.vmem [resolvable:$false] %s4583_s21 }
  0x23   : > { %s4585_s23 = scalar_lea.vmem %s4584_s21, 294912  ;;  %p4586_p3 = scmp.lt.s32.totalorder %s4832_s4, %s4584_s21 }
  0x24   : > { %p4581_p8 = pnand %p4579_p6, %p6284_p9  ;;  %p4587_p12 = scmp.lt.s32.totalorder %s4585_s23, %s4578_s19 }
  0x26   : > { %p4582_p10 = pneg %p4581_p8  ;;  %p4588_p13 = por %p4587_p12, %p4586_p3 }
  0x28   : > { %p4589_p0 = pnand %p4588_p13, %p4582_p10 }
  0x2a   : > { %4592 = shalt.err (!%p4589_p0)
}
  0x2b   : > { %s4740_s25 = smov 3072   ;;  %s4741_s26 = smov 1536  }
  0x2c   : > { %s4742_s27 = smov 96   ;;  %s4863_s30 = sadd.s32 4294967295, %s4737_s17  }
  0x2d   : > { %4421 = dma.hbm_to_vmem [thread:$0]  (!%p4828_p7), %s4826_s28, 147456, %s4832_s4, %s4834_s5, %s4740_s25, %s4741_s26, %s4742_s27  }
  0x2e   : > { %s3161_s6 = sadd.s32 4294967294, %s4737_s17   ;;  %p78_p3 = scmp.ne.s32.totalorder %s4721_s13, %s4717_s12 }
  0x2f   : > { %p6283_p11 = scmp.eq.s32.totalorder %s4863_s30, 0  ;;  %p130_p2 = scmp.eq.s32.totalorder %s4863_s30, 1 }
  0x30   : > { %p136_p4 = scmp.eq.s32.totalorder %s3161_s6, 1  ;;  %p3162_p6 = scmp.ge.s32.totalorder %s4737_s17, 1 }
  0x31   : > { %p4872_p5 = por %p6283_p11, %p78_p3  ;;  %p4880_p8 = por %p130_p2, %p72_p1 }
  0x32   : > { %p4884_p10 = por %p136_p4, %p78_p3  ;;  %p143_p12 = scmp.lt.s32.totalorder %s4737_s17, 3 }
  0x33   : > { %s6294_s7 = scalar_select %p4872_p5, 1, 0 }
  0x34   : > { %s6295_s28 = scalar_select %p4880_p8, 1, 0 }
  0x35   : > { %s6296_s4 = scalar_select %p4884_p10, 1, 0 }
  0x36   : > { %p4889_p13 = pnand %p3162_p6, %p143_p12  ;;  %s4743_s9 = smov [#allocation2]  }
  0x37   : > { %s159_s10 = sshll.u32 %s4743_s9, 4  ;;  %s4400_s11 = smul.u32 12, %s175_s22  ;;  %s4893_s10 = int_to_ptr.vmem [resolvable:$true] %s159_s10 }
  0x38   : > { %s6297_s8 = scalar_select %p4889_p13, 1, 0 }
  0x39   : > { %p4414_p0 = pneg %p4889_p13  ;;  %s3173_s19 = smul.u32 192, %s4733_s16 }
  0x3a   : > { %s198_s26 = scalar_lea.vmem [#allocation7], %s4400_s11  ;;  %s4593_s22 = scalar_lea.hbm %s6278_s0, 1536 }
  0x3b   : > { %p4902_p1 = pnand %p4414_p0, %p6283_p11  ;;  %s4909_s25 = scalar_lea.hbm %s6280_s2, %s3173_s19 }
  0x3c   : > { %s206_s27 = sshll.u32 %s198_s26, 4  ;;  %p4594_p3 = scmp.ne.s32.totalorder %s6278_s0, %s4593_s22  ;;  %s4911_s27 = int_to_ptr.vmem [resolvable:$true] %s206_s27 }
  0x3d   : > { %p4595_p2 = pneg %p4902_p1  ;;  %p4600_p12 = scmp.lt.u32.totalorder %s4593_s22, %s6278_s0 }
  0x3f   : > { %p4596_p4 = pnand %p4595_p2, %p4594_p3 }
  0x41   : > { %p4597_p6 = pneg %p4596_p4 }
  0x43   : > { %p4602_p0 = pnand %p4600_p12, %p4597_p6 }
  0x45   : > { %4605 = shalt.err (!%p4602_p0)
}
  0x46   : > { %s4606_s11 = scalar_lea.vmem %s4893_s10, 1536  ;;  %p4614_p8 = scmp.lt.s32.totalorder %s4893_s10, %s4893_s10 }
  0x47   : > { %p4607_p11 = scmp.ne.s32.totalorder %s4893_s10, %s4606_s11  ;;  %p4615_p5 = scmp.lt.s32.totalorder %s4606_s11, %s4606_s11 }
  0x49   : > { %p4609_p9 = pnand %p4607_p11, %p4595_p2  ;;  %p4616_p13 = por %p4615_p5, %p4614_p8 }
  0x4b   : > { %p4610_p10 = pneg %p4609_p9 }
  0x4d   : > { %p4617_p7 = pnand %p4616_p13, %p4610_p10 }
  0x4f   : > { %4620 = shalt.err (!%p4617_p7)
}
  0x50   : > { %s4744_s1 = smov 768   ;;  %s4745_s18 = smov 48  }
  0x51   : > { %4417 = dma.hbm_to_vmem [thread:$0]  (!%p4902_p1), %s6278_s0, 1536, %s4893_s10, [#allocation3], %s4744_s1, %s4744_s1, %s4745_s18  }
  0x52   : > { %s4621_s6 = scalar_lea.hbm %s4909_s25, 192  ;;  %p6299_p11 = scmp.ne.s32.totalorder %s6293_s29, 0 }
  0x53   : > { %p4622_p9 = scmp.ne.s32.totalorder %s4909_s25, %s4621_s6  ;;  %s4626_s21 = scalar_lea.hbm %s6280_s2, 384 }
  0x54   : > { %p6300_p5 = pneg %p6299_p11  ;;  %p4627_p10 = scmp.lt.u32.totalorder %s4909_s25, %s6280_s2 }
  0x55   : > { %p4628_p13 = scmp.lt.u32.totalorder %s4626_s21, %s4621_s6  ;;  %p4630_p2 = scmp.lt.u32.totalorder %s4621_s6, %s4909_s25 }
  0x56   : > { %p4624_p8 = pnand %p4622_p9, %p6300_p5 }
  0x57   : > { %p4629_p3 = por %p4628_p13, %p4627_p10 }
  0x58   : > { %p4625_p7 = pneg %p4624_p8 }
  0x59   : > { %p4631_p4 = por %p4630_p2, %p4629_p3 }
  0x5b   : > { %p4632_p6 = pnand %p4631_p4, %p4625_p7 }
  0x5d   : > { %4635 = shalt.err (!%p4632_p6)
}
  0x5e   : > { %s4636_s10 = scalar_lea.vmem %s4911_s27, 192  ;;  %p6301_p12 = pmov %p6300_p5 }
  0x5f   : > { %p4637_p1 = scmp.ne.s32.totalorder %s4911_s27, %s4636_s10  ;;  %s4746_s20 = smov [#allocation7]  }
  0x60   : > { %s4641_s1 = sshll.u32 %s4746_s20, 4  ;;  %s4642_s1 = int_to_ptr.vmem [resolvable:$false] %s4641_s1 }
  0x61   : > { %p4639_p0 = pnand %p4637_p1, %p6301_p12  ;;  %s4643_s18 = scalar_lea.vmem %s4642_s1, 384 }
  0x62   : > { %p4644_p5 = scmp.lt.s32.totalorder %s4911_s27, %s4642_s1  ;;  %p4645_p8 = scmp.lt.s32.totalorder %s4643_s18, %s4636_s10 }
  0x63   : > { %p4640_p9 = pneg %p4639_p0 }
  0x64   : > { %p4646_p10 = por %p4645_p8, %p4644_p5 }
  0x66   : > { %p4647_p13 = pnand %p4646_p10, %p4640_p9 }
  0x68   : > { %4650 = shalt.err (!%p4647_p13)
}
  0x69   : > { %4424 = dma.hbm_to_vmem [thread:$0]  (!%p6299_p11), %s4909_s25, 192, %s4911_s27, %s4834_s5  }
  0x6a   : > { %p6302_p7 = scmp.ne.s32.totalorder %s6297_s8, 0 }
  0x6b   : > { %p6303_p3 = scmp.eq.s32.totalorder (!%p6302_p7), %s4863_s30, 0 }
  0x6c   : > { %215 = sbr.rel (%p6302_p7) target bundleno = 955 (0x3bb), region = 32 }
  0x73   : > { %4704 = dma.done.wait (%p6303_p3), [#allocation3], 1536   ;;  %p6304_p2 = pmov %p6303_p3 }
  0x74   : > { %s221_s19 = sand.u32 1, %s4863_s30   ;;  %s4966_s26 = sand.u32 1, %s4721_s13  }
  0x75   : > { %4706 = vsyncadd (%p6304_p2), [#allocation3], 4294965760  ;;  %s4401_s29 = smul.u32 9216, %s4966_s26  ;;  %s222_s6 = scalar_lea.sflag [#allocation6], %s221_s19 }
  0x76   : > { %p6305_p11 = scmp.ne.s32.totalorder %s6294_s7, 0 }
  0x77   : > { %s4969_s9 = scalar_lea.vmem [#allocation5], %s4401_s29 }
  0x78   : > { %4708 = dma.done.wait (%p6305_p11), %s222_s6, 147648  }
  0x79   : > { %4710 = vsyncadd (%p6305_p11), %s222_s6, 4294819648  ;;  %v280_v0 = vld [vmem:[%s4969_s9 + $0x8] sm:$0xff]  ;;  %v282_v2 = vld [vmem:[%s4969_s9 + $0x18] sm:$0xff]  ;;  %s4402_s5 = smul.u32 12, %s4966_s26  ;;  %s3026_s23 = scalar_lea.sflag [#allocation4], %s4966_s26 }
  0x7a   : > { %v292_v1 = vld [vmem:[%s4969_s9 + $0x68] sm:$0xff]  ;;  %v294_v4 = vld [vmem:[%s4969_s9 + $0x78] sm:$0xff]  ;;  %v279_v5 = vld [vmem:[%s4969_s9] sm:$0xff]  ;;  %s4403_s7 = smul.u32 192, %s4966_s26  ;;  %p6306_p6 = scmp.ne.s32.totalorder %s6295_s28, 0 }
  0x7b   : > { %v3175_v3 = vpack.c.bf16 %v292_v1, %v280_v0  ;;  %v291_v6 = vld [vmem:[%s4969_s9 + $0x60] sm:$0xff]  ;;  %v3367_v7 = vpack.c.bf16 %v294_v4, %v282_v2  ;;  %v281_v9 = vld [vmem:[%s4969_s9 + $0x10] sm:$0xff]  ;;  %v304_v11 = vld [vmem:[%s4969_s9 + $0xc8] sm:$0xff]  ;;  %s5793_s30 = scalar_lea.vmem [#allocation7], %s4402_s5  ;;  %s3174_s25 = smul.u32 1536, %s4729_s15 }
  0x7c   : > { %v3177_v8 = vpack.c.bf16 %v291_v6, %v279_v5  ;;  %v293_v10 = vld [vmem:[%s4969_s9 + $0x70] sm:$0xff]  ;;  %v316_v13 = vld [vmem:[%s4969_s9 + $0x128] sm:$0xff]  ;;  %v306_v14 = vld [vmem:[%s4969_s9 + $0xd8] sm:$0xff]  ;;  %s5890_s8 = scalar_lea.vmem [#allocation8], %s4403_s7  ;;  %s4747_s10 = smov [#allocation8]  }
  0x7d   : > { %3176 = vmatprep.subr.bf16.mxu0 %v3175_v3  ;;  %v3369_v12 = vpack.c.bf16 %v293_v10, %v281_v9  ;;  %v318_v15 = vld [vmem:[%s4969_s9 + $0x138] sm:$0xff]  ;;  %3368 = vmatprep.subr.bf16.mxu1 %v3367_v7  ;;  %v3179_v16 = vpack.c.bf16 %v316_v13, %v304_v11  ;;  %v303_v18 = vld [vmem:[%s4969_s9 + $0xc0] sm:$0xff]  ;;  %v305_v20 = vld [vmem:[%s4969_s9 + $0xd0] sm:$0xff]  ;;  %s3042_s27 = sshll.u32 %s5890_s8, 4  ;;  %s6223_s21 = scalar_lea.hbm %s6281_s3, %s3174_s25  ;;  %s6226_s27 = int_to_ptr.vmem [resolvable:$true] %s3042_s27 }
  0x7e   : > { %3178 = vmatpush1.bf16.msra.mxu0 %v3177_v8  ;;  %v3371_v17 = vpack.c.bf16 %v318_v15, %v306_v14  ;;  %v315_v19 = vld [vmem:[%s4969_s9 + $0x120] sm:$0xff]  ;;  %v317_v22 = vld [vmem:[%s4969_s9 + $0x130] sm:$0xff]  ;;  %v328_v23 = vld [vmem:[%s4969_s9 + $0x188] sm:$0xff]  ;;  %s4651_s11 = scalar_lea.vmem %s6226_s27, 3072  ;;  %s4655_s20 = sshll.u32 %s4747_s10, 4  ;;  %s4656_s20 = int_to_ptr.vmem [resolvable:$false] %s4655_s20 }
  0x7f   : > { %3370 = vmatpush1.bf16.msra.mxu1 %v3369_v12  ;;  %v3181_v21 = vpack.c.bf16 %v315_v19, %v303_v18  ;;  %v340_v24 = vld [vmem:[%s4969_s9 + $0x1e8] sm:$0xff]  ;;  %3180 = vmatprep.subr.bf16.mxu0 %v3179_v16  ;;  %v3373_v25 = vpack.c.bf16 %v317_v22, %v305_v20  ;;  %v330_v27 = vld [vmem:[%s4969_s9 + $0x198] sm:$0xff]  ;;  %v327_v29 = vld [vmem:[%s4969_s9 + $0x180] sm:$0xff]  ;;  %p4652_p4 = scmp.ne.s32.totalorder %s6226_s27, %s4651_s11  ;;  %s4657_s1 = scalar_lea.vmem %s4656_s20, 6144 }
  0x80   : > { %3372 = vmatprep.subr.bf16.mxu1 %v3371_v17  ;;  %v3183_v26 = vpack.c.bf16 %v340_v24, %v328_v23  ;;  %v342_v28 = vld [vmem:[%s4969_s9 + $0x1f8] sm:$0xff]  ;;  %v339_v31 = vld [vmem:[%s4969_s9 + $0x1e0] sm:$0xff]  ;;  %v329_v32 = vld [vmem:[%s4969_s9 + $0x190] sm:$0xff]  ;;  %p4658_p0 = scmp.lt.s32.totalorder %s6226_s27, %s4656_s20  ;;  %p4659_p9 = scmp.lt.s32.totalorder %s4657_s1, %s4651_s11 }
  0x81   : > { %v3375_v30 = vpack.c.bf16 %v342_v28, %v330_v27  ;;  %v341_v33 = vld [vmem:[%s4969_s9 + $0x1f0] sm:$0xff]  ;;  %v3185_v34 = vpack.c.bf16 %v339_v31, %v327_v29  ;;  %v352_v35 = vld [vmem:[%s4969_s9 + $0x248] sm:$0xff]  ;;  %v354_v37 = vld [vmem:[%s4969_s9 + $0x258] sm:$0xff]  ;;  %p4653_p1 = pnand %p4652_p4, %p6306_p6 }
  0x82   : > { %3182 = vmatpush1.bf16.msra.mxu0 %v3181_v21  ;;  %v364_v36 = vld [vmem:[%s4969_s9 + $0x2a8] sm:$0xff]  ;;  %v3377_v38 = vpack.c.bf16 %v341_v33, %v329_v32  ;;  %v366_v40 = vld [vmem:[%s4969_s9 + $0x2b8] sm:$0xff]  ;;  %v351_v41 = vld [vmem:[%s4969_s9 + $0x240] sm:$0xff]  ;;  %p4660_p5 = por %p4659_p9, %p4658_p0 }
  0x83   : > { %3374 = vmatpush1.bf16.msra.mxu1 %v3373_v25  ;;  %3184 = vmatprep.subr.bf16.mxu0 %v3183_v26  ;;  %v3187_v39 = vpack.c.bf16 %v364_v36, %v352_v35  ;;  %v363_v42 = vld [vmem:[%s4969_s9 + $0x2a0] sm:$0xff]  ;;  %v3379_v43 = vpack.c.bf16 %v366_v40, %v354_v37  ;;  %v353_v44 = vld [vmem:[%s4969_s9 + $0x250] sm:$0xff]  ;;  %v376_v46 = vld [vmem:[%s4969_s9 + $0x308] sm:$0xff]  ;;  %p4654_p12 = pneg %p4653_p1 }
  0x84   : > { %3376 = vmatprep.subr.bf16.mxu1 %v3375_v30  ;;  %v365_v45 = vld [vmem:[%s4969_s9 + $0x2b0] sm:$0xff]  ;;  %v388_v47 = vld [vmem:[%s4969_s9 + $0x368] sm:$0xff]  ;;  %v378_v48 = vld [vmem:[%s4969_s9 + $0x318] sm:$0xff]  ;;  %v3189_v50 = vpack.c.bf16 %v363_v42, %v351_v41 }
  0x85   : > { %v390_v49 = vld [vmem:[%s4969_s9 + $0x378] sm:$0xff]  ;;  %v3381_v51 = vpack.c.bf16 %v365_v45, %v353_v44  ;;  %v3191_v52 = vpack.c.bf16 %v388_v47, %v376_v46  ;;  %v375_v53 = vld [vmem:[%s4969_s9 + $0x300] sm:$0xff]  ;;  %v377_v55 = vld [vmem:[%s4969_s9 + $0x310] sm:$0xff]  ;;  %p4661_p8 = pnand %p4660_p5, %p4654_p12 }
  0x86   : > { %3186 = vmatpush1.bf16.msra.mxu0 %v3185_v34  ;;  %v387_v54 = vld [vmem:[%s4969_s9 + $0x360] sm:$0xff]  ;;  %v3383_v56 = vpack.c.bf16 %v390_v49, %v378_v48  ;;  %v389_v57 = vld [vmem:[%s4969_s9 + $0x370] sm:$0xff]  ;;  %v400_v58 = vld [vmem:[%s4969_s9 + $0x3c8] sm:$0xff] }
  0x87   : > { %3378 = vmatpush1.bf16.msra.mxu1 %v3377_v38  ;;  %3188 = vmatprep.subr.bf16.mxu0 %v3187_v39  ;;  %v412_v59 = vld [vmem:[%s4969_s9 + $0x428] sm:$0xff]  ;;  %v402_v60 = vld [vmem:[%s4969_s9 + $0x3d8] sm:$0xff]  ;;  %v3193_v62 = vpack.c.bf16 %v387_v54, %v375_v53  ;;  %v3385_v63 = vpack.c.bf16 %v389_v57, %v377_v55  ;;  %v399_v1 = vld [vmem:[%s4969_s9 + $0x3c0] sm:$0xff] }
  0x88   : > { %3380 = vmatprep.subr.bf16.mxu1 %v3379_v43  ;;  %v414_v61 = vld [vmem:[%s4969_s9 + $0x438] sm:$0xff]  ;;  %v3195_v0 = vpack.c.bf16 %v412_v59, %v400_v58  ;;  %v411_v2 = vld [vmem:[%s4969_s9 + $0x420] sm:$0xff]  ;;  %v401_v3 = vld [vmem:[%s4969_s9 + $0x3d0] sm:$0xff] }
  0x89   : > { %v3387_v4 = vpack.c.bf16 %v414_v61, %v402_v60  ;;  %v413_v5 = vld [vmem:[%s4969_s9 + $0x430] sm:$0xff]  ;;  %v424_v6 = vld [vmem:[%s4969_s9 + $0x488] sm:$0xff]  ;;  %v426_v8 = vld [vmem:[%s4969_s9 + $0x498] sm:$0xff]  ;;  %v3197_v10 = vpack.c.bf16 %v411_v2, %v399_v1 }
  0x8a   : > { %3190 = vmatpush1.bf16.msra.mxu0 %v3189_v50  ;;  %v436_v7 = vld [vmem:[%s4969_s9 + $0x4e8] sm:$0xff]  ;;  %v438_v9 = vld [vmem:[%s4969_s9 + $0x4f8] sm:$0xff]  ;;  %v3389_v11 = vpack.c.bf16 %v413_v5, %v401_v3  ;;  %v423_v13 = vld [vmem:[%s4969_s9 + $0x480] sm:$0xff] }
  0x8b   : > { %3382 = vmatpush1.bf16.msra.mxu1 %v3381_v51  ;;  %3192 = vmatprep.subr.bf16.mxu0 %v3191_v52  ;;  %v3199_v12 = vpack.c.bf16 %v436_v7, %v424_v6  ;;  %v435_v14 = vld [vmem:[%s4969_s9 + $0x4e0] sm:$0xff]  ;;  %v425_v15 = vld [vmem:[%s4969_s9 + $0x490] sm:$0xff]  ;;  %v3391_v16 = vpack.c.bf16 %v438_v9, %v426_v8  ;;  %v448_v18 = vld [vmem:[%s4969_s9 + $0x548] sm:$0xff] }
  0x8c   : > { %3384 = vmatprep.subr.bf16.mxu1 %v3383_v56  ;;  %v437_v17 = vld [vmem:[%s4969_s9 + $0x4f0] sm:$0xff]  ;;  %v460_v19 = vld [vmem:[%s4969_s9 + $0x5a8] sm:$0xff]  ;;  %v450_v20 = vld [vmem:[%s4969_s9 + $0x558] sm:$0xff]  ;;  %v3201_v22 = vpack.c.bf16 %v435_v14, %v423_v13 }
  0x8d   : > { %v462_v21 = vld [vmem:[%s4969_s9 + $0x5b8] sm:$0xff]  ;;  %v3393_v23 = vpack.c.bf16 %v437_v17, %v425_v15  ;;  %v3203_v24 = vpack.c.bf16 %v460_v19, %v448_v18  ;;  %v447_v25 = vld [vmem:[%s4969_s9 + $0x540] sm:$0xff]  ;;  %v449_v27 = vld [vmem:[%s4969_s9 + $0x550] sm:$0xff] }
  0x8e   : > { %3194 = vmatpush1.bf16.msra.mxu0 %v3193_v62  ;;  %v459_v26 = vld [vmem:[%s4969_s9 + $0x5a0] sm:$0xff]  ;;  %v3395_v28 = vpack.c.bf16 %v462_v21, %v450_v20  ;;  %v461_v29 = vld [vmem:[%s4969_s9 + $0x5b0] sm:$0xff]  ;;  %v472_v30 = vld [vmem:[%s4969_s9 + $0x608] sm:$0xff] }
  0x8f   : > { %3386 = vmatpush1.bf16.msra.mxu1 %v3385_v63  ;;  %3196 = vmatprep.subr.bf16.mxu0 %v3195_v0  ;;  %v484_v31 = vld [vmem:[%s4969_s9 + $0x668] sm:$0xff]  ;;  %v474_v32 = vld [vmem:[%s4969_s9 + $0x618] sm:$0xff]  ;;  %v3205_v34 = vpack.c.bf16 %v459_v26, %v447_v25  ;;  %v3397_v35 = vpack.c.bf16 %v461_v29, %v449_v27  ;;  %v471_v37 = vld [vmem:[%s4969_s9 + $0x600] sm:$0xff] }
  0x90   : > { %3388 = vmatprep.subr.bf16.mxu1 %v3387_v4  ;;  %v486_v33 = vld [vmem:[%s4969_s9 + $0x678] sm:$0xff]  ;;  %v3207_v36 = vpack.c.bf16 %v484_v31, %v472_v30  ;;  %v483_v38 = vld [vmem:[%s4969_s9 + $0x660] sm:$0xff]  ;;  %v473_v39 = vld [vmem:[%s4969_s9 + $0x610] sm:$0xff] }
  0x91   : > { %v3399_v40 = vpack.c.bf16 %v486_v33, %v474_v32  ;;  %v485_v41 = vld [vmem:[%s4969_s9 + $0x670] sm:$0xff]  ;;  %v496_v42 = vld [vmem:[%s4969_s9 + $0x6c8] sm:$0xff]  ;;  %v498_v44 = vld [vmem:[%s4969_s9 + $0x6d8] sm:$0xff]  ;;  %v3209_v46 = vpack.c.bf16 %v483_v38, %v471_v37 }
  0x92   : > { %3198 = vmatpush1.bf16.msra.mxu0 %v3197_v10  ;;  %v508_v43 = vld [vmem:[%s4969_s9 + $0x728] sm:$0xff]  ;;  %v510_v45 = vld [vmem:[%s4969_s9 + $0x738] sm:$0xff]  ;;  %v3401_v47 = vpack.c.bf16 %v485_v41, %v473_v39  ;;  %v495_v49 = vld [vmem:[%s4969_s9 + $0x6c0] sm:$0xff] }
  0x93   : > { %3390 = vmatpush1.bf16.msra.mxu1 %v3389_v11  ;;  %3200 = vmatprep.subr.bf16.mxu0 %v3199_v12  ;;  %v3211_v48 = vpack.c.bf16 %v508_v43, %v496_v42  ;;  %v507_v50 = vld [vmem:[%s4969_s9 + $0x720] sm:$0xff]  ;;  %v497_v51 = vld [vmem:[%s4969_s9 + $0x6d0] sm:$0xff]  ;;  %v3403_v52 = vpack.c.bf16 %v510_v45, %v498_v44  ;;  %v520_v54 = vld [vmem:[%s4969_s9 + $0x788] sm:$0xff] }
  0x94   : > { %3392 = vmatprep.subr.bf16.mxu1 %v3391_v16  ;;  %v509_v53 = vld [vmem:[%s4969_s9 + $0x730] sm:$0xff]  ;;  %v532_v55 = vld [vmem:[%s4969_s9 + $0x7e8] sm:$0xff]  ;;  %v522_v56 = vld [vmem:[%s4969_s9 + $0x798] sm:$0xff]  ;;  %v3213_v58 = vpack.c.bf16 %v507_v50, %v495_v49 }
  0x95   : > { %v534_v57 = vld [vmem:[%s4969_s9 + $0x7f8] sm:$0xff]  ;;  %v3405_v59 = vpack.c.bf16 %v509_v53, %v497_v51  ;;  %v3215_v60 = vpack.c.bf16 %v532_v55, %v520_v54  ;;  %v519_v61 = vld [vmem:[%s4969_s9 + $0x780] sm:$0xff]  ;;  %v521_v63 = vld [vmem:[%s4969_s9 + $0x790] sm:$0xff] }
  0x96   : > { %3202 = vmatpush1.bf16.msra.mxu0 %v3201_v22  ;;  %v531_v62 = vld [vmem:[%s4969_s9 + $0x7e0] sm:$0xff]  ;;  %v3407_v0 = vpack.c.bf16 %v534_v57, %v522_v56  ;;  %v533_v1 = vld [vmem:[%s4969_s9 + $0x7f0] sm:$0xff]  ;;  %v544_v2 = vld [vmem:[%s4969_s9 + $0x848] sm:$0xff] }
  0x97   : > { %3394 = vmatpush1.bf16.msra.mxu1 %v3393_v23  ;;  %3204 = vmatprep.subr.bf16.mxu0 %v3203_v24  ;;  %v556_v3 = vld [vmem:[%s4969_s9 + $0x8a8] sm:$0xff]  ;;  %v546_v4 = vld [vmem:[%s4969_s9 + $0x858] sm:$0xff]  ;;  %v3217_v6 = vpack.c.bf16 %v531_v62, %v519_v61  ;;  %v543_v7 = vld [vmem:[%s4969_s9 + $0x840] sm:$0xff]  ;;  %v3409_v8 = vpack.c.bf16 %v533_v1, %v521_v63 }
  0x98   : > { %3396 = vmatprep.subr.bf16.mxu1 %v3395_v28  ;;  %v558_v5 = vld [vmem:[%s4969_s9 + $0x8b8] sm:$0xff]  ;;  %v3219_v9 = vpack.c.bf16 %v556_v3, %v544_v2  ;;  %v555_v10 = vld [vmem:[%s4969_s9 + $0x8a0] sm:$0xff]  ;;  %v545_v11 = vld [vmem:[%s4969_s9 + $0x850] sm:$0xff] }
  0x99   : > { %v557_v12 = vld [vmem:[%s4969_s9 + $0x8b0] sm:$0xff]  ;;  %v3411_v13 = vpack.c.bf16 %v558_v5, %v546_v4  ;;  %v568_v14 = vld [vmem:[%s4969_s9 + $0x908] sm:$0xff]  ;;  %v570_v17 = vld [vmem:[%s4969_s9 + $0x918] sm:$0xff]  ;;  %v3221_v19 = vpack.c.bf16 %v555_v10, %v543_v7 }
  0x9a   : > { %3206 = vmatpush1.bf16.msra.mxu0 %v3205_v34  ;;  %v580_v15 = vld [vmem:[%s4969_s9 + $0x968] sm:$0xff]  ;;  %v582_v18 = vld [vmem:[%s4969_s9 + $0x978] sm:$0xff]  ;;  %v3413_v20 = vpack.c.bf16 %v557_v12, %v545_v11  ;;  %v567_v22 = vld [vmem:[%s4969_s9 + $0x900] sm:$0xff] }
  0x9b   : > { %3398 = vmatpush1.bf16.msra.mxu1 %v3397_v35  ;;  %3208 = vmatprep.subr.bf16.mxu0 %v3207_v36  ;;  %v268_v16 = vld [vmem:[#allocation2 + $0x8] sm:$0xff]  ;;  %v3223_v21 = vpack.c.bf16 %v580_v15, %v568_v14  ;;  %v579_v23 = vld [vmem:[%s4969_s9 + $0x960] sm:$0xff]  ;;  %v569_v24 = vld [vmem:[%s4969_s9 + $0x910] sm:$0xff]  ;;  %v3415_v25 = vpack.c.bf16 %v582_v18, %v570_v17 }
  0x9c   : > { %3400 = vmatprep.subr.bf16.mxu1 %v3399_v40  ;;  %1559 = vmatprep.mubr.f32.mxu0 %v268_v16  ;;  %v581_v26 = vld [vmem:[%s4969_s9 + $0x970] sm:$0xff]  ;;  %v592_v27 = vld [vmem:[%s4969_s9 + $0x9c8] sm:$0xff]  ;;  %v594_v29 = vld [vmem:[%s4969_s9 + $0x9d8] sm:$0xff]  ;;  %v3225_v31 = vpack.c.bf16 %v579_v23, %v567_v22 }
  0x9d   : > { %1790 = vmatprep.mubr.f32.mxu1 %v268_v16  ;;  %v604_v28 = vld [vmem:[%s4969_s9 + $0xa28] sm:$0xff]  ;;  %v606_v30 = vld [vmem:[%s4969_s9 + $0xa38] sm:$0xff]  ;;  %v3417_v32 = vpack.c.bf16 %v581_v26, %v569_v24  ;;  %v591_v34 = vld [vmem:[%s4969_s9 + $0x9c0] sm:$0xff] }
  0x9e   : > { %3210 = vmatpush1.bf16.msra.mxu0 %v3209_v46  ;;  %v3227_v33 = vpack.c.bf16 %v604_v28, %v592_v27  ;;  %v603_v35 = vld [vmem:[%s4969_s9 + $0xa20] sm:$0xff]  ;;  %v593_v36 = vld [vmem:[%s4969_s9 + $0x9d0] sm:$0xff]  ;;  %v3419_v37 = vpack.c.bf16 %v606_v30, %v594_v29  ;;  %v616_v39 = vld [vmem:[%s4969_s9 + $0xa88] sm:$0xff] }
  0x9f   : > { %3402 = vmatpush1.bf16.msra.mxu1 %v3401_v47  ;;  %3212 = vmatprep.subr.bf16.mxu0 %v3211_v48  ;;  %v605_v38 = vld [vmem:[%s4969_s9 + $0xa30] sm:$0xff]  ;;  %v628_v40 = vld [vmem:[%s4969_s9 + $0xae8] sm:$0xff]  ;;  %v618_v41 = vld [vmem:[%s4969_s9 + $0xa98] sm:$0xff]  ;;  %v3229_v43 = vpack.c.bf16 %v603_v35, %v591_v34 }
  0xa0   : > { %3404 = vmatprep.subr.bf16.mxu1 %v3403_v52  ;;  %v630_v42 = vld [vmem:[%s4969_s9 + $0xaf8] sm:$0xff]  ;;  %v3421_v44 = vpack.c.bf16 %v605_v38, %v593_v36  ;;  %v3231_v45 = vpack.c.bf16 %v628_v40, %v616_v39  ;;  %v615_v46 = vld [vmem:[%s4969_s9 + $0xa80] sm:$0xff]  ;;  %v617_v48 = vld [vmem:[%s4969_s9 + $0xa90] sm:$0xff] }
  0xa1   : > { %v627_v47 = vld [vmem:[%s4969_s9 + $0xae0] sm:$0xff]  ;;  %v3423_v49 = vpack.c.bf16 %v630_v42, %v618_v41  ;;  %v629_v50 = vld [vmem:[%s4969_s9 + $0xaf0] sm:$0xff]  ;;  %v640_v51 = vld [vmem:[%s4969_s9 + $0xb48] sm:$0xff] }
  0xa2   : > { %3214 = vmatpush1.bf16.msra.mxu0 %v3213_v58  ;;  %v652_v52 = vld [vmem:[%s4969_s9 + $0xba8] sm:$0xff]  ;;  %v642_v53 = vld [vmem:[%s4969_s9 + $0xb58] sm:$0xff]  ;;  %v3233_v55 = vpack.c.bf16 %v627_v47, %v615_v46  ;;  %v3425_v56 = vpack.c.bf16 %v629_v50, %v617_v48  ;;  %v639_v58 = vld [vmem:[%s4969_s9 + $0xb40] sm:$0xff] }
  0xa3   : > { %3406 = vmatpush1.bf16.msra.mxu1 %v3405_v59  ;;  %3216 = vmatprep.subr.bf16.mxu0 %v3215_v60  ;;  %v654_v54 = vld [vmem:[%s4969_s9 + $0xbb8] sm:$0xff]  ;;  %v3235_v57 = vpack.c.bf16 %v652_v52, %v640_v51  ;;  %v651_v59 = vld [vmem:[%s4969_s9 + $0xba0] sm:$0xff]  ;;  %v641_v60 = vld [vmem:[%s4969_s9 + $0xb50] sm:$0xff] }
  0xa4   : > { %3408 = vmatprep.subr.bf16.mxu1 %v3407_v0  ;;  %v3427_v61 = vpack.c.bf16 %v654_v54, %v642_v53  ;;  %v653_v62 = vld [vmem:[%s4969_s9 + $0xbb0] sm:$0xff]  ;;  %v664_v63 = vld [vmem:[%s4969_s9 + $0xc08] sm:$0xff]  ;;  %v666_v1 = vld [vmem:[%s4969_s9 + $0xc18] sm:$0xff]  ;;  %v3237_v3 = vpack.c.bf16 %v651_v59, %v639_v58 }
  0xa5   : > { %v676_v0 = vld [vmem:[%s4969_s9 + $0xc68] sm:$0xff]  ;;  %v678_v2 = vld [vmem:[%s4969_s9 + $0xc78] sm:$0xff]  ;;  %v3429_v4 = vpack.c.bf16 %v653_v62, %v641_v60  ;;  %v675_v7 = vld [vmem:[%s4969_s9 + $0xc60] sm:$0xff] }
  0xa6   : > { %3218 = vmatpush1.bf16.msra.mxu0 %v3217_v6  ;;  %v3239_v5 = vpack.c.bf16 %v676_v0, %v664_v63  ;;  %v663_v6 = vld [vmem:[%s4969_s9 + $0xc00] sm:$0xff]  ;;  %v677_v10 = vld [vmem:[%s4969_s9 + $0xc70] sm:$0xff]  ;;  %v688_v11 = vld [vmem:[%s4969_s9 + $0xcc8] sm:$0xff] }
  0xa7   : > { %3410 = vmatpush1.bf16.msra.mxu1 %v3409_v8  ;;  %3220 = vmatprep.subr.bf16.mxu0 %v3219_v9  ;;  %v665_v8 = vld [vmem:[%s4969_s9 + $0xc10] sm:$0xff]  ;;  %v3431_v9 = vpack.c.bf16 %v678_v2, %v666_v1  ;;  %v700_v12 = vld [vmem:[%s4969_s9 + $0xd28] sm:$0xff]  ;;  %v702_v14 = vld [vmem:[%s4969_s9 + $0xd38] sm:$0xff]  ;;  %v3241_v16 = vpack.c.bf16 %v675_v7, %v663_v6 }
  0xa8   : > { %3412 = vmatprep.subr.bf16.mxu1 %v3411_v13  ;;  %v690_v13 = vld [vmem:[%s4969_s9 + $0xcd8] sm:$0xff]  ;;  %v267_v15 = vld [vmem:[#allocation2] sm:$0xff]  ;;  %v3433_v17 = vpack.c.bf16 %v677_v10, %v665_v8  ;;  %v3243_v18 = vpack.c.bf16 %v700_v12, %v688_v11  ;;  %v701_v23 = vld [vmem:[%s4969_s9 + $0xd30] sm:$0xff] }
  0xa9   : > { %v3435_v22 = vpack.c.bf16 %v702_v14, %v690_v13  ;;  %v712_v24 = vld [vmem:[%s4969_s9 + $0xd88] sm:$0xff]  ;;  %v714_v26 = vld [vmem:[%s4969_s9 + $0xd98] sm:$0xff]  ;;  %v725_v35 = vld [vmem:[%s4969_s9 + $0xdf0] sm:$0xff] }
  0xaa   : > { %3222 = vmatpush1.bf16.msra.mxu0 %v3221_v19  ;;  %v687_v19 = vld [vmem:[%s4969_s9 + $0xcc0] sm:$0xff]  ;;  %v726_v27 = vld [vmem:[%s4969_s9 + $0xdf8] sm:$0xff]  ;;  %v736_v36 = vld [vmem:[%s4969_s9 + $0xe48] sm:$0xff] }
  0xab   : > { %3414 = vmatpush1.bf16.msra.mxu1 %v3413_v20  ;;  %3224 = vmatprep.subr.bf16.mxu0 %v3223_v21  ;;  %v699_v20 = vld [vmem:[%s4969_s9 + $0xd20] sm:$0xff]  ;;  %v689_v21 = vld [vmem:[%s4969_s9 + $0xcd0] sm:$0xff]  ;;  %v3439_v34 = vpack.c.bf16 %v726_v27, %v714_v26  ;;  %v738_v38 = vld [vmem:[%s4969_s9 + $0xe58] sm:$0xff] }
  0xac   : > { %3416 = vmatprep.subr.bf16.mxu1 %v3415_v25  ;;  %v724_v25 = vld [vmem:[%s4969_s9 + $0xde8] sm:$0xff]  ;;  %v3245_v28 = vpack.c.bf16 %v699_v20, %v687_v19  ;;  %v3437_v29 = vpack.c.bf16 %v701_v23, %v689_v21  ;;  %v750_v39 = vld [vmem:[%s4969_s9 + $0xeb8] sm:$0xff]  ;;  %v749_v47 = vld [vmem:[%s4969_s9 + $0xeb0] sm:$0xff] }
  0xad   : > { %v3247_v30 = vpack.c.bf16 %v724_v25, %v712_v24  ;;  %v3443_v46 = vpack.c.bf16 %v750_v39, %v738_v38  ;;  %v760_v48 = vld [vmem:[%s4969_s9 + $0xf08] sm:$0xff]  ;;  %v762_v50 = vld [vmem:[%s4969_s9 + $0xf18] sm:$0xff]  ;;  %v773_v59 = vld [vmem:[%s4969_s9 + $0xf70] sm:$0xff] }
  0xae   : > { %3226 = vmatpush1.bf16.msra.mxu0 %v3225_v31  ;;  %v711_v31 = vld [vmem:[%s4969_s9 + $0xd80] sm:$0xff]  ;;  %v774_v51 = vld [vmem:[%s4969_s9 + $0xf78] sm:$0xff]  ;;  %v784_v60 = vld [vmem:[%s4969_s9 + $0xfc8] sm:$0xff] }
  0xaf   : > { %3418 = vmatpush1.bf16.msra.mxu1 %v3417_v32  ;;  %3228 = vmatprep.subr.bf16.mxu0 %v3227_v33  ;;  %v723_v32 = vld [vmem:[%s4969_s9 + $0xde0] sm:$0xff]  ;;  %v713_v33 = vld [vmem:[%s4969_s9 + $0xd90] sm:$0xff]  ;;  %v3447_v58 = vpack.c.bf16 %v774_v51, %v762_v50  ;;  %v786_v62 = vld [vmem:[%s4969_s9 + $0xfd8] sm:$0xff] }
  0xb0   : > { %3420 = vmatprep.subr.bf16.mxu1 %v3419_v37  ;;  %v748_v37 = vld [vmem:[%s4969_s9 + $0xea8] sm:$0xff]  ;;  %v3249_v40 = vpack.c.bf16 %v723_v32, %v711_v31  ;;  %v3441_v41 = vpack.c.bf16 %v725_v35, %v713_v33  ;;  %v798_v63 = vld [vmem:[%s4969_s9 + $0x1038] sm:$0xff]  ;;  %v797_v7 = vld [vmem:[%s4969_s9 + $0x1030] sm:$0xff] }
  0xb1   : > { %v3251_v42 = vpack.c.bf16 %v748_v37, %v736_v36  ;;  %v3451_v6 = vpack.c.bf16 %v798_v63, %v786_v62  ;;  %v808_v8 = vld [vmem:[%s4969_s9 + $0x1088] sm:$0xff]  ;;  %v810_v10 = vld [vmem:[%s4969_s9 + $0x1098] sm:$0xff]  ;;  %v807_v14 = vld [vmem:[%s4969_s9 + $0x1080] sm:$0xff] }
  0xb2   : > { %3230 = vmatpush1.bf16.msra.mxu0 %v3229_v43  ;;  %v735_v43 = vld [vmem:[%s4969_s9 + $0xe40] sm:$0xff]  ;;  %v822_v11 = vld [vmem:[%s4969_s9 + $0x10f8] sm:$0xff]  ;;  %v821_v19 = vld [vmem:[%s4969_s9 + $0x10f0] sm:$0xff] }
  0xb3   : > { %3422 = vmatpush1.bf16.msra.mxu1 %v3421_v44  ;;  %3232 = vmatprep.subr.bf16.mxu0 %v3231_v45  ;;  %v747_v44 = vld [vmem:[%s4969_s9 + $0xea0] sm:$0xff]  ;;  %v737_v45 = vld [vmem:[%s4969_s9 + $0xe50] sm:$0xff]  ;;  %v274_v12 = vld [vmem:[#allocation2 + $0x38] sm:$0xff]  ;;  %v3455_v21 = vpack.c.bf16 %v822_v11, %v810_v10 }
  0xb4   : > { %3424 = vmatprep.subr.bf16.mxu1 %v3423_v49  ;;  %v772_v49 = vld [vmem:[%s4969_s9 + $0xf68] sm:$0xff]  ;;  %v3253_v52 = vpack.c.bf16 %v747_v44, %v735_v43  ;;  %v3445_v53 = vpack.c.bf16 %v749_v47, %v737_v45  ;;  %v273_v20 = vld [vmem:[#allocation2 + $0x30] sm:$0xff]  ;;  %v270_v24 = vld [vmem:[#allocation2 + $0x18] sm:$0xff] }
  0xb5   : > { %v3255_v54 = vpack.c.bf16 %v772_v49, %v760_v48  ;;  %v844_v23 = vld [vmem:[%s4969_s9 + $0x11a8] sm:$0xff]  ;;  %v834_v25 = vld [vmem:[%s4969_s9 + $0x1158] sm:$0xff]  ;;  %v843_v31 = vld [vmem:[%s4969_s9 + $0x11a0] sm:$0xff] }
  0xb6   : > { %3234 = vmatpush1.bf16.msra.mxu0 %v3233_v55  ;;  %v759_v55 = vld [vmem:[%s4969_s9 + $0xf00] sm:$0xff]  ;;  %v846_v26 = vld [vmem:[%s4969_s9 + $0x11b8] sm:$0xff]  ;;  %v833_v32 = vld [vmem:[%s4969_s9 + $0x1150] sm:$0xff] }
  0xb7   : > { %3426 = vmatpush1.bf16.msra.mxu1 %v3425_v56  ;;  %3236 = vmatprep.subr.bf16.mxu0 %v3235_v57  ;;  %v771_v56 = vld [vmem:[%s4969_s9 + $0xf60] sm:$0xff]  ;;  %v761_v57 = vld [vmem:[%s4969_s9 + $0xf10] sm:$0xff]  ;;  %v3459_v33 = vpack.c.bf16 %v846_v26, %v834_v25  ;;  %v856_v35 = vld [vmem:[%s4969_s9 + $0x1208] sm:$0xff] }
  0xb8   : > { %3428 = vmatprep.subr.bf16.mxu1 %v3427_v61  ;;  %v796_v61 = vld [vmem:[%s4969_s9 + $0x1028] sm:$0xff]  ;;  %v3257_v0 = vpack.c.bf16 %v771_v56, %v759_v55  ;;  %v3449_v1 = vpack.c.bf16 %v773_v59, %v761_v57  ;;  %v858_v37 = vld [vmem:[%s4969_s9 + $0x1218] sm:$0xff]  ;;  %v867_v43 = vld [vmem:[%s4969_s9 + $0x1260] sm:$0xff] }
  0xb9   : > { %v3259_v2 = vpack.c.bf16 %v796_v61, %v784_v60  ;;  %v868_v36 = vld [vmem:[%s4969_s9 + $0x1268] sm:$0xff]  ;;  %v870_v38 = vld [vmem:[%s4969_s9 + $0x1278] sm:$0xff]  ;;  %v857_v44 = vld [vmem:[%s4969_s9 + $0x1210] sm:$0xff] }
  0xba   : > { %3238 = vmatpush1.bf16.msra.mxu0 %v3237_v3  ;;  %v783_v3 = vld [vmem:[%s4969_s9 + $0xfc0] sm:$0xff]  ;;  %v3463_v45 = vpack.c.bf16 %v870_v38, %v858_v37  ;;  %v880_v47 = vld [vmem:[%s4969_s9 + $0x12c8] sm:$0xff]  ;;  %v882_v49 = vld [vmem:[%s4969_s9 + $0x12d8] sm:$0xff] }
  0xbb   : > { %3430 = vmatpush1.bf16.msra.mxu1 %v3429_v4  ;;  %3240 = vmatprep.subr.bf16.mxu0 %v3239_v5  ;;  %v795_v4 = vld [vmem:[%s4969_s9 + $0x1020] sm:$0xff]  ;;  %v785_v5 = vld [vmem:[%s4969_s9 + $0xfd0] sm:$0xff]  ;;  %v892_v48 = vld [vmem:[%s4969_s9 + $0x1328] sm:$0xff] }
  0xbc   : > { %3432 = vmatprep.subr.bf16.mxu1 %v3431_v9  ;;  %v820_v9 = vld [vmem:[%s4969_s9 + $0x10e8] sm:$0xff]  ;;  %v3261_v13 = vpack.c.bf16 %v795_v4, %v783_v3  ;;  %v894_v50 = vld [vmem:[%s4969_s9 + $0x1338] sm:$0xff]  ;;  %v891_v55 = vld [vmem:[%s4969_s9 + $0x1320] sm:$0xff] }
  0xbd   : > { %1560 = vmatmul.mubr.f32.vlgmr.msra.gmra.mrb[0].mxu0 %v267_v15  ;;  %v881_v56 = vld [vmem:[%s4969_s9 + $0x12d0] sm:$0xff]  ;;  %v3467_v57 = vpack.c.bf16 %v894_v50, %v882_v49  ;;  %v904_v59 = vld [vmem:[%s4969_s9 + $0x1388] sm:$0xff]  ;;  %v906_v61 = vld [vmem:[%s4969_s9 + $0x1398] sm:$0xff] }
  0xbe   : > { %3242 = vmatpush1.bf16.msra.mxu0 %v3241_v16  ;;  %1791 = vmatmul.mubr.f32.vlgmr.msra.gmra.mrb[0].mxu1 %v267_v15  ;;  %v819_v15 = vld [vmem:[%s4969_s9 + $0x10e0] sm:$0xff]  ;;  %v3453_v16 = vpack.c.bf16 %v797_v7, %v785_v5  ;;  %v916_v60 = vld [vmem:[%s4969_s9 + $0x13e8] sm:$0xff]  ;;  %v918_v62 = vld [vmem:[%s4969_s9 + $0x13f8] sm:$0xff] }
  0xbf   : > { %3434 = vmatpush1.bf16.msra.mxu1 %v3433_v17  ;;  %3244 = vmatprep.subr.bf16.mxu0 %v3243_v18  ;;  %v3263_v17 = vpack.c.bf16 %v820_v9, %v808_v8  ;;  %v809_v18 = vld [vmem:[%s4969_s9 + $0x1090] sm:$0xff]  ;;  %v3265_v27 = vpack.c.bf16 %v819_v15, %v807_v14  ;;  %v915_v3 = vld [vmem:[%s4969_s9 + $0x13e0] sm:$0xff]  ;;  %v3471_v5 = vpack.c.bf16 %v918_v62, %v906_v61  ;;  %v928_v7 = vld [vmem:[%s4969_s9 + $0x1448] sm:$0xff] }
  0xc0   : > { %3436 = vmatprep.subr.bf16.mxu1 %v3435_v22  ;;  %1565 = vmatprep.mubr.f32.mxu0 %v274_v12  ;;  %v832_v22 = vld [vmem:[%s4969_s9 + $0x1148] sm:$0xff]  ;;  %v905_v4 = vld [vmem:[%s4969_s9 + $0x1390] sm:$0xff]  ;;  %v930_v9 = vld [vmem:[%s4969_s9 + $0x1458] sm:$0xff] }
  0xc1   : > { %1796 = vmatprep.mubr.f32.mxu1 %v274_v12  ;;  %1566 = vmatmul.mubr.f32.gmra.mrb[2].mxu0 %v273_v20  ;;  %v940_v8 = vld [vmem:[%s4969_s9 + $0x14a8] sm:$0xff]  ;;  %v942_v10 = vld [vmem:[%s4969_s9 + $0x14b8] sm:$0xff]  ;;  %v927_v14 = vld [vmem:[%s4969_s9 + $0x1440] sm:$0xff] }
  0xc2   : > { %3246 = vmatpush1.bf16.msra.mxu0 %v3245_v28  ;;  %1797 = vmatmul.mubr.f32.gmra.mrb[2].mxu1 %v273_v20  ;;  %v3457_v28 = vpack.c.bf16 %v821_v19, %v809_v18  ;;  %v939_v15 = vld [vmem:[%s4969_s9 + $0x14a0] sm:$0xff]  ;;  %v941_v18 = vld [vmem:[%s4969_s9 + $0x14b0] sm:$0xff]  ;;  %v952_v19 = vld [vmem:[%s4969_s9 + $0x1508] sm:$0xff] }
  0xc3   : > { %3438 = vmatpush1.bf16.msra.mxu1 %v3437_v29  ;;  %3248 = vmatprep.subr.bf16.mxu0 %v3247_v30  ;;  %v3267_v29 = vpack.c.bf16 %v844_v23, %v832_v22  ;;  %v831_v30 = vld [vmem:[%s4969_s9 + $0x1140] sm:$0xff]  ;;  %v964_v20 = vld [vmem:[%s4969_s9 + $0x1568] sm:$0xff]  ;;  %v966_v22 = vld [vmem:[%s4969_s9 + $0x1578] sm:$0xff]  ;;  %v3285_v23 = vpack.c.bf16 %v939_v15, %v927_v14 }
  0xc4   : > { %3440 = vmatprep.subr.bf16.mxu1 %v3439_v34  ;;  %1636 = vmatprep.mubr.f32.mxu0 %v270_v24  ;;  %v845_v34 = vld [vmem:[%s4969_s9 + $0x11b0] sm:$0xff]  ;;  %v3269_v39 = vpack.c.bf16 %v843_v31, %v831_v30  ;;  %v3287_v25 = vpack.c.bf16 %v964_v20, %v952_v19  ;;  %v951_v26 = vld [vmem:[%s4969_s9 + $0x1500] sm:$0xff]  ;;  %v976_v31 = vld [vmem:[%s4969_s9 + $0x15c8] sm:$0xff] }
  0xc5   : > { %1867 = vmatprep.mubr.f32.mxu1 %v270_v24  ;;  %v965_v30 = vld [vmem:[%s4969_s9 + $0x1570] sm:$0xff]  ;;  %v975_v38 = vld [vmem:[%s4969_s9 + $0x15c0] sm:$0xff]  ;;  %v1072_v15 = vld [vmem:[%s4969_s9 + $0x18c8] sm:$0xff] }
  0xc6   : > { %3250 = vmatpush1.bf16.msra.mxu0 %v3249_v40  ;;  %v3461_v40 = vpack.c.bf16 %v845_v34, %v833_v32  ;;  %v988_v32 = vld [vmem:[%s4969_s9 + $0x1628] sm:$0xff]  ;;  %v990_v34 = vld [vmem:[%s4969_s9 + $0x1638] sm:$0xff]  ;;  %v999_v50 = vld [vmem:[%s4969_s9 + $0x1680] sm:$0xff] }
  0xc7   : > { %3442 = vmatpush1.bf16.msra.mxu1 %v3441_v41  ;;  %3252 = vmatprep.subr.bf16.mxu0 %v3251_v42  ;;  %v3271_v41 = vpack.c.bf16 %v868_v36, %v856_v35  ;;  %v855_v42 = vld [vmem:[%s4969_s9 + $0x1200] sm:$0xff]  ;;  %v3291_v37 = vpack.c.bf16 %v988_v32, %v976_v31  ;;  %v1061_v14 = vld [vmem:[%s4969_s9 + $0x1870] sm:$0xff]  ;;  %v1110_v31 = vld [vmem:[%s4969_s9 + $0x19f8] sm:$0xff] }
  0xc8   : > { %3444 = vmatprep.subr.bf16.mxu1 %v3443_v46  ;;  %v869_v46 = vld [vmem:[%s4969_s9 + $0x1270] sm:$0xff]  ;;  %v3273_v51 = vpack.c.bf16 %v867_v43, %v855_v42  ;;  %v1000_v43 = vld [vmem:[%s4969_s9 + $0x1688] sm:$0xff]  ;;  %v1023_v62 = vld [vmem:[%s4969_s9 + $0x1740] sm:$0xff] }
  0xc9   : > { %v989_v42 = vld [vmem:[%s4969_s9 + $0x1630] sm:$0xff]  ;;  %v276_v32 = vld [vmem:[#allocation2 + $0x48] sm:$0xff] }
  0xca   : > { %3254 = vmatpush1.bf16.msra.mxu0 %v3253_v52  ;;  %v3465_v52 = vpack.c.bf16 %v869_v46, %v857_v44  ;;  %v1012_v44 = vld [vmem:[%s4969_s9 + $0x16e8] sm:$0xff]  ;;  %v1014_v46 = vld [vmem:[%s4969_s9 + $0x16f8] sm:$0xff]  ;;  %v269_v19 = vld [vmem:[#allocation2 + $0x10] sm:$0xff] }
  0xcb   : > { %3446 = vmatpush1.bf16.msra.mxu1 %v3445_v53  ;;  %3256 = vmatprep.subr.bf16.mxu0 %v3255_v54  ;;  %v3275_v53 = vpack.c.bf16 %v892_v48, %v880_v47  ;;  %v879_v54 = vld [vmem:[%s4969_s9 + $0x12c0] sm:$0xff]  ;;  %v3295_v49 = vpack.c.bf16 %v1012_v44, %v1000_v43  ;;  %v1132_v43 = vld [vmem:[%s4969_s9 + $0x1aa8] sm:$0xff]  ;;  %v1122_v44 = vld [vmem:[%s4969_s9 + $0x1a58] sm:$0xff] }
  0xcc   : > { %3448 = vmatprep.subr.bf16.mxu1 %v3447_v58  ;;  %v893_v58 = vld [vmem:[%s4969_s9 + $0x1330] sm:$0xff]  ;;  %v3277_v63 = vpack.c.bf16 %v891_v55, %v879_v54  ;;  %v1024_v55 = vld [vmem:[%s4969_s9 + $0x1748] sm:$0xff] }
  0xcd   : > { %v1013_v54 = vld [vmem:[%s4969_s9 + $0x16f0] sm:$0xff] }
  0xce   : > { %3258 = vmatpush1.bf16.msra.mxu0 %v3257_v0  ;;  %v3469_v0 = vpack.c.bf16 %v893_v58, %v881_v56  ;;  %v1036_v56 = vld [vmem:[%s4969_s9 + $0x17a8] sm:$0xff]  ;;  %v1038_v58 = vld [vmem:[%s4969_s9 + $0x17b8] sm:$0xff] }
  0xcf   : > { %3450 = vmatpush1.bf16.msra.mxu1 %v3449_v1  ;;  %3260 = vmatprep.subr.bf16.mxu0 %v3259_v2  ;;  %v3279_v1 = vpack.c.bf16 %v916_v60, %v904_v59  ;;  %v903_v2 = vld [vmem:[%s4969_s9 + $0x1380] sm:$0xff]  ;;  %v3299_v61 = vpack.c.bf16 %v1036_v56, %v1024_v55  ;;  %v1144_v55 = vld [vmem:[%s4969_s9 + $0x1b08] sm:$0xff] }
  0xd0   : > { %3452 = vmatprep.subr.bf16.mxu1 %v3451_v6  ;;  %v917_v6 = vld [vmem:[%s4969_s9 + $0x13f0] sm:$0xff]  ;;  %v3281_v11 = vpack.c.bf16 %v915_v3, %v903_v2  ;;  %v1048_v3 = vld [vmem:[%s4969_s9 + $0x1808] sm:$0xff] }
  0xd1   : > { %v3473_v12 = vpack.c.bf16 %v917_v6, %v905_v4  ;;  %v1037_v2 = vld [vmem:[%s4969_s9 + $0x17b0] sm:$0xff]  ;;  %v1060_v4 = vld [vmem:[%s4969_s9 + $0x1868] sm:$0xff]  ;;  %v1062_v6 = vld [vmem:[%s4969_s9 + $0x1878] sm:$0xff] }
  0xd2   : > { %3262 = vmatpush1.bf16.msra.mxu0 %v3261_v13  ;;  %v3283_v13 = vpack.c.bf16 %v940_v8, %v928_v7  ;;  %v1156_v56 = vld [vmem:[%s4969_s9 + $0x1b68] sm:$0xff] }
  0xd3   : > { %3454 = vmatpush1.bf16.msra.mxu1 %v3453_v16  ;;  %3264 = vmatprep.subr.bf16.mxu0 %v3263_v17  ;;  %v929_v16 = vld [vmem:[%s4969_s9 + $0x1450] sm:$0xff]  ;;  %v3475_v17 = vpack.c.bf16 %v942_v10, %v930_v9  ;;  %v3303_v9 = vpack.c.bf16 %v1060_v4, %v1048_v3  ;;  %v1047_v10 = vld [vmem:[%s4969_s9 + $0x1800] sm:$0xff]  ;;  %v1168_v3 = vld [vmem:[%s4969_s9 + $0x1bc8] sm:$0xff] }
  0xd4   : > { %3456 = vmatprep.subr.bf16.mxu1 %v3455_v21  ;;  %v954_v21 = vld [vmem:[%s4969_s9 + $0x1518] sm:$0xff]  ;;  %v3477_v24 = vpack.c.bf16 %v941_v18, %v929_v16  ;;  %v1084_v16 = vld [vmem:[%s4969_s9 + $0x1928] sm:$0xff] }
  0xd5   : > { %v1086_v18 = vld [vmem:[%s4969_s9 + $0x1938] sm:$0xff]  ;;  %v1180_v4 = vld [vmem:[%s4969_s9 + $0x1c28] sm:$0xff] }
  0xd6   : > { %3266 = vmatpush1.bf16.msra.mxu0 %v3265_v27  ;;  %v963_v27 = vld [vmem:[%s4969_s9 + $0x1560] sm:$0xff] }
  0xd7   : > { %3458 = vmatpush1.bf16.msra.mxu1 %v3457_v28  ;;  %3268 = vmatprep.subr.bf16.mxu0 %v3267_v29  ;;  %v953_v28 = vld [vmem:[%s4969_s9 + $0x1510] sm:$0xff]  ;;  %v3479_v29 = vpack.c.bf16 %v966_v22, %v954_v21  ;;  %v3289_v35 = vpack.c.bf16 %v963_v27, %v951_v26  ;;  %v3307_v22 = vpack.c.bf16 %v1084_v16, %v1072_v15  ;;  %v1192_v15 = vld [vmem:[%s4969_s9 + $0x1c88] sm:$0xff] }
  0xd8   : > { %3460 = vmatprep.subr.bf16.mxu1 %v3459_v33  ;;  %v978_v33 = vld [vmem:[%s4969_s9 + $0x15d8] sm:$0xff]  ;;  %v3481_v36 = vpack.c.bf16 %v965_v30, %v953_v28  ;;  %v1085_v27 = vld [vmem:[%s4969_s9 + $0x1930] sm:$0xff]  ;;  %v1096_v28 = vld [vmem:[%s4969_s9 + $0x1988] sm:$0xff] }
  0xd9   : > { %v1098_v30 = vld [vmem:[%s4969_s9 + $0x1998] sm:$0xff]  ;;  %v1204_v16 = vld [vmem:[%s4969_s9 + $0x1ce8] sm:$0xff] }
  0xda   : > { %3270 = vmatpush1.bf16.msra.mxu0 %v3269_v39  ;;  %v987_v39 = vld [vmem:[%s4969_s9 + $0x1620] sm:$0xff] }
  0xdb   : > { %3462 = vmatpush1.bf16.msra.mxu1 %v3461_v40  ;;  %3272 = vmatprep.subr.bf16.mxu0 %v3271_v41  ;;  %v977_v40 = vld [vmem:[%s4969_s9 + $0x15d0] sm:$0xff]  ;;  %v3483_v41 = vpack.c.bf16 %v990_v34, %v978_v33  ;;  %v3293_v47 = vpack.c.bf16 %v987_v39, %v975_v38  ;;  %v275_v34 = vld [vmem:[#allocation2 + $0x40] sm:$0xff] }
  0xdc   : > { %3464 = vmatprep.subr.bf16.mxu1 %v3463_v45  ;;  %v1002_v45 = vld [vmem:[%s4969_s9 + $0x1698] sm:$0xff]  ;;  %v3485_v48 = vpack.c.bf16 %v989_v42, %v977_v40  ;;  %v1107_v38 = vld [vmem:[%s4969_s9 + $0x19e0] sm:$0xff]  ;;  %v1097_v39 = vld [vmem:[%s4969_s9 + $0x1990] sm:$0xff]  ;;  %v3503_v40 = vpack.c.bf16 %v1110_v31, %v1098_v30 }
  0xdd   : > { %v1120_v42 = vld [vmem:[%s4969_s9 + $0x1a48] sm:$0xff]  ;;  %v1230_v30 = vld [vmem:[%s4969_s9 + $0x1db8] sm:$0xff] }
  0xde   : > { %3274 = vmatpush1.bf16.msra.mxu0 %v3273_v51  ;;  %v1011_v51 = vld [vmem:[%s4969_s9 + $0x16e0] sm:$0xff] }
  0xdf   : > { %3466 = vmatpush1.bf16.msra.mxu1 %v3465_v52  ;;  %3276 = vmatprep.subr.bf16.mxu0 %v3275_v53  ;;  %v1001_v52 = vld [vmem:[%s4969_s9 + $0x1690] sm:$0xff]  ;;  %v3487_v53 = vpack.c.bf16 %v1014_v46, %v1002_v45  ;;  %v3297_v59 = vpack.c.bf16 %v1011_v51, %v999_v50  ;;  %v1134_v45 = vld [vmem:[%s4969_s9 + $0x1ab8] sm:$0xff]  ;;  %v272_v46 = vld [vmem:[#allocation2 + $0x28] sm:$0xff] }
  0xe0   : > { %3468 = vmatprep.subr.bf16.mxu1 %v3467_v57  ;;  %v1026_v57 = vld [vmem:[%s4969_s9 + $0x1758] sm:$0xff]  ;;  %v3489_v60 = vpack.c.bf16 %v1013_v54, %v1001_v52  ;;  %v1119_v50 = vld [vmem:[%s4969_s9 + $0x1a40] sm:$0xff]  ;;  %v1121_v52 = vld [vmem:[%s4969_s9 + $0x1a50] sm:$0xff] }
  0xe1   : > { %v1131_v51 = vld [vmem:[%s4969_s9 + $0x1aa0] sm:$0xff]  ;;  %v1133_v54 = vld [vmem:[%s4969_s9 + $0x1ab0] sm:$0xff] }
  0xe2   : > { %3278 = vmatpush1.bf16.msra.mxu0 %v3277_v63  ;;  %v1035_v63 = vld [vmem:[%s4969_s9 + $0x17a0] sm:$0xff] }
  0xe3   : > { %3470 = vmatpush1.bf16.msra.mxu1 %v3469_v0  ;;  %3280 = vmatprep.subr.bf16.mxu0 %v3279_v1  ;;  %v1025_v0 = vld [vmem:[%s4969_s9 + $0x1750] sm:$0xff]  ;;  %v3491_v1 = vpack.c.bf16 %v1038_v58, %v1026_v57  ;;  %v3301_v7 = vpack.c.bf16 %v1035_v63, %v1023_v62  ;;  %v1146_v57 = vld [vmem:[%s4969_s9 + $0x1b18] sm:$0xff]  ;;  %v1143_v62 = vld [vmem:[%s4969_s9 + $0x1b00] sm:$0xff] }
  0xe4   : > { %3472 = vmatprep.subr.bf16.mxu1 %v3471_v5  ;;  %v1050_v5 = vld [vmem:[%s4969_s9 + $0x1818] sm:$0xff]  ;;  %v3493_v8 = vpack.c.bf16 %v1037_v2, %v1025_v0  ;;  %v1155_v63 = vld [vmem:[%s4969_s9 + $0x1b60] sm:$0xff]  ;;  %v1145_v0 = vld [vmem:[%s4969_s9 + $0x1b10] sm:$0xff] }
  0xe5   : > { %v1158_v58 = vld [vmem:[%s4969_s9 + $0x1b78] sm:$0xff]  ;;  %v1157_v2 = vld [vmem:[%s4969_s9 + $0x1b70] sm:$0xff] }
  0xe6   : > { %3282 = vmatpush1.bf16.msra.mxu0 %v3281_v11  ;;  %v1059_v11 = vld [vmem:[%s4969_s9 + $0x1860] sm:$0xff] }
  0xe7   : > { %3474 = vmatpush1.bf16.msra.mxu1 %v3473_v12  ;;  %3284 = vmatprep.subr.bf16.mxu0 %v3283_v13  ;;  %v1049_v12 = vld [vmem:[%s4969_s9 + $0x1810] sm:$0xff]  ;;  %v3495_v13 = vpack.c.bf16 %v1062_v6, %v1050_v5  ;;  %v3305_v20 = vpack.c.bf16 %v1059_v11, %v1047_v10  ;;  %v1170_v5 = vld [vmem:[%s4969_s9 + $0x1bd8] sm:$0xff]  ;;  %v1167_v10 = vld [vmem:[%s4969_s9 + $0x1bc0] sm:$0xff] }
  0xe8   : > { %3476 = vmatprep.subr.bf16.mxu1 %v3475_v17  ;;  %v1074_v17 = vld [vmem:[%s4969_s9 + $0x18d8] sm:$0xff]  ;;  %v3497_v21 = vpack.c.bf16 %v1061_v14, %v1049_v12  ;;  %v1179_v11 = vld [vmem:[%s4969_s9 + $0x1c20] sm:$0xff]  ;;  %v1169_v12 = vld [vmem:[%s4969_s9 + $0x1bd0] sm:$0xff] }
  0xe9   : > { %v3499_v26 = vpack.c.bf16 %v1086_v18, %v1074_v17  ;;  %v1182_v6 = vld [vmem:[%s4969_s9 + $0x1c38] sm:$0xff]  ;;  %v1181_v14 = vld [vmem:[%s4969_s9 + $0x1c30] sm:$0xff] }
  0xea   : > { %3286 = vmatpush1.bf16.msra.mxu0 %v3285_v23  ;;  %v1071_v23 = vld [vmem:[%s4969_s9 + $0x18c0] sm:$0xff]  ;;  %v1194_v17 = vld [vmem:[%s4969_s9 + $0x1c98] sm:$0xff] }
  0xeb   : > { %3478 = vmatpush1.bf16.msra.mxu1 %v3477_v24  ;;  %3288 = vmatprep.subr.bf16.mxu0 %v3287_v25  ;;  %v1083_v24 = vld [vmem:[%s4969_s9 + $0x1920] sm:$0xff]  ;;  %v1073_v25 = vld [vmem:[%s4969_s9 + $0x18d0] sm:$0xff]  ;;  %v1206_v18 = vld [vmem:[%s4969_s9 + $0x1cf8] sm:$0xff] }
  0xec   : > { %3480 = vmatprep.subr.bf16.mxu1 %v3479_v29  ;;  %v1108_v29 = vld [vmem:[%s4969_s9 + $0x19e8] sm:$0xff]  ;;  %v3309_v33 = vpack.c.bf16 %v1083_v24, %v1071_v23  ;;  %v1203_v23 = vld [vmem:[%s4969_s9 + $0x1ce0] sm:$0xff]  ;;  %v1193_v24 = vld [vmem:[%s4969_s9 + $0x1c90] sm:$0xff] }
  0xee   : > { %3290 = vmatpush1.bf16.msra.mxu0 %v3289_v35  ;;  %v3501_v35 = vpack.c.bf16 %v1085_v27, %v1073_v25  ;;  %v3519_v25 = vpack.c.bf16 %v1206_v18, %v1194_v17  ;;  %v1216_v27 = vld [vmem:[%s4969_s9 + $0x1d48] sm:$0xff]  ;;  %v1311_v18 = vld [vmem:[%s4969_s9 + $0x2040] sm:$0xff] }
  0xef   : > { %3482 = vmatpush1.bf16.msra.mxu1 %v3481_v36  ;;  %3292 = vmatprep.subr.bf16.mxu0 %v3291_v37  ;;  %v3311_v36 = vpack.c.bf16 %v1108_v29, %v1096_v28  ;;  %v1095_v37 = vld [vmem:[%s4969_s9 + $0x1980] sm:$0xff]  ;;  %v1228_v28 = vld [vmem:[%s4969_s9 + $0x1da8] sm:$0xff]  ;;  %v1218_v29 = vld [vmem:[%s4969_s9 + $0x1d58] sm:$0xff] }
  0xf0   : > { %3484 = vmatprep.subr.bf16.mxu1 %v3483_v41  ;;  %v1109_v41 = vld [vmem:[%s4969_s9 + $0x19f0] sm:$0xff] }
  0xf2   : > { %3294 = vmatpush1.bf16.msra.mxu0 %v3293_v47  ;;  %v3313_v47 = vpack.c.bf16 %v1107_v38, %v1095_v37  ;;  %v3523_v37 = vpack.c.bf16 %v1230_v30, %v1218_v29  ;;  %v1229_v38 = vld [vmem:[%s4969_s9 + $0x1db0] sm:$0xff]  ;;  %v1335_v30 = vld [vmem:[%s4969_s9 + $0x2100] sm:$0xff] }
  0xf3   : > { %3486 = vmatpush1.bf16.msra.mxu1 %v3485_v48  ;;  %3296 = vmatprep.subr.bf16.mxu0 %v3295_v49  ;;  %v3505_v48 = vpack.c.bf16 %v1109_v41, %v1097_v39  ;;  %v3315_v49 = vpack.c.bf16 %v1132_v43, %v1120_v42  ;;  %v1240_v39 = vld [vmem:[%s4969_s9 + $0x1e08] sm:$0xff]  ;;  %v1242_v41 = vld [vmem:[%s4969_s9 + $0x1e18] sm:$0xff] }
  0xf4   : > { %3488 = vmatprep.subr.bf16.mxu1 %v3487_v53  ;;  %v3507_v53 = vpack.c.bf16 %v1134_v45, %v1122_v44  ;;  %v1254_v42 = vld [vmem:[%s4969_s9 + $0x1e78] sm:$0xff] }
  0xf6   : > { %3298 = vmatpush1.bf16.msra.mxu0 %v3297_v59  ;;  %v3317_v59 = vpack.c.bf16 %v1131_v51, %v1119_v50  ;;  %v1253_v50 = vld [vmem:[%s4969_s9 + $0x1e70] sm:$0xff]  ;;  %v1264_v51 = vld [vmem:[%s4969_s9 + $0x1ec8] sm:$0xff] }
  0xf7   : > { %3490 = vmatpush1.bf16.msra.mxu1 %v3489_v60  ;;  %3300 = vmatprep.subr.bf16.mxu0 %v3299_v61  ;;  %v3509_v60 = vpack.c.bf16 %v1133_v54, %v1121_v52  ;;  %v3319_v61 = vpack.c.bf16 %v1156_v56, %v1144_v55  ;;  %v1276_v52 = vld [vmem:[%s4969_s9 + $0x1f28] sm:$0xff]  ;;  %v1278_v54 = vld [vmem:[%s4969_s9 + $0x1f38] sm:$0xff] }
  0xf8   : > { %3492 = vmatprep.subr.bf16.mxu1 %v3491_v1  ;;  %v3511_v1 = vpack.c.bf16 %v1158_v58, %v1146_v57  ;;  %v3339_v57 = vpack.c.bf16 %v1276_v52, %v1264_v51  ;;  %v1263_v58 = vld [vmem:[%s4969_s9 + $0x1ec0] sm:$0xff] }
  0xfa   : > { %3302 = vmatpush1.bf16.msra.mxu0 %v3301_v7  ;;  %v3321_v7 = vpack.c.bf16 %v1155_v63, %v1143_v62  ;;  %v1277_v62 = vld [vmem:[%s4969_s9 + $0x1f30] sm:$0xff]  ;;  %v1288_v63 = vld [vmem:[%s4969_s9 + $0x1f88] sm:$0xff] }
  0xfb   : > { %3494 = vmatpush1.bf16.msra.mxu1 %v3493_v8  ;;  %3304 = vmatprep.subr.bf16.mxu0 %v3303_v9  ;;  %v3513_v8 = vpack.c.bf16 %v1157_v2, %v1145_v0  ;;  %v3323_v9 = vpack.c.bf16 %v1180_v4, %v1168_v3  ;;  %v1300_v0 = vld [vmem:[%s4969_s9 + $0x1fe8] sm:$0xff]  ;;  %v1302_v2 = vld [vmem:[%s4969_s9 + $0x1ff8] sm:$0xff] }
  0xfc   : > { %3496 = vmatprep.subr.bf16.mxu1 %v3495_v13  ;;  %v3515_v13 = vpack.c.bf16 %v1182_v6, %v1170_v5  ;;  %v3343_v5 = vpack.c.bf16 %v1300_v0, %v1288_v63  ;;  %v1287_v6 = vld [vmem:[%s4969_s9 + $0x1f80] sm:$0xff] }
  0xfd   : > { %1637 = vmatmul.mubr.f32.vlgmr.msra.gmra.mrb[0].mxu0 %v269_v19 }
  0xfe   : > { %3306 = vmatpush1.bf16.msra.mxu0 %v3305_v20  ;;  %1868 = vmatmul.mubr.f32.vlgmr.msra.gmra.mrb[0].mxu1 %v269_v19  ;;  %v3325_v19 = vpack.c.bf16 %v1179_v11, %v1167_v10  ;;  %v3517_v20 = vpack.c.bf16 %v1181_v14, %v1169_v12  ;;  %v1301_v10 = vld [vmem:[%s4969_s9 + $0x1ff0] sm:$0xff]  ;;  %v1312_v11 = vld [vmem:[%s4969_s9 + $0x2048] sm:$0xff]  ;;  %v1326_v14 = vld [vmem:[%s4969_s9 + $0x20b8] sm:$0xff] }
  0xff   : > { %3498 = vmatpush1.bf16.msra.mxu1 %v3497_v21  ;;  %3308 = vmatprep.subr.bf16.mxu0 %v3307_v22  ;;  %v3327_v21 = vpack.c.bf16 %v1204_v16, %v1192_v15  ;;  %v1191_v22 = vld [vmem:[%s4969_s9 + $0x1c80] sm:$0xff]  ;;  %v1324_v12 = vld [vmem:[%s4969_s9 + $0x20a8] sm:$0xff] }
 0x100   : > { %3500 = vmatprep.subr.bf16.mxu1 %v3499_v26  ;;  %1642 = vmatprep.mubr.f32.mxu0 %v276_v32  ;;  %v1205_v26 = vld [vmem:[%s4969_s9 + $0x1cf0] sm:$0xff]  ;;  %v3329_v31 = vpack.c.bf16 %v1203_v23, %v1191_v22  ;;  %v3347_v17 = vpack.c.bf16 %v1324_v12, %v1312_v11  ;;  %v1336_v23 = vld [vmem:[%s4969_s9 + $0x2108] sm:$0xff] }
 0x101   : > { %1873 = vmatprep.mubr.f32.mxu1 %v276_v32  ;;  %1643 = vmatmul.mubr.f32.gmra.mrb[2].mxu0 %v275_v34  ;;  %v3521_v32 = vpack.c.bf16 %v1205_v26, %v1193_v24  ;;  %v1325_v22 = vld [vmem:[%s4969_s9 + $0x20b0] sm:$0xff]  ;;  %v1348_v24 = vld [vmem:[%s4969_s9 + $0x2168] sm:$0xff]  ;;  %v1350_v26 = vld [vmem:[%s4969_s9 + $0x2178] sm:$0xff] }
 0x102   : > { %3310 = vmatpush1.bf16.msra.mxu0 %v3309_v33  ;;  %1874 = vmatmul.mubr.f32.gmra.mrb[2].mxu1 %v275_v34  ;;  %v3331_v33 = vpack.c.bf16 %v1228_v28, %v1216_v27  ;;  %v1215_v34 = vld [vmem:[%s4969_s9 + $0x1d40] sm:$0xff]  ;;  %v3351_v29 = vpack.c.bf16 %v1348_v24, %v1336_v23  ;;  %v278_v23 = vld [vmem:[#allocation2 + $0x58] sm:$0xff] }
 0x103   : > { %3502 = vmatpush1.bf16.msra.mxu1 %v3501_v35  ;;  %3312 = vmatprep.subr.bf16.mxu0 %v3311_v36  ;;  %v1227_v35 = vld [vmem:[%s4969_s9 + $0x1da0] sm:$0xff]  ;;  %v1217_v36 = vld [vmem:[%s4969_s9 + $0x1d50] sm:$0xff]  ;;  %v310_v24 = vld [vmem:[%s4969_s9 + $0xf8] sm:$0xff] }
 0x104   : > { %3504 = vmatprep.subr.bf16.mxu1 %v3503_v40  ;;  %1713 = vmatprep.mubr.f32.mxu0 %v272_v46  ;;  %v1252_v40 = vld [vmem:[%s4969_s9 + $0x1e68] sm:$0xff]  ;;  %v3333_v43 = vpack.c.bf16 %v1227_v35, %v1215_v34  ;;  %v3525_v44 = vpack.c.bf16 %v1229_v38, %v1217_v36  ;;  %v1349_v34 = vld [vmem:[%s4969_s9 + $0x2170] sm:$0xff]  ;;  %v1374_v38 = vld [vmem:[%s4969_s9 + $0x2238] sm:$0xff] }
 0x105   : > { %1944 = vmatprep.mubr.f32.mxu1 %v272_v46  ;;  %v3335_v45 = vpack.c.bf16 %v1252_v40, %v1240_v39  ;;  %v1239_v46 = vld [vmem:[%s4969_s9 + $0x1e00] sm:$0xff]  ;;  %v1360_v35 = vld [vmem:[%s4969_s9 + $0x21c8] sm:$0xff] }
 0x106   : > { %3314 = vmatpush1.bf16.msra.mxu0 %v3313_v47  ;;  %v1251_v47 = vld [vmem:[%s4969_s9 + $0x1e60] sm:$0xff]  ;;  %v1372_v36 = vld [vmem:[%s4969_s9 + $0x2228] sm:$0xff] }
 0x107   : > { %3506 = vmatpush1.bf16.msra.mxu1 %v3505_v48  ;;  %3316 = vmatprep.subr.bf16.mxu0 %v3315_v49  ;;  %v1241_v48 = vld [vmem:[%s4969_s9 + $0x1e10] sm:$0xff]  ;;  %v3527_v49 = vpack.c.bf16 %v1254_v42, %v1242_v41  ;;  %v3337_v55 = vpack.c.bf16 %v1251_v47, %v1239_v46  ;;  %v3355_v41 = vpack.c.bf16 %v1372_v36, %v1360_v35  ;;  %v1359_v42 = vld [vmem:[%s4969_s9 + $0x21c0] sm:$0xff]  ;;  %v1384_v47 = vld [vmem:[%s4969_s9 + $0x2288] sm:$0xff] }
 0x108   : > { %3508 = vmatprep.subr.bf16.mxu1 %v3507_v53  ;;  %v1266_v53 = vld [vmem:[%s4969_s9 + $0x1ed8] sm:$0xff]  ;;  %v3529_v56 = vpack.c.bf16 %v1253_v50, %v1241_v48  ;;  %v1373_v46 = vld [vmem:[%s4969_s9 + $0x2230] sm:$0xff]  ;;  %v1396_v48 = vld [vmem:[%s4969_s9 + $0x22e8] sm:$0xff] }
 0x109   : > { %v1398_v50 = vld [vmem:[%s4969_s9 + $0x22f8] sm:$0xff] }
 0x10a   : > { %3318 = vmatpush1.bf16.msra.mxu0 %v3317_v59  ;;  %v1275_v59 = vld [vmem:[%s4969_s9 + $0x1f20] sm:$0xff]  ;;  %v334_v35 = vld [vmem:[%s4969_s9 + $0x1b8] sm:$0xff] }
 0x10b   : > { %3510 = vmatpush1.bf16.msra.mxu1 %v3509_v60  ;;  %3320 = vmatprep.subr.bf16.mxu0 %v3319_v61  ;;  %v1265_v60 = vld [vmem:[%s4969_s9 + $0x1ed0] sm:$0xff]  ;;  %v3531_v61 = vpack.c.bf16 %v1278_v54, %v1266_v53  ;;  %v3341_v3 = vpack.c.bf16 %v1275_v59, %v1263_v58  ;;  %v3359_v53 = vpack.c.bf16 %v1396_v48, %v1384_v47  ;;  %v1383_v54 = vld [vmem:[%s4969_s9 + $0x2280] sm:$0xff]  ;;  %v1408_v59 = vld [vmem:[%s4969_s9 + $0x2348] sm:$0xff] }
 0x10c   : > { %3512 = vmatprep.subr.bf16.mxu1 %v3511_v1  ;;  %v1290_v1 = vld [vmem:[%s4969_s9 + $0x1f98] sm:$0xff]  ;;  %v3533_v4 = vpack.c.bf16 %v1277_v62, %v1265_v60  ;;  %v1397_v58 = vld [vmem:[%s4969_s9 + $0x22f0] sm:$0xff]  ;;  %v1420_v60 = vld [vmem:[%s4969_s9 + $0x23a8] sm:$0xff] }
 0x10d   : > { %v1422_v62 = vld [vmem:[%s4969_s9 + $0x23b8] sm:$0xff]  ;;  %v368_v47 = vld [vmem:[%s4969_s9 + $0x2c8] sm:$0xff] }
 0x10e   : > { %3322 = vmatpush1.bf16.msra.mxu0 %v3321_v7  ;;  %v1299_v7 = vld [vmem:[%s4969_s9 + $0x1fe0] sm:$0xff]  ;;  %v346_v36 = vld [vmem:[%s4969_s9 + $0x218] sm:$0xff] }
 0x10f   : > { %3514 = vmatpush1.bf16.msra.mxu1 %v3513_v8  ;;  %3324 = vmatprep.subr.bf16.mxu0 %v3323_v9  ;;  %v1289_v8 = vld [vmem:[%s4969_s9 + $0x1f90] sm:$0xff]  ;;  %v3535_v9 = vpack.c.bf16 %v1302_v2, %v1290_v1  ;;  %v3345_v15 = vpack.c.bf16 %v1299_v7, %v1287_v6  ;;  %v3363_v1 = vpack.c.bf16 %v1420_v60, %v1408_v59  ;;  %v1407_v2 = vld [vmem:[%s4969_s9 + $0x2340] sm:$0xff]  ;;  %v284_v7 = vld [vmem:[%s4969_s9 + $0x28] sm:$0xff] }
 0x110   : > { %3516 = vmatprep.subr.bf16.mxu1 %v3515_v13  ;;  %v1314_v13 = vld [vmem:[%s4969_s9 + $0x2058] sm:$0xff]  ;;  %v3537_v16 = vpack.c.bf16 %v1301_v10, %v1289_v8  ;;  %v1421_v6 = vld [vmem:[%s4969_s9 + $0x23b0] sm:$0xff]  ;;  %v296_v8 = vld [vmem:[%s4969_s9 + $0x88] sm:$0xff] }
 0x111   : > { %v298_v10 = vld [vmem:[%s4969_s9 + $0x98] sm:$0xff]  ;;  %v392_v59 = vld [vmem:[%s4969_s9 + $0x388] sm:$0xff] }
 0x112   : > { %3326 = vmatpush1.bf16.msra.mxu0 %v3325_v19  ;;  %v1323_v19 = vld [vmem:[%s4969_s9 + $0x20a0] sm:$0xff]  ;;  %v358_v48 = vld [vmem:[%s4969_s9 + $0x278] sm:$0xff]  ;;  %v4538_v60 = vld [vmem:[#allocation2 + $0x8] sm:$0xff] }
 0x113   : > { %3518 = vmatpush1.bf16.msra.mxu1 %v3517_v20  ;;  %3328 = vmatprep.subr.bf16.mxu0 %v3327_v21  ;;  %v1313_v20 = vld [vmem:[%s4969_s9 + $0x2050] sm:$0xff]  ;;  %v3539_v21 = vpack.c.bf16 %v1326_v14, %v1314_v13  ;;  %v3349_v27 = vpack.c.bf16 %v1323_v19, %v1311_v18  ;;  %v3559_v13 = vpack.c.bf16 %v296_v8, %v284_v7  ;;  %v283_v14 = vld [vmem:[%s4969_s9 + $0x20] sm:$0xff]  ;;  %v404_v7 = vld [vmem:[%s4969_s9 + $0x3e8] sm:$0xff] }
 0x114   : > { %3520 = vmatprep.subr.bf16.mxu1 %v3519_v25  ;;  %v1338_v25 = vld [vmem:[%s4969_s9 + $0x2118] sm:$0xff]  ;;  %v3541_v28 = vpack.c.bf16 %v1325_v22, %v1313_v20  ;;  %v297_v18 = vld [vmem:[%s4969_s9 + $0x90] sm:$0xff]  ;;  %v271_v19 = vld [vmem:[#allocation2 + $0x20] sm:$0xff] }
 0x115   : > { %v308_v20 = vld [vmem:[%s4969_s9 + $0xe8] sm:$0xff] }
 0x116   : > { %3330 = vmatpush1.bf16.msra.mxu0 %v3329_v31  ;;  %v1347_v31 = vld [vmem:[%s4969_s9 + $0x2160] sm:$0xff]  ;;  %v416_v8 = vld [vmem:[%s4969_s9 + $0x448] sm:$0xff] }
 0x117   : > { %3522 = vmatpush1.bf16.msra.mxu1 %v3521_v32  ;;  %3332 = vmatprep.subr.bf16.mxu0 %v3331_v33  ;;  %v1337_v32 = vld [vmem:[%s4969_s9 + $0x2110] sm:$0xff]  ;;  %v3543_v33 = vpack.c.bf16 %v1350_v26, %v1338_v25  ;;  %v3353_v39 = vpack.c.bf16 %v1347_v31, %v1335_v30  ;;  %v322_v25 = vld [vmem:[%s4969_s9 + $0x158] sm:$0xff] }
 0x118   : > { %3524 = vmatprep.subr.bf16.mxu1 %v3523_v37  ;;  %v1362_v37 = vld [vmem:[%s4969_s9 + $0x21d8] sm:$0xff]  ;;  %v3545_v40 = vpack.c.bf16 %v1349_v34, %v1337_v32  ;;  %v321_v31 = vld [vmem:[%s4969_s9 + $0x150] sm:$0xff]  ;;  %v332_v32 = vld [vmem:[%s4969_s9 + $0x1a8] sm:$0xff]  ;;  %v3755_v34 = vpack.c.bf16 %v322_v25, %v310_v24 }
 0x11a   : > { %3334 = vmatpush1.bf16.msra.mxu0 %v3333_v43  ;;  %v1371_v43 = vld [vmem:[%s4969_s9 + $0x2220] sm:$0xff] }
 0x11b   : > { %3526 = vmatpush1.bf16.msra.mxu1 %v3525_v44  ;;  %3336 = vmatprep.subr.bf16.mxu0 %v3335_v45  ;;  %v1361_v44 = vld [vmem:[%s4969_s9 + $0x21d0] sm:$0xff]  ;;  %v3547_v45 = vpack.c.bf16 %v1374_v38, %v1362_v37  ;;  %v3357_v51 = vpack.c.bf16 %v1371_v43, %v1359_v42  ;;  %v343_v42 = vld [vmem:[%s4969_s9 + $0x200] sm:$0xff] }
 0x11c   : > { %3528 = vmatprep.subr.bf16.mxu1 %v3527_v49  ;;  %v1386_v49 = vld [vmem:[%s4969_s9 + $0x2298] sm:$0xff]  ;;  %v3549_v52 = vpack.c.bf16 %v1373_v46, %v1361_v44  ;;  %v277_v37 = vld [vmem:[#allocation2 + $0x50] sm:$0xff]  ;;  %v3759_v44 = vpack.c.bf16 %v346_v36, %v334_v35  ;;  %v356_v46 = vld [vmem:[%s4969_s9 + $0x268] sm:$0xff] }
 0x11d   : > { %v333_v43 = vld [vmem:[%s4969_s9 + $0x1b0] sm:$0xff] }
 0x11e   : > { %3338 = vmatpush1.bf16.msra.mxu0 %v3337_v55  ;;  %v1395_v55 = vld [vmem:[%s4969_s9 + $0x22e0] sm:$0xff] }
 0x11f   : > { %3530 = vmatpush1.bf16.msra.mxu1 %v3529_v56  ;;  %3340 = vmatprep.subr.bf16.mxu0 %v3339_v57  ;;  %v1385_v56 = vld [vmem:[%s4969_s9 + $0x2290] sm:$0xff]  ;;  %v3551_v57 = vpack.c.bf16 %v1398_v50, %v1386_v49  ;;  %v3361_v63 = vpack.c.bf16 %v1395_v55, %v1383_v54  ;;  %v370_v49 = vld [vmem:[%s4969_s9 + $0x2d8] sm:$0xff]  ;;  %v367_v54 = vld [vmem:[%s4969_s9 + $0x2c0] sm:$0xff] }
 0x120   : > { %3532 = vmatprep.subr.bf16.mxu1 %v3531_v61  ;;  %v1410_v61 = vld [vmem:[%s4969_s9 + $0x2358] sm:$0xff]  ;;  %v3553_v0 = vpack.c.bf16 %v1397_v58, %v1385_v56  ;;  %v357_v55 = vld [vmem:[%s4969_s9 + $0x270] sm:$0xff]  ;;  %v3763_v56 = vpack.c.bf16 %v370_v49, %v358_v48  ;;  %v380_v58 = vld [vmem:[%s4969_s9 + $0x328] sm:$0xff] }
 0x122   : > { %3342 = vmatpush1.bf16.msra.mxu0 %v3341_v3  ;;  %v1419_v3 = vld [vmem:[%s4969_s9 + $0x23a0] sm:$0xff] }
 0x123   : > { %3534 = vmatpush1.bf16.msra.mxu1 %v3533_v4  ;;  %3344 = vmatprep.subr.bf16.mxu0 %v3343_v5  ;;  %v1409_v4 = vld [vmem:[%s4969_s9 + $0x2350] sm:$0xff]  ;;  %v3555_v5 = vpack.c.bf16 %v1422_v62, %v1410_v61  ;;  %v3365_v11 = vpack.c.bf16 %v1419_v3, %v1407_v2  ;;  %v382_v61 = vld [vmem:[%s4969_s9 + $0x338] sm:$0xff]  ;;  %v379_v2 = vld [vmem:[%s4969_s9 + $0x320] sm:$0xff] }
 0x124   : > { %3536 = vmatprep.subr.bf16.mxu1 %v3535_v9  ;;  %v286_v9 = vld [vmem:[%s4969_s9 + $0x38] sm:$0xff]  ;;  %v3557_v12 = vpack.c.bf16 %v1421_v6, %v1409_v4  ;;  %v391_v3 = vld [vmem:[%s4969_s9 + $0x380] sm:$0xff]  ;;  %v381_v4 = vld [vmem:[%s4969_s9 + $0x330] sm:$0xff] }
 0x125   : > { %v394_v62 = vld [vmem:[%s4969_s9 + $0x398] sm:$0xff]  ;;  %v393_v6 = vld [vmem:[%s4969_s9 + $0x390] sm:$0xff] }
 0x126   : > { %3346 = vmatpush1.bf16.msra.mxu0 %v3345_v15  ;;  %v295_v15 = vld [vmem:[%s4969_s9 + $0x80] sm:$0xff] }
 0x127   : > { %3538 = vmatpush1.bf16.msra.mxu1 %v3537_v16  ;;  %3348 = vmatprep.subr.bf16.mxu0 %v3347_v17  ;;  %v3751_v16 = vpack.c.bf16 %v298_v10, %v286_v9  ;;  %v285_v17 = vld [vmem:[%s4969_s9 + $0x30] sm:$0xff]  ;;  %v3561_v22 = vpack.c.bf16 %v295_v15, %v283_v14  ;;  %v406_v9 = vld [vmem:[%s4969_s9 + $0x3f8] sm:$0xff]  ;;  %v403_v14 = vld [vmem:[%s4969_s9 + $0x3e0] sm:$0xff] }
 0x128   : > { %3540 = vmatprep.subr.bf16.mxu1 %v3539_v21  ;;  %v320_v21 = vld [vmem:[%s4969_s9 + $0x148] sm:$0xff]  ;;  %v3753_v26 = vpack.c.bf16 %v297_v18, %v285_v17  ;;  %v418_v10 = vld [vmem:[%s4969_s9 + $0x458] sm:$0xff]  ;;  %v415_v15 = vld [vmem:[%s4969_s9 + $0x440] sm:$0xff] }
 0x129   : > { %v3563_v30 = vpack.c.bf16 %v320_v21, %v308_v20  ;;  %v3771_v17 = vpack.c.bf16 %v418_v10, %v406_v9  ;;  %v417_v18 = vld [vmem:[%s4969_s9 + $0x450] sm:$0xff]  ;;  %v440_v20 = vld [vmem:[%s4969_s9 + $0x508] sm:$0xff]  ;;  %v430_v21 = vld [vmem:[%s4969_s9 + $0x4b8] sm:$0xff] }
 0x12a   : > { %3350 = vmatpush1.bf16.msra.mxu0 %v3349_v27  ;;  %v307_v27 = vld [vmem:[%s4969_s9 + $0xe0] sm:$0xff] }
 0x12b   : > { %3542 = vmatpush1.bf16.msra.mxu1 %v3541_v28  ;;  %3352 = vmatprep.subr.bf16.mxu0 %v3351_v29  ;;  %v319_v28 = vld [vmem:[%s4969_s9 + $0x140] sm:$0xff]  ;;  %v309_v29 = vld [vmem:[%s4969_s9 + $0xf0] sm:$0xff] }
 0x12c   : > { %3544 = vmatprep.subr.bf16.mxu1 %v3543_v33  ;;  %v344_v33 = vld [vmem:[%s4969_s9 + $0x208] sm:$0xff]  ;;  %v3565_v38 = vpack.c.bf16 %v319_v28, %v307_v27  ;;  %v439_v27 = vld [vmem:[%s4969_s9 + $0x500] sm:$0xff]  ;;  %v429_v28 = vld [vmem:[%s4969_s9 + $0x4b0] sm:$0xff] }
 0x12d   : > { %v523_v10 = vld [vmem:[%s4969_s9 + $0x7a0] sm:$0xff] }
 0x12e   : > { %3354 = vmatpush1.bf16.msra.mxu0 %v3353_v39  ;;  %v3757_v39 = vpack.c.bf16 %v321_v31, %v309_v29  ;;  %v452_v31 = vld [vmem:[%s4969_s9 + $0x568] sm:$0xff] }
 0x12f   : > { %3546 = vmatpush1.bf16.msra.mxu1 %v3545_v40  ;;  %3356 = vmatprep.subr.bf16.mxu0 %v3355_v41  ;;  %v3567_v40 = vpack.c.bf16 %v344_v33, %v332_v32  ;;  %v331_v41 = vld [vmem:[%s4969_s9 + $0x1a0] sm:$0xff]  ;;  %v464_v32 = vld [vmem:[%s4969_s9 + $0x5c8] sm:$0xff]  ;;  %v454_v33 = vld [vmem:[%s4969_s9 + $0x578] sm:$0xff] }
 0x130   : > { %3548 = vmatprep.subr.bf16.mxu1 %v3547_v45  ;;  %v345_v45 = vld [vmem:[%s4969_s9 + $0x210] sm:$0xff]  ;;  %v3569_v50 = vpack.c.bf16 %v343_v42, %v331_v41 }
 0x131   : > { %v465_v42 = vld [vmem:[%s4969_s9 + $0x5d0] sm:$0xff] }
 0x132   : > { %3358 = vmatpush1.bf16.msra.mxu0 %v3357_v51  ;;  %v3761_v51 = vpack.c.bf16 %v345_v45, %v333_v43  ;;  %v476_v43 = vld [vmem:[%s4969_s9 + $0x628] sm:$0xff]  ;;  %v478_v45 = vld [vmem:[%s4969_s9 + $0x638] sm:$0xff] }
 0x133   : > { %3550 = vmatpush1.bf16.msra.mxu1 %v3549_v52  ;;  %3360 = vmatprep.subr.bf16.mxu0 %v3359_v53  ;;  %v3571_v52 = vpack.c.bf16 %v368_v47, %v356_v46  ;;  %v355_v53 = vld [vmem:[%s4969_s9 + $0x260] sm:$0xff]  ;;  %v490_v46 = vld [vmem:[%s4969_s9 + $0x698] sm:$0xff] }
 0x134   : > { %3552 = vmatprep.subr.bf16.mxu1 %v3551_v57  ;;  %v369_v57 = vld [vmem:[%s4969_s9 + $0x2d0] sm:$0xff] }
 0x136   : > { %3362 = vmatpush1.bf16.msra.mxu0 %v3361_v63  ;;  %v3573_v63 = vpack.c.bf16 %v367_v54, %v355_v53  ;;  %v3783_v53 = vpack.c.bf16 %v490_v46, %v478_v45  ;;  %v489_v54 = vld [vmem:[%s4969_s9 + $0x690] sm:$0xff]  ;;  %v595_v46 = vld [vmem:[%s4969_s9 + $0x9e0] sm:$0xff] }
 0x137   : > { %3554 = vmatpush1.bf16.msra.mxu1 %v3553_v0  ;;  %3364 = vmatprep.subr.bf16.mxu0 %v3363_v1  ;;  %v3765_v0 = vpack.c.bf16 %v369_v57, %v357_v55  ;;  %v3575_v1 = vpack.c.bf16 %v392_v59, %v380_v58  ;;  %v500_v55 = vld [vmem:[%s4969_s9 + $0x6e8] sm:$0xff]  ;;  %v502_v57 = vld [vmem:[%s4969_s9 + $0x6f8] sm:$0xff] }
 0x138   : > { %3556 = vmatprep.subr.bf16.mxu1 %v3555_v5  ;;  %v3767_v5 = vpack.c.bf16 %v394_v62, %v382_v61  ;;  %v514_v58 = vld [vmem:[%s4969_s9 + $0x758] sm:$0xff]  ;;  %v499_v62 = vld [vmem:[%s4969_s9 + $0x6e0] sm:$0xff] }
 0x13a   : > { %3366 = vmatpush1.bf16.msra.mxu0 %v3365_v11  ;;  %v3577_v11 = vpack.c.bf16 %v391_v3, %v379_v2  ;;  %v513_v2 = vld [vmem:[%s4969_s9 + $0x750] sm:$0xff]  ;;  %v524_v3 = vld [vmem:[%s4969_s9 + $0x7a8] sm:$0xff] }
 0x13b   : > { %3558 = vmatpush1.bf16.msra.mxu1 %v3557_v12  ;;  %3560 = vmatprep.subr.bf16.mxu0 %v3559_v13  ;;  %v3769_v12 = vpack.c.bf16 %v393_v6, %v381_v4  ;;  %v3579_v13 = vpack.c.bf16 %v416_v8, %v404_v7  ;;  %v536_v4 = vld [vmem:[%s4969_s9 + $0x808] sm:$0xff]  ;;  %v538_v6 = vld [vmem:[%s4969_s9 + $0x818] sm:$0xff] }
 0x13c   : > { %3752 = vmatprep.subr.bf16.mxu1 %v3751_v16  ;;  %v405_v16 = vld [vmem:[%s4969_s9 + $0x3f0] sm:$0xff]  ;;  %v3599_v9 = vpack.c.bf16 %v536_v4, %v524_v3 }
 0x13d   : > { %1714 = vmatmul.mubr.f32.vlgmr.msra.gmra.mrb[0].mxu0 %v271_v19  ;;  %v3773_v24 = vpack.c.bf16 %v417_v18, %v405_v16  ;;  %v560_v16 = vld [vmem:[%s4969_s9 + $0x8c8] sm:$0xff]  ;;  %v562_v18 = vld [vmem:[%s4969_s9 + $0x8d8] sm:$0xff] }
 0x13e   : > { %1945 = vmatmul.mubr.f32.vlgmr.msra.gmra.mrb[0].mxu1 %v271_v19  ;;  %3562 = vmatpush1.bf16.msra.mxu0 %v3561_v22  ;;  %v428_v19 = vld [vmem:[%s4969_s9 + $0x4a8] sm:$0xff]  ;;  %v442_v22 = vld [vmem:[%s4969_s9 + $0x518] sm:$0xff] }
 0x13f   : > { %3754 = vmatpush1.bf16.msra.mxu1 %v3753_v26  ;;  %1719 = vmatprep.mubr.f32.mxu0 %v278_v23  ;;  %v3583_v25 = vpack.c.bf16 %v440_v20, %v428_v19  ;;  %v427_v26 = vld [vmem:[%s4969_s9 + $0x4a0] sm:$0xff]  ;;  %v3775_v29 = vpack.c.bf16 %v442_v22, %v430_v21 }
 0x140   : > { %1950 = vmatprep.mubr.f32.mxu1 %v278_v23  ;;  %3564 = vmatprep.subr.bf16.mxu0 %v3563_v30  ;;  %v3581_v23 = vpack.c.bf16 %v415_v15, %v403_v14  ;;  %v441_v30 = vld [vmem:[%s4969_s9 + $0x510] sm:$0xff]  ;;  %v3585_v35 = vpack.c.bf16 %v439_v27, %v427_v26  ;;  %v548_v15 = vld [vmem:[%s4969_s9 + $0x868] sm:$0xff]  ;;  %v547_v22 = vld [vmem:[%s4969_s9 + $0x860] sm:$0xff] }
 0x141   : > { %1720 = vmatmul.mubr.f32.gmra.mrb[2].mxu0 %v277_v37  ;;  %3756 = vmatprep.subr.bf16.mxu1 %v3755_v34  ;;  %v466_v34 = vld [vmem:[%s4969_s9 + $0x5d8] sm:$0xff]  ;;  %v3777_v36 = vpack.c.bf16 %v441_v30, %v429_v28  ;;  %v537_v14 = vld [vmem:[%s4969_s9 + $0x810] sm:$0xff]  ;;  %v3603_v21 = vpack.c.bf16 %v560_v16, %v548_v15  ;;  %v572_v27 = vld [vmem:[%s4969_s9 + $0x928] sm:$0xff] }
 0x142   : > { %1951 = vmatmul.mubr.f32.gmra.mrb[2].mxu1 %v277_v37  ;;  %3566 = vmatpush1.bf16.msra.mxu0 %v3565_v38  ;;  %v3587_v37 = vpack.c.bf16 %v464_v32, %v452_v31  ;;  %v451_v38 = vld [vmem:[%s4969_s9 + $0x560] sm:$0xff]  ;;  %v3779_v41 = vpack.c.bf16 %v466_v34, %v454_v33  ;;  %v561_v26 = vld [vmem:[%s4969_s9 + $0x8d0] sm:$0xff]  ;;  %v584_v28 = vld [vmem:[%s4969_s9 + $0x988] sm:$0xff] }
 0x143   : > { %3758 = vmatpush1.bf16.msra.mxu1 %v3757_v39  ;;  %3568 = vmatprep.subr.bf16.mxu0 %v3567_v40  ;;  %v463_v39 = vld [vmem:[%s4969_s9 + $0x5c0] sm:$0xff]  ;;  %v453_v40 = vld [vmem:[%s4969_s9 + $0x570] sm:$0xff]  ;;  %v586_v30 = vld [vmem:[%s4969_s9 + $0x998] sm:$0xff]  ;;  %v3607_v33 = vpack.c.bf16 %v584_v28, %v572_v27 }
 0x144   : > { %3760 = vmatprep.subr.bf16.mxu1 %v3759_v44  ;;  %2021 = vmatprep.mubr.f32.mxu0 %v4538_v60  ;;  %v488_v44 = vld [vmem:[%s4969_s9 + $0x688] sm:$0xff]  ;;  %v3589_v47 = vpack.c.bf16 %v463_v39, %v451_v38  ;;  %v3781_v48 = vpack.c.bf16 %v465_v42, %v453_v40  ;;  %v571_v34 = vld [vmem:[%s4969_s9 + $0x920] sm:$0xff]  ;;  %v585_v38 = vld [vmem:[%s4969_s9 + $0x990] sm:$0xff] }
 0x145   : > { %2252 = vmatprep.mubr.f32.mxu1 %v4538_v60  ;;  %v3591_v49 = vpack.c.bf16 %v488_v44, %v476_v43  ;;  %v596_v39 = vld [vmem:[%s4969_s9 + $0x9e8] sm:$0xff]  ;;  %v610_v42 = vld [vmem:[%s4969_s9 + $0xa58] sm:$0xff] }
 0x146   : > { %3570 = vmatpush1.bf16.msra.mxu0 %v3569_v50  ;;  %v475_v50 = vld [vmem:[%s4969_s9 + $0x620] sm:$0xff]  ;;  %v608_v40 = vld [vmem:[%s4969_s9 + $0xa48] sm:$0xff] }
 0x147   : > { %3762 = vmatpush1.bf16.msra.mxu1 %v3761_v51  ;;  %3572 = vmatprep.subr.bf16.mxu0 %v3571_v52  ;;  %v487_v51 = vld [vmem:[%s4969_s9 + $0x680] sm:$0xff]  ;;  %v477_v52 = vld [vmem:[%s4969_s9 + $0x630] sm:$0xff]  ;;  %v3611_v45 = vpack.c.bf16 %v608_v40, %v596_v39  ;;  %v730_v39 = vld [vmem:[%s4969_s9 + $0xe18] sm:$0xff] }
 0x148   : > { %3764 = vmatprep.subr.bf16.mxu1 %v3763_v56  ;;  %v512_v56 = vld [vmem:[%s4969_s9 + $0x748] sm:$0xff]  ;;  %v3593_v59 = vpack.c.bf16 %v487_v51, %v475_v50  ;;  %v3785_v60 = vpack.c.bf16 %v489_v54, %v477_v52  ;;  %v609_v50 = vld [vmem:[%s4969_s9 + $0xa50] sm:$0xff]  ;;  %v634_v54 = vld [vmem:[%s4969_s9 + $0xb18] sm:$0xff] }
 0x149   : > { %v3595_v61 = vpack.c.bf16 %v512_v56, %v500_v55  ;;  %v620_v51 = vld [vmem:[%s4969_s9 + $0xaa8] sm:$0xff] }
 0x14a   : > { %3574 = vmatpush1.bf16.msra.mxu0 %v3573_v63  ;;  %v511_v63 = vld [vmem:[%s4969_s9 + $0x740] sm:$0xff]  ;;  %v632_v52 = vld [vmem:[%s4969_s9 + $0xb08] sm:$0xff] }
 0x14b   : > { %3766 = vmatpush1.bf16.msra.mxu1 %v3765_v0  ;;  %3576 = vmatprep.subr.bf16.mxu0 %v3575_v1  ;;  %v501_v0 = vld [vmem:[%s4969_s9 + $0x6f0] sm:$0xff]  ;;  %v3787_v1 = vpack.c.bf16 %v514_v58, %v502_v57  ;;  %v3597_v7 = vpack.c.bf16 %v511_v63, %v499_v62  ;;  %v3615_v57 = vpack.c.bf16 %v632_v52, %v620_v51  ;;  %v619_v58 = vld [vmem:[%s4969_s9 + $0xaa0] sm:$0xff]  ;;  %v644_v63 = vld [vmem:[%s4969_s9 + $0xb68] sm:$0xff] }
 0x14c   : > { %3768 = vmatprep.subr.bf16.mxu1 %v3767_v5  ;;  %v526_v5 = vld [vmem:[%s4969_s9 + $0x7b8] sm:$0xff]  ;;  %v3789_v8 = vpack.c.bf16 %v513_v2, %v501_v0  ;;  %v633_v62 = vld [vmem:[%s4969_s9 + $0xb10] sm:$0xff]  ;;  %v656_v0 = vld [vmem:[%s4969_s9 + $0xbc8] sm:$0xff] }
 0x14d   : > { %v658_v2 = vld [vmem:[%s4969_s9 + $0xbd8] sm:$0xff] }
 0x14e   : > { %3578 = vmatpush1.bf16.msra.mxu0 %v3577_v11  ;;  %v535_v11 = vld [vmem:[%s4969_s9 + $0x800] sm:$0xff]  ;;  %v742_v51 = vld [vmem:[%s4969_s9 + $0xe78] sm:$0xff] }
 0x14f   : > { %3770 = vmatpush1.bf16.msra.mxu1 %v3769_v12  ;;  %3580 = vmatprep.subr.bf16.mxu0 %v3579_v13  ;;  %v525_v12 = vld [vmem:[%s4969_s9 + $0x7b0] sm:$0xff]  ;;  %v3791_v13 = vpack.c.bf16 %v538_v6, %v526_v5  ;;  %v3601_v19 = vpack.c.bf16 %v535_v11, %v523_v10  ;;  %v3619_v5 = vpack.c.bf16 %v656_v0, %v644_v63  ;;  %v643_v6 = vld [vmem:[%s4969_s9 + $0xb60] sm:$0xff]  ;;  %v668_v11 = vld [vmem:[%s4969_s9 + $0xc28] sm:$0xff] }
 0x150   : > { %3772 = vmatprep.subr.bf16.mxu1 %v3771_v17  ;;  %v550_v17 = vld [vmem:[%s4969_s9 + $0x878] sm:$0xff]  ;;  %v3793_v20 = vpack.c.bf16 %v537_v14, %v525_v12  ;;  %v657_v10 = vld [vmem:[%s4969_s9 + $0xbd0] sm:$0xff]  ;;  %v680_v12 = vld [vmem:[%s4969_s9 + $0xc88] sm:$0xff] }
 0x151   : > { %v682_v14 = vld [vmem:[%s4969_s9 + $0xc98] sm:$0xff]  ;;  %v776_v63 = vld [vmem:[%s4969_s9 + $0xf88] sm:$0xff] }
 0x152   : > { %3582 = vmatpush1.bf16.msra.mxu0 %v3581_v23  ;;  %v559_v23 = vld [vmem:[%s4969_s9 + $0x8c0] sm:$0xff]  ;;  %v754_v52 = vld [vmem:[%s4969_s9 + $0xed8] sm:$0xff] }
 0x153   : > { %3774 = vmatpush1.bf16.msra.mxu1 %v3773_v24  ;;  %3584 = vmatprep.subr.bf16.mxu0 %v3583_v25  ;;  %v549_v24 = vld [vmem:[%s4969_s9 + $0x870] sm:$0xff]  ;;  %v3795_v25 = vpack.c.bf16 %v562_v18, %v550_v17  ;;  %v3605_v31 = vpack.c.bf16 %v559_v23, %v547_v22  ;;  %v3623_v17 = vpack.c.bf16 %v680_v12, %v668_v11  ;;  %v667_v18 = vld [vmem:[%s4969_s9 + $0xc20] sm:$0xff]  ;;  %v692_v23 = vld [vmem:[%s4969_s9 + $0xce8] sm:$0xff] }
 0x154   : > { %3776 = vmatprep.subr.bf16.mxu1 %v3775_v29  ;;  %v574_v29 = vld [vmem:[%s4969_s9 + $0x938] sm:$0xff]  ;;  %v3797_v32 = vpack.c.bf16 %v561_v26, %v549_v24  ;;  %v681_v22 = vld [vmem:[%s4969_s9 + $0xc90] sm:$0xff]  ;;  %v704_v24 = vld [vmem:[%s4969_s9 + $0xd48] sm:$0xff] }
 0x155   : > { %v706_v26 = vld [vmem:[%s4969_s9 + $0xd58] sm:$0xff]  ;;  %v788_v11 = vld [vmem:[%s4969_s9 + $0xfe8] sm:$0xff] }
 0x156   : > { %3586 = vmatpush1.bf16.msra.mxu0 %v3585_v35  ;;  %v583_v35 = vld [vmem:[%s4969_s9 + $0x980] sm:$0xff]  ;;  %v4542_v0 = vld [vmem:[#allocation2 + $0x18] sm:$0xff]  ;;  %v800_v12 = vld [vmem:[%s4969_s9 + $0x1048] sm:$0xff] }
 0x157   : > { %3778 = vmatpush1.bf16.msra.mxu1 %v3777_v36  ;;  %3588 = vmatprep.subr.bf16.mxu0 %v3587_v37  ;;  %v573_v36 = vld [vmem:[%s4969_s9 + $0x930] sm:$0xff]  ;;  %v3799_v37 = vpack.c.bf16 %v586_v30, %v574_v29  ;;  %v3609_v43 = vpack.c.bf16 %v583_v35, %v571_v34  ;;  %v3627_v29 = vpack.c.bf16 %v704_v24, %v692_v23  ;;  %v691_v30 = vld [vmem:[%s4969_s9 + $0xce0] sm:$0xff]  ;;  %v716_v35 = vld [vmem:[%s4969_s9 + $0xda8] sm:$0xff] }
 0x158   : > { %3780 = vmatprep.subr.bf16.mxu1 %v3779_v41  ;;  %v598_v41 = vld [vmem:[%s4969_s9 + $0x9f8] sm:$0xff]  ;;  %v3801_v44 = vpack.c.bf16 %v585_v38, %v573_v36  ;;  %v705_v34 = vld [vmem:[%s4969_s9 + $0xd50] sm:$0xff]  ;;  %v728_v36 = vld [vmem:[%s4969_s9 + $0xe08] sm:$0xff] }
 0x159   : > { %v718_v38 = vld [vmem:[%s4969_s9 + $0xdb8] sm:$0xff]  ;;  %v812_v23 = vld [vmem:[%s4969_s9 + $0x10a8] sm:$0xff] }
 0x15a   : > { %3590 = vmatpush1.bf16.msra.mxu0 %v3589_v47  ;;  %v607_v47 = vld [vmem:[%s4969_s9 + $0xa40] sm:$0xff]  ;;  %v824_v24 = vld [vmem:[%s4969_s9 + $0x1108] sm:$0xff] }
 0x15b   : > { %3782 = vmatpush1.bf16.msra.mxu1 %v3781_v48  ;;  %3592 = vmatprep.subr.bf16.mxu0 %v3591_v49  ;;  %v597_v48 = vld [vmem:[%s4969_s9 + $0x9f0] sm:$0xff]  ;;  %v3803_v49 = vpack.c.bf16 %v610_v42, %v598_v41  ;;  %v3613_v55 = vpack.c.bf16 %v607_v47, %v595_v46  ;;  %v3631_v42 = vpack.c.bf16 %v728_v36, %v716_v35  ;;  %v836_v35 = vld [vmem:[%s4969_s9 + $0x1168] sm:$0xff] }
 0x15c   : > { %3784 = vmatprep.subr.bf16.mxu1 %v3783_v53  ;;  %v622_v53 = vld [vmem:[%s4969_s9 + $0xab8] sm:$0xff]  ;;  %v3805_v56 = vpack.c.bf16 %v609_v50, %v597_v48  ;;  %v3823_v46 = vpack.c.bf16 %v730_v39, %v718_v38  ;;  %v729_v47 = vld [vmem:[%s4969_s9 + $0xe10] sm:$0xff]  ;;  %v740_v48 = vld [vmem:[%s4969_s9 + $0xe68] sm:$0xff] }
 0x15d   : > { %v4540_v50 = vld [vmem:[#allocation2 + $0x38] sm:$0xff]  ;;  %v848_v36 = vld [vmem:[%s4969_s9 + $0x11c8] sm:$0xff] }
 0x15e   : > { %3594 = vmatpush1.bf16.msra.mxu0 %v3593_v59  ;;  %v631_v59 = vld [vmem:[%s4969_s9 + $0xb00] sm:$0xff]  ;;  %v850_v38 = vld [vmem:[%s4969_s9 + $0x11d8] sm:$0xff] }
 0x15f   : > { %3786 = vmatpush1.bf16.msra.mxu1 %v3785_v60  ;;  %3596 = vmatprep.subr.bf16.mxu0 %v3595_v61  ;;  %v621_v60 = vld [vmem:[%s4969_s9 + $0xab0] sm:$0xff]  ;;  %v3807_v61 = vpack.c.bf16 %v634_v54, %v622_v53  ;;  %v3617_v3 = vpack.c.bf16 %v631_v59, %v619_v58  ;;  %v751_v58 = vld [vmem:[%s4969_s9 + $0xec0] sm:$0xff] }
 0x160   : > { %3788 = vmatprep.subr.bf16.mxu1 %v3787_v1  ;;  %v646_v1 = vld [vmem:[%s4969_s9 + $0xb78] sm:$0xff]  ;;  %v3809_v4 = vpack.c.bf16 %v633_v62, %v621_v60  ;;  %v4541_v53 = vld [vmem:[#allocation2 + $0x30] sm:$0xff]  ;;  %v3827_v60 = vpack.c.bf16 %v754_v52, %v742_v51  ;;  %v764_v62 = vld [vmem:[%s4969_s9 + $0xf28] sm:$0xff] }
 0x161   : > { %v741_v59 = vld [vmem:[%s4969_s9 + $0xe70] sm:$0xff] }
 0x162   : > { %3598 = vmatpush1.bf16.msra.mxu0 %v3597_v7  ;;  %v655_v7 = vld [vmem:[%s4969_s9 + $0xbc0] sm:$0xff] }
 0x163   : > { %3790 = vmatpush1.bf16.msra.mxu1 %v3789_v8  ;;  %3600 = vmatprep.subr.bf16.mxu0 %v3599_v9  ;;  %v645_v8 = vld [vmem:[%s4969_s9 + $0xb70] sm:$0xff]  ;;  %v3811_v9 = vpack.c.bf16 %v658_v2, %v646_v1  ;;  %v3621_v15 = vpack.c.bf16 %v655_v7, %v643_v6  ;;  %v766_v1 = vld [vmem:[%s4969_s9 + $0xf38] sm:$0xff]  ;;  %v763_v6 = vld [vmem:[%s4969_s9 + $0xf20] sm:$0xff] }
 0x164   : > { %3792 = vmatprep.subr.bf16.mxu1 %v3791_v13  ;;  %v670_v13 = vld [vmem:[%s4969_s9 + $0xc38] sm:$0xff]  ;;  %v3813_v16 = vpack.c.bf16 %v657_v10, %v645_v8  ;;  %v775_v7 = vld [vmem:[%s4969_s9 + $0xf80] sm:$0xff]  ;;  %v765_v8 = vld [vmem:[%s4969_s9 + $0xf30] sm:$0xff] }
 0x165   : > { %v778_v2 = vld [vmem:[%s4969_s9 + $0xf98] sm:$0xff]  ;;  %v777_v10 = vld [vmem:[%s4969_s9 + $0xf90] sm:$0xff] }
 0x166   : > { %3602 = vmatpush1.bf16.msra.mxu0 %v3601_v19  ;;  %v679_v19 = vld [vmem:[%s4969_s9 + $0xc80] sm:$0xff] }
 0x167   : > { %3794 = vmatpush1.bf16.msra.mxu1 %v3793_v20  ;;  %3604 = vmatprep.subr.bf16.mxu0 %v3603_v21  ;;  %v669_v20 = vld [vmem:[%s4969_s9 + $0xc30] sm:$0xff]  ;;  %v3815_v21 = vpack.c.bf16 %v682_v14, %v670_v13  ;;  %v3625_v27 = vpack.c.bf16 %v679_v19, %v667_v18  ;;  %v790_v13 = vld [vmem:[%s4969_s9 + $0xff8] sm:$0xff]  ;;  %v787_v18 = vld [vmem:[%s4969_s9 + $0xfe0] sm:$0xff] }
 0x168   : > { %3796 = vmatprep.subr.bf16.mxu1 %v3795_v25  ;;  %v694_v25 = vld [vmem:[%s4969_s9 + $0xcf8] sm:$0xff]  ;;  %v3817_v28 = vpack.c.bf16 %v681_v22, %v669_v20  ;;  %v799_v19 = vld [vmem:[%s4969_s9 + $0x1040] sm:$0xff]  ;;  %v789_v20 = vld [vmem:[%s4969_s9 + $0xff0] sm:$0xff] }
 0x169   : > { %v802_v14 = vld [vmem:[%s4969_s9 + $0x1058] sm:$0xff]  ;;  %v801_v22 = vld [vmem:[%s4969_s9 + $0x1050] sm:$0xff] }
 0x16a   : > { %3606 = vmatpush1.bf16.msra.mxu0 %v3605_v31  ;;  %v703_v31 = vld [vmem:[%s4969_s9 + $0xd40] sm:$0xff] }
 0x16b   : > { %3798 = vmatpush1.bf16.msra.mxu1 %v3797_v32  ;;  %3608 = vmatprep.subr.bf16.mxu0 %v3607_v33  ;;  %v693_v32 = vld [vmem:[%s4969_s9 + $0xcf0] sm:$0xff]  ;;  %v3819_v33 = vpack.c.bf16 %v706_v26, %v694_v25  ;;  %v3629_v40 = vpack.c.bf16 %v703_v31, %v691_v30  ;;  %v814_v25 = vld [vmem:[%s4969_s9 + $0x10b8] sm:$0xff]  ;;  %v811_v30 = vld [vmem:[%s4969_s9 + $0x10a0] sm:$0xff] }
 0x16c   : > { %3800 = vmatprep.subr.bf16.mxu1 %v3799_v37  ;;  %v4539_v37 = vld [vmem:[#allocation2] sm:$0xff]  ;;  %v3821_v41 = vpack.c.bf16 %v705_v34, %v693_v32  ;;  %v826_v26 = vld [vmem:[%s4969_s9 + $0x1118] sm:$0xff]  ;;  %v813_v32 = vld [vmem:[%s4969_s9 + $0x10b0] sm:$0xff] }
 0x16d   : > { %v823_v31 = vld [vmem:[%s4969_s9 + $0x1100] sm:$0xff]  ;;  %v825_v34 = vld [vmem:[%s4969_s9 + $0x1110] sm:$0xff] }
 0x16e   : > { %3610 = vmatpush1.bf16.msra.mxu0 %v3609_v43  ;;  %v715_v43 = vld [vmem:[%s4969_s9 + $0xda0] sm:$0xff]  ;;  %v3649_v39 = vpack.c.bf16 %v823_v31, %v811_v30  ;;  %v945_v30 = vld [vmem:[%s4969_s9 + $0x14d0] sm:$0xff]  ;;  %v956_v31 = vld [vmem:[%s4969_s9 + $0x1528] sm:$0xff] }
 0x16f   : > { %3802 = vmatpush1.bf16.msra.mxu1 %v3801_v44  ;;  %3612 = vmatprep.subr.bf16.mxu0 %v3611_v45  ;;  %v727_v44 = vld [vmem:[%s4969_s9 + $0xe00] sm:$0xff]  ;;  %v717_v45 = vld [vmem:[%s4969_s9 + $0xdb0] sm:$0xff] }
 0x170   : > { %3804 = vmatprep.subr.bf16.mxu1 %v3803_v49  ;;  %v752_v49 = vld [vmem:[%s4969_s9 + $0xec8] sm:$0xff]  ;;  %v3633_v54 = vpack.c.bf16 %v727_v44, %v715_v43  ;;  %v847_v43 = vld [vmem:[%s4969_s9 + $0x11c0] sm:$0xff]  ;;  %v837_v44 = vld [vmem:[%s4969_s9 + $0x1170] sm:$0xff] }
 0x172   : > { %3614 = vmatpush1.bf16.msra.mxu0 %v3613_v55  ;;  %v3825_v55 = vpack.c.bf16 %v729_v47, %v717_v45  ;;  %v860_v47 = vld [vmem:[%s4969_s9 + $0x1228] sm:$0xff] }
 0x173   : > { %3806 = vmatpush1.bf16.msra.mxu1 %v3805_v56  ;;  %3616 = vmatprep.subr.bf16.mxu0 %v3615_v57  ;;  %v3635_v56 = vpack.c.bf16 %v752_v49, %v740_v48  ;;  %v739_v57 = vld [vmem:[%s4969_s9 + $0xe60] sm:$0xff]  ;;  %v872_v48 = vld [vmem:[%s4969_s9 + $0x1288] sm:$0xff]  ;;  %v862_v49 = vld [vmem:[%s4969_s9 + $0x1238] sm:$0xff] }
 0x174   : > { %3808 = vmatprep.subr.bf16.mxu1 %v3807_v61  ;;  %v753_v61 = vld [vmem:[%s4969_s9 + $0xed0] sm:$0xff] }
 0x176   : > { %3618 = vmatpush1.bf16.msra.mxu0 %v3617_v3  ;;  %v3637_v3 = vpack.c.bf16 %v751_v58, %v739_v57  ;;  %v873_v58 = vld [vmem:[%s4969_s9 + $0x1290] sm:$0xff] }
 0x177   : > { %3810 = vmatpush1.bf16.msra.mxu1 %v3809_v4  ;;  %3620 = vmatprep.subr.bf16.mxu0 %v3619_v5  ;;  %v3829_v4 = vpack.c.bf16 %v753_v61, %v741_v59  ;;  %v3639_v5 = vpack.c.bf16 %v776_v63, %v764_v62  ;;  %v884_v59 = vld [vmem:[%s4969_s9 + $0x12e8] sm:$0xff]  ;;  %v886_v61 = vld [vmem:[%s4969_s9 + $0x12f8] sm:$0xff] }
 0x178   : > { %3812 = vmatprep.subr.bf16.mxu1 %v3811_v9  ;;  %v3831_v9 = vpack.c.bf16 %v778_v2, %v766_v1  ;;  %v898_v62 = vld [vmem:[%s4969_s9 + $0x1358] sm:$0xff]  ;;  %v883_v2 = vld [vmem:[%s4969_s9 + $0x12e0] sm:$0xff] }
 0x17a   : > { %3622 = vmatpush1.bf16.msra.mxu0 %v3621_v15  ;;  %v3641_v15 = vpack.c.bf16 %v775_v7, %v763_v6  ;;  %v897_v6 = vld [vmem:[%s4969_s9 + $0x1350] sm:$0xff]  ;;  %v908_v7 = vld [vmem:[%s4969_s9 + $0x13a8] sm:$0xff] }
 0x17b   : > { %3814 = vmatpush1.bf16.msra.mxu1 %v3813_v16  ;;  %3624 = vmatprep.subr.bf16.mxu0 %v3623_v17  ;;  %v3833_v16 = vpack.c.bf16 %v777_v10, %v765_v8  ;;  %v3643_v17 = vpack.c.bf16 %v800_v12, %v788_v11  ;;  %v920_v8 = vld [vmem:[%s4969_s9 + $0x1408] sm:$0xff]  ;;  %v922_v10 = vld [vmem:[%s4969_s9 + $0x1418] sm:$0xff] }
 0x17c   : > { %3816 = vmatprep.subr.bf16.mxu1 %v3815_v21  ;;  %v3835_v21 = vpack.c.bf16 %v802_v14, %v790_v13  ;;  %v3663_v13 = vpack.c.bf16 %v920_v8, %v908_v7  ;;  %v907_v14 = vld [vmem:[%s4969_s9 + $0x13a0] sm:$0xff] }
 0x17d   : > { %2022 = vmatmul.mubr.f32.vlgmr.msra.gmra.mrb[4].mxu0 %v4539_v37 }
 0x17e   : > { %3626 = vmatpush1.bf16.msra.mxu0 %v3625_v27  ;;  %2253 = vmatmul.mubr.f32.vlgmr.msra.gmra.mrb[4].mxu1 %v4539_v37  ;;  %v3645_v27 = vpack.c.bf16 %v799_v19, %v787_v18  ;;  %v838_v37 = vld [vmem:[%s4969_s9 + $0x1178] sm:$0xff]  ;;  %v921_v18 = vld [vmem:[%s4969_s9 + $0x1410] sm:$0xff]  ;;  %v932_v19 = vld [vmem:[%s4969_s9 + $0x1468] sm:$0xff] }
 0x17f   : > { %3818 = vmatpush1.bf16.msra.mxu1 %v3817_v28  ;;  %3628 = vmatprep.subr.bf16.mxu0 %v3627_v29  ;;  %v3837_v28 = vpack.c.bf16 %v801_v22, %v789_v20  ;;  %v3647_v29 = vpack.c.bf16 %v824_v24, %v812_v23  ;;  %v3843_v45 = vpack.c.bf16 %v850_v38, %v838_v37  ;;  %v944_v20 = vld [vmem:[%s4969_s9 + $0x14c8] sm:$0xff]  ;;  %v946_v22 = vld [vmem:[%s4969_s9 + $0x14d8] sm:$0xff]  ;;  %v955_v38 = vld [vmem:[%s4969_s9 + $0x1520] sm:$0xff] }
 0x180   : > { %3820 = vmatprep.subr.bf16.mxu1 %v3819_v33  ;;  %2027 = vmatprep.mubr.f32.mxu0 %v4540_v50  ;;  %v3839_v33 = vpack.c.bf16 %v826_v26, %v814_v25  ;;  %v3667_v25 = vpack.c.bf16 %v944_v20, %v932_v19  ;;  %v931_v26 = vld [vmem:[%s4969_s9 + $0x1460] sm:$0xff] }
 0x181   : > { %2258 = vmatprep.mubr.f32.mxu1 %v4540_v50  ;;  %2028 = vmatmul.mubr.f32.gmra.mrb[6].mxu0 %v4541_v53  ;;  %v874_v50 = vld [vmem:[%s4969_s9 + $0x1298] sm:$0xff] }
 0x182   : > { %3630 = vmatpush1.bf16.msra.mxu0 %v3629_v40  ;;  %2259 = vmatmul.mubr.f32.gmra.mrb[6].mxu1 %v4541_v53  ;;  %v3841_v40 = vpack.c.bf16 %v825_v34, %v813_v32  ;;  %v3655_v53 = vpack.c.bf16 %v872_v48, %v860_v47  ;;  %v3847_v57 = vpack.c.bf16 %v874_v50, %v862_v49  ;;  %v968_v32 = vld [vmem:[%s4969_s9 + $0x1588] sm:$0xff]  ;;  %v970_v34 = vld [vmem:[%s4969_s9 + $0x1598] sm:$0xff]  ;;  %v979_v50 = vld [vmem:[%s4969_s9 + $0x15e0] sm:$0xff] }
 0x183   : > { %3822 = vmatpush1.bf16.msra.mxu1 %v3821_v41  ;;  %3632 = vmatprep.subr.bf16.mxu0 %v3631_v42  ;;  %v3651_v41 = vpack.c.bf16 %v848_v36, %v836_v35  ;;  %v835_v42 = vld [vmem:[%s4969_s9 + $0x1160] sm:$0xff]  ;;  %v3671_v37 = vpack.c.bf16 %v968_v32, %v956_v31 }
 0x184   : > { %3824 = vmatprep.subr.bf16.mxu1 %v3823_v46  ;;  %2098 = vmatprep.mubr.f32.mxu0 %v4542_v0  ;;  %v849_v46 = vld [vmem:[%s4969_s9 + $0x11d0] sm:$0xff]  ;;  %v3653_v51 = vpack.c.bf16 %v847_v43, %v835_v42  ;;  %v980_v43 = vld [vmem:[%s4969_s9 + $0x15e8] sm:$0xff] }
 0x185   : > { %2329 = vmatprep.mubr.f32.mxu1 %v4542_v0  ;;  %v3845_v52 = vpack.c.bf16 %v849_v46, %v837_v44  ;;  %v969_v42 = vld [vmem:[%s4969_s9 + $0x1590] sm:$0xff]  ;;  %v992_v44 = vld [vmem:[%s4969_s9 + $0x1648] sm:$0xff]  ;;  %v994_v46 = vld [vmem:[%s4969_s9 + $0x1658] sm:$0xff] }
 0x186   : > { %3634 = vmatpush1.bf16.msra.mxu0 %v3633_v54  ;;  %v859_v54 = vld [vmem:[%s4969_s9 + $0x1220] sm:$0xff]  ;;  %v3675_v49 = vpack.c.bf16 %v992_v44, %v980_v43  ;;  %v1114_v43 = vld [vmem:[%s4969_s9 + $0x1a18] sm:$0xff] }
 0x187   : > { %3826 = vmatpush1.bf16.msra.mxu1 %v3825_v55  ;;  %3636 = vmatprep.subr.bf16.mxu0 %v3635_v56  ;;  %v871_v55 = vld [vmem:[%s4969_s9 + $0x1280] sm:$0xff]  ;;  %v861_v56 = vld [vmem:[%s4969_s9 + $0x1230] sm:$0xff] }
 0x188   : > { %3828 = vmatprep.subr.bf16.mxu1 %v3827_v60  ;;  %v896_v60 = vld [vmem:[%s4969_s9 + $0x1348] sm:$0xff]  ;;  %v3657_v63 = vpack.c.bf16 %v871_v55, %v859_v54  ;;  %v3849_v0 = vpack.c.bf16 %v873_v58, %v861_v56  ;;  %v993_v54 = vld [vmem:[%s4969_s9 + $0x1650] sm:$0xff]  ;;  %v1018_v58 = vld [vmem:[%s4969_s9 + $0x1718] sm:$0xff] }
 0x189   : > { %v3659_v1 = vpack.c.bf16 %v896_v60, %v884_v59  ;;  %v1004_v55 = vld [vmem:[%s4969_s9 + $0x16a8] sm:$0xff] }
 0x18a   : > { %3638 = vmatpush1.bf16.msra.mxu0 %v3637_v3  ;;  %v895_v3 = vld [vmem:[%s4969_s9 + $0x1340] sm:$0xff]  ;;  %v1016_v56 = vld [vmem:[%s4969_s9 + $0x1708] sm:$0xff] }
 0x18b   : > { %3830 = vmatpush1.bf16.msra.mxu1 %v3829_v4  ;;  %3640 = vmatprep.subr.bf16.mxu0 %v3639_v5  ;;  %v885_v4 = vld [vmem:[%s4969_s9 + $0x12f0] sm:$0xff]  ;;  %v3851_v5 = vpack.c.bf16 %v898_v62, %v886_v61  ;;  %v3661_v11 = vpack.c.bf16 %v895_v3, %v883_v2  ;;  %v3679_v61 = vpack.c.bf16 %v1016_v56, %v1004_v55  ;;  %v1003_v62 = vld [vmem:[%s4969_s9 + $0x16a0] sm:$0xff]  ;;  %v1028_v3 = vld [vmem:[%s4969_s9 + $0x1768] sm:$0xff] }
 0x18c   : > { %3832 = vmatprep.subr.bf16.mxu1 %v3831_v9  ;;  %v910_v9 = vld [vmem:[%s4969_s9 + $0x13b8] sm:$0xff]  ;;  %v3853_v12 = vpack.c.bf16 %v897_v6, %v885_v4  ;;  %v1017_v2 = vld [vmem:[%s4969_s9 + $0x1710] sm:$0xff]  ;;  %v1040_v4 = vld [vmem:[%s4969_s9 + $0x17c8] sm:$0xff] }
 0x18d   : > { %v1042_v6 = vld [vmem:[%s4969_s9 + $0x17d8] sm:$0xff] }
 0x18e   : > { %3642 = vmatpush1.bf16.msra.mxu0 %v3641_v15  ;;  %v919_v15 = vld [vmem:[%s4969_s9 + $0x1400] sm:$0xff]  ;;  %v1126_v55 = vld [vmem:[%s4969_s9 + $0x1a78] sm:$0xff] }
 0x18f   : > { %3834 = vmatpush1.bf16.msra.mxu1 %v3833_v16  ;;  %3644 = vmatprep.subr.bf16.mxu0 %v3643_v17  ;;  %v909_v16 = vld [vmem:[%s4969_s9 + $0x13b0] sm:$0xff]  ;;  %v3855_v17 = vpack.c.bf16 %v922_v10, %v910_v9  ;;  %v3665_v23 = vpack.c.bf16 %v919_v15, %v907_v14  ;;  %v3683_v9 = vpack.c.bf16 %v1040_v4, %v1028_v3  ;;  %v1027_v10 = vld [vmem:[%s4969_s9 + $0x1760] sm:$0xff]  ;;  %v1052_v15 = vld [vmem:[%s4969_s9 + $0x1828] sm:$0xff] }
 0x190   : > { %3836 = vmatprep.subr.bf16.mxu1 %v3835_v21  ;;  %v934_v21 = vld [vmem:[%s4969_s9 + $0x1478] sm:$0xff]  ;;  %v3857_v24 = vpack.c.bf16 %v921_v18, %v909_v16  ;;  %v1041_v14 = vld [vmem:[%s4969_s9 + $0x17d0] sm:$0xff]  ;;  %v1064_v16 = vld [vmem:[%s4969_s9 + $0x1888] sm:$0xff] }
 0x191   : > { %v1066_v18 = vld [vmem:[%s4969_s9 + $0x1898] sm:$0xff]  ;;  %v1160_v3 = vld [vmem:[%s4969_s9 + $0x1b88] sm:$0xff] }
 0x192   : > { %3646 = vmatpush1.bf16.msra.mxu0 %v3645_v27  ;;  %v943_v27 = vld [vmem:[%s4969_s9 + $0x14c0] sm:$0xff]  ;;  %v1138_v56 = vld [vmem:[%s4969_s9 + $0x1ad8] sm:$0xff]  ;;  %v4546_v4 = vld [vmem:[#allocation2 + $0x28] sm:$0xff] }
 0x193   : > { %3838 = vmatpush1.bf16.msra.mxu1 %v3837_v28  ;;  %3648 = vmatprep.subr.bf16.mxu0 %v3647_v29  ;;  %v933_v28 = vld [vmem:[%s4969_s9 + $0x1470] sm:$0xff]  ;;  %v3859_v29 = vpack.c.bf16 %v946_v22, %v934_v21  ;;  %v3669_v35 = vpack.c.bf16 %v943_v27, %v931_v26  ;;  %v3687_v21 = vpack.c.bf16 %v1064_v16, %v1052_v15  ;;  %v1051_v22 = vld [vmem:[%s4969_s9 + $0x1820] sm:$0xff]  ;;  %v1076_v27 = vld [vmem:[%s4969_s9 + $0x18e8] sm:$0xff] }
 0x194   : > { %3840 = vmatprep.subr.bf16.mxu1 %v3839_v33  ;;  %v958_v33 = vld [vmem:[%s4969_s9 + $0x1538] sm:$0xff]  ;;  %v3861_v36 = vpack.c.bf16 %v945_v30, %v933_v28  ;;  %v1065_v26 = vld [vmem:[%s4969_s9 + $0x1890] sm:$0xff]  ;;  %v1088_v28 = vld [vmem:[%s4969_s9 + $0x1948] sm:$0xff] }
 0x195   : > { %v1090_v30 = vld [vmem:[%s4969_s9 + $0x1958] sm:$0xff]  ;;  %v1172_v15 = vld [vmem:[%s4969_s9 + $0x1be8] sm:$0xff] }
 0x196   : > { %3650 = vmatpush1.bf16.msra.mxu0 %v3649_v39  ;;  %v967_v39 = vld [vmem:[%s4969_s9 + $0x1580] sm:$0xff]  ;;  %v1184_v16 = vld [vmem:[%s4969_s9 + $0x1c48] sm:$0xff] }
 0x197   : > { %3842 = vmatpush1.bf16.msra.mxu1 %v3841_v40  ;;  %3652 = vmatprep.subr.bf16.mxu0 %v3651_v41  ;;  %v957_v40 = vld [vmem:[%s4969_s9 + $0x1530] sm:$0xff]  ;;  %v3863_v41 = vpack.c.bf16 %v970_v34, %v958_v33  ;;  %v3673_v47 = vpack.c.bf16 %v967_v39, %v955_v38  ;;  %v3691_v33 = vpack.c.bf16 %v1088_v28, %v1076_v27  ;;  %v1075_v34 = vld [vmem:[%s4969_s9 + $0x18e0] sm:$0xff]  ;;  %v1100_v39 = vld [vmem:[%s4969_s9 + $0x19a8] sm:$0xff] }
 0x198   : > { %3844 = vmatprep.subr.bf16.mxu1 %v3843_v45  ;;  %v982_v45 = vld [vmem:[%s4969_s9 + $0x15f8] sm:$0xff]  ;;  %v3865_v48 = vpack.c.bf16 %v969_v42, %v957_v40  ;;  %v1089_v38 = vld [vmem:[%s4969_s9 + $0x1950] sm:$0xff]  ;;  %v1112_v40 = vld [vmem:[%s4969_s9 + $0x1a08] sm:$0xff] }
 0x199   : > { %v1102_v42 = vld [vmem:[%s4969_s9 + $0x19b8] sm:$0xff]  ;;  %v1196_v27 = vld [vmem:[%s4969_s9 + $0x1ca8] sm:$0xff] }
 0x19a   : > { %3654 = vmatpush1.bf16.msra.mxu0 %v3653_v51  ;;  %v991_v51 = vld [vmem:[%s4969_s9 + $0x1640] sm:$0xff]  ;;  %v1208_v28 = vld [vmem:[%s4969_s9 + $0x1d08] sm:$0xff] }
 0x19b   : > { %3846 = vmatpush1.bf16.msra.mxu1 %v3845_v52  ;;  %3656 = vmatprep.subr.bf16.mxu0 %v3655_v53  ;;  %v981_v52 = vld [vmem:[%s4969_s9 + $0x15f0] sm:$0xff]  ;;  %v3867_v53 = vpack.c.bf16 %v994_v46, %v982_v45  ;;  %v3677_v59 = vpack.c.bf16 %v991_v51, %v979_v50  ;;  %v3695_v46 = vpack.c.bf16 %v1112_v40, %v1100_v39  ;;  %v1220_v39 = vld [vmem:[%s4969_s9 + $0x1d68] sm:$0xff] }
 0x19c   : > { %3848 = vmatprep.subr.bf16.mxu1 %v3847_v57  ;;  %v1006_v57 = vld [vmem:[%s4969_s9 + $0x16b8] sm:$0xff]  ;;  %v3869_v60 = vpack.c.bf16 %v993_v54, %v981_v52  ;;  %v3887_v50 = vpack.c.bf16 %v1114_v43, %v1102_v42  ;;  %v1113_v51 = vld [vmem:[%s4969_s9 + $0x1a10] sm:$0xff]  ;;  %v1124_v52 = vld [vmem:[%s4969_s9 + $0x1a68] sm:$0xff] }
 0x19d   : > { %v4544_v54 = vld [vmem:[#allocation2 + $0x48] sm:$0xff]  ;;  %v1234_v42 = vld [vmem:[%s4969_s9 + $0x1dd8] sm:$0xff] }
 0x19e   : > { %3658 = vmatpush1.bf16.msra.mxu0 %v3657_v63  ;;  %v1015_v63 = vld [vmem:[%s4969_s9 + $0x1700] sm:$0xff]  ;;  %v1232_v40 = vld [vmem:[%s4969_s9 + $0x1dc8] sm:$0xff] }
 0x19f   : > { %3850 = vmatpush1.bf16.msra.mxu1 %v3849_v0  ;;  %3660 = vmatprep.subr.bf16.mxu0 %v3659_v1  ;;  %v1005_v0 = vld [vmem:[%s4969_s9 + $0x16b0] sm:$0xff]  ;;  %v3871_v1 = vpack.c.bf16 %v1018_v58, %v1006_v57  ;;  %v3681_v7 = vpack.c.bf16 %v1015_v63, %v1003_v62  ;;  %v4545_v57 = vld [vmem:[#allocation2 + $0x40] sm:$0xff] }
 0x1a0   : > { %3852 = vmatprep.subr.bf16.mxu1 %v3851_v5  ;;  %v1030_v5 = vld [vmem:[%s4969_s9 + $0x1778] sm:$0xff]  ;;  %v3873_v8 = vpack.c.bf16 %v1017_v2, %v1005_v0  ;;  %v1135_v62 = vld [vmem:[%s4969_s9 + $0x1ac0] sm:$0xff]  ;;  %v1125_v63 = vld [vmem:[%s4969_s9 + $0x1a70] sm:$0xff]  ;;  %v3891_v0 = vpack.c.bf16 %v1138_v56, %v1126_v55 }
 0x1a1   : > { %v1148_v2 = vld [vmem:[%s4969_s9 + $0x1b28] sm:$0xff] }
 0x1a2   : > { %3662 = vmatpush1.bf16.msra.mxu0 %v3661_v11  ;;  %v1039_v11 = vld [vmem:[%s4969_s9 + $0x17c0] sm:$0xff] }
 0x1a3   : > { %3854 = vmatpush1.bf16.msra.mxu1 %v3853_v12  ;;  %3664 = vmatprep.subr.bf16.mxu0 %v3663_v13  ;;  %v1029_v12 = vld [vmem:[%s4969_s9 + $0x1770] sm:$0xff]  ;;  %v3875_v13 = vpack.c.bf16 %v1042_v6, %v1030_v5  ;;  %v3685_v19 = vpack.c.bf16 %v1039_v11, %v1027_v10  ;;  %v1150_v5 = vld [vmem:[%s4969_s9 + $0x1b38] sm:$0xff]  ;;  %v1147_v10 = vld [vmem:[%s4969_s9 + $0x1b20] sm:$0xff] }
 0x1a4   : > { %3856 = vmatprep.subr.bf16.mxu1 %v3855_v17  ;;  %v1054_v17 = vld [vmem:[%s4969_s9 + $0x1838] sm:$0xff]  ;;  %v3877_v20 = vpack.c.bf16 %v1041_v14, %v1029_v12  ;;  %v1159_v11 = vld [vmem:[%s4969_s9 + $0x1b80] sm:$0xff]  ;;  %v1149_v12 = vld [vmem:[%s4969_s9 + $0x1b30] sm:$0xff] }
 0x1a5   : > { %v1162_v6 = vld [vmem:[%s4969_s9 + $0x1b98] sm:$0xff]  ;;  %v1161_v14 = vld [vmem:[%s4969_s9 + $0x1b90] sm:$0xff] }
 0x1a6   : > { %3666 = vmatpush1.bf16.msra.mxu0 %v3665_v23  ;;  %v1063_v23 = vld [vmem:[%s4969_s9 + $0x1880] sm:$0xff] }
 0x1a7   : > { %3858 = vmatpush1.bf16.msra.mxu1 %v3857_v24  ;;  %3668 = vmatprep.subr.bf16.mxu0 %v3667_v25  ;;  %v1053_v24 = vld [vmem:[%s4969_s9 + $0x1830] sm:$0xff]  ;;  %v3879_v25 = vpack.c.bf16 %v1066_v18, %v1054_v17  ;;  %v3689_v31 = vpack.c.bf16 %v1063_v23, %v1051_v22  ;;  %v1174_v17 = vld [vmem:[%s4969_s9 + $0x1bf8] sm:$0xff]  ;;  %v1171_v22 = vld [vmem:[%s4969_s9 + $0x1be0] sm:$0xff] }
 0x1a8   : > { %3860 = vmatprep.subr.bf16.mxu1 %v3859_v29  ;;  %v1078_v29 = vld [vmem:[%s4969_s9 + $0x18f8] sm:$0xff]  ;;  %v3881_v32 = vpack.c.bf16 %v1065_v26, %v1053_v24  ;;  %v1183_v23 = vld [vmem:[%s4969_s9 + $0x1c40] sm:$0xff]  ;;  %v1173_v24 = vld [vmem:[%s4969_s9 + $0x1bf0] sm:$0xff] }
 0x1a9   : > { %v1186_v18 = vld [vmem:[%s4969_s9 + $0x1c58] sm:$0xff]  ;;  %v1185_v26 = vld [vmem:[%s4969_s9 + $0x1c50] sm:$0xff] }
 0x1aa   : > { %3670 = vmatpush1.bf16.msra.mxu0 %v3669_v35  ;;  %v1087_v35 = vld [vmem:[%s4969_s9 + $0x1940] sm:$0xff] }
 0x1ab   : > { %3862 = vmatpush1.bf16.msra.mxu1 %v3861_v36  ;;  %3672 = vmatprep.subr.bf16.mxu0 %v3671_v37  ;;  %v1077_v36 = vld [vmem:[%s4969_s9 + $0x18f0] sm:$0xff]  ;;  %v3883_v37 = vpack.c.bf16 %v1090_v30, %v1078_v29  ;;  %v3693_v44 = vpack.c.bf16 %v1087_v35, %v1075_v34  ;;  %v1198_v29 = vld [vmem:[%s4969_s9 + $0x1cb8] sm:$0xff]  ;;  %v1195_v34 = vld [vmem:[%s4969_s9 + $0x1ca0] sm:$0xff] }
 0x1ac   : > { %3864 = vmatprep.subr.bf16.mxu1 %v3863_v41  ;;  %v4543_v41 = vld [vmem:[#allocation2 + $0x10] sm:$0xff]  ;;  %v3885_v45 = vpack.c.bf16 %v1089_v38, %v1077_v36  ;;  %v1210_v30 = vld [vmem:[%s4969_s9 + $0x1d18] sm:$0xff]  ;;  %v1207_v35 = vld [vmem:[%s4969_s9 + $0x1d00] sm:$0xff] }
 0x1ad   : > { %v1197_v36 = vld [vmem:[%s4969_s9 + $0x1cb0] sm:$0xff]  ;;  %v3713_v43 = vpack.c.bf16 %v1207_v35, %v1195_v34  ;;  %v1340_v35 = vld [vmem:[%s4969_s9 + $0x2128] sm:$0xff] }
 0x1ae   : > { %3674 = vmatpush1.bf16.msra.mxu0 %v3673_v47  ;;  %v1099_v47 = vld [vmem:[%s4969_s9 + $0x19a0] sm:$0xff]  ;;  %v1209_v38 = vld [vmem:[%s4969_s9 + $0x1d10] sm:$0xff] }
 0x1af   : > { %3866 = vmatpush1.bf16.msra.mxu1 %v3865_v48  ;;  %3676 = vmatprep.subr.bf16.mxu0 %v3675_v49  ;;  %v1111_v48 = vld [vmem:[%s4969_s9 + $0x1a00] sm:$0xff]  ;;  %v1101_v49 = vld [vmem:[%s4969_s9 + $0x19b0] sm:$0xff] }
 0x1b0   : > { %3868 = vmatprep.subr.bf16.mxu1 %v3867_v53  ;;  %v1136_v53 = vld [vmem:[%s4969_s9 + $0x1ac8] sm:$0xff]  ;;  %v3697_v58 = vpack.c.bf16 %v1111_v48, %v1099_v47  ;;  %v1231_v47 = vld [vmem:[%s4969_s9 + $0x1dc0] sm:$0xff]  ;;  %v1221_v48 = vld [vmem:[%s4969_s9 + $0x1d70] sm:$0xff] }
 0x1b1   : > { %v1329_v34 = vld [vmem:[%s4969_s9 + $0x20d0] sm:$0xff] }
 0x1b2   : > { %3678 = vmatpush1.bf16.msra.mxu0 %v3677_v59  ;;  %v3889_v59 = vpack.c.bf16 %v1113_v51, %v1101_v49  ;;  %v1244_v51 = vld [vmem:[%s4969_s9 + $0x1e28] sm:$0xff] }
 0x1b3   : > { %3870 = vmatpush1.bf16.msra.mxu1 %v3869_v60  ;;  %3680 = vmatprep.subr.bf16.mxu0 %v3679_v61  ;;  %v3699_v60 = vpack.c.bf16 %v1136_v53, %v1124_v52  ;;  %v1123_v61 = vld [vmem:[%s4969_s9 + $0x1a60] sm:$0xff]  ;;  %v1256_v52 = vld [vmem:[%s4969_s9 + $0x1e88] sm:$0xff]  ;;  %v1246_v53 = vld [vmem:[%s4969_s9 + $0x1e38] sm:$0xff] }
 0x1b4   : > { %3872 = vmatprep.subr.bf16.mxu1 %v3871_v1  ;;  %v1137_v1 = vld [vmem:[%s4969_s9 + $0x1ad0] sm:$0xff] }
 0x1b6   : > { %3682 = vmatpush1.bf16.msra.mxu0 %v3681_v7  ;;  %v3701_v7 = vpack.c.bf16 %v1135_v62, %v1123_v61  ;;  %v1257_v62 = vld [vmem:[%s4969_s9 + $0x1e90] sm:$0xff] }
 0x1b7   : > { %3874 = vmatpush1.bf16.msra.mxu1 %v3873_v8  ;;  %3684 = vmatprep.subr.bf16.mxu0 %v3683_v9  ;;  %v3893_v8 = vpack.c.bf16 %v1137_v1, %v1125_v63  ;;  %v3703_v9 = vpack.c.bf16 %v1160_v3, %v1148_v2  ;;  %v1268_v63 = vld [vmem:[%s4969_s9 + $0x1ee8] sm:$0xff]  ;;  %v1270_v1 = vld [vmem:[%s4969_s9 + $0x1ef8] sm:$0xff] }
 0x1b8   : > { %3876 = vmatprep.subr.bf16.mxu1 %v3875_v13  ;;  %v3895_v13 = vpack.c.bf16 %v1162_v6, %v1150_v5  ;;  %v1282_v2 = vld [vmem:[%s4969_s9 + $0x1f58] sm:$0xff]  ;;  %v1267_v6 = vld [vmem:[%s4969_s9 + $0x1ee0] sm:$0xff] }
 0x1ba   : > { %3686 = vmatpush1.bf16.msra.mxu0 %v3685_v19  ;;  %v3705_v19 = vpack.c.bf16 %v1159_v11, %v1147_v10  ;;  %v1281_v10 = vld [vmem:[%s4969_s9 + $0x1f50] sm:$0xff]  ;;  %v1292_v11 = vld [vmem:[%s4969_s9 + $0x1fa8] sm:$0xff] }
 0x1bb   : > { %3878 = vmatpush1.bf16.msra.mxu1 %v3877_v20  ;;  %3688 = vmatprep.subr.bf16.mxu0 %v3687_v21  ;;  %v3897_v20 = vpack.c.bf16 %v1161_v14, %v1149_v12  ;;  %v3707_v21 = vpack.c.bf16 %v1184_v16, %v1172_v15  ;;  %v1304_v12 = vld [vmem:[%s4969_s9 + $0x2008] sm:$0xff]  ;;  %v1306_v14 = vld [vmem:[%s4969_s9 + $0x2018] sm:$0xff] }
 0x1bc   : > { %3880 = vmatprep.subr.bf16.mxu1 %v3879_v25  ;;  %v3899_v25 = vpack.c.bf16 %v1186_v18, %v1174_v17  ;;  %v3727_v17 = vpack.c.bf16 %v1304_v12, %v1292_v11  ;;  %v1291_v18 = vld [vmem:[%s4969_s9 + $0x1fa0] sm:$0xff] }
 0x1bd   : > { %2099 = vmatmul.mubr.f32.vlgmr.msra.gmra.mrb[4].mxu0 %v4543_v41 }
 0x1be   : > { %3690 = vmatpush1.bf16.msra.mxu0 %v3689_v31  ;;  %2330 = vmatmul.mubr.f32.vlgmr.msra.gmra.mrb[4].mxu1 %v4543_v41  ;;  %v3709_v31 = vpack.c.bf16 %v1183_v23, %v1171_v22  ;;  %v1222_v41 = vld [vmem:[%s4969_s9 + $0x1d78] sm:$0xff]  ;;  %v1305_v22 = vld [vmem:[%s4969_s9 + $0x2010] sm:$0xff]  ;;  %v1316_v23 = vld [vmem:[%s4969_s9 + $0x2068] sm:$0xff] }
 0x1bf   : > { %3882 = vmatpush1.bf16.msra.mxu1 %v3881_v32  ;;  %3692 = vmatprep.subr.bf16.mxu0 %v3691_v33  ;;  %v3901_v32 = vpack.c.bf16 %v1185_v26, %v1173_v24  ;;  %v3711_v33 = vpack.c.bf16 %v1208_v28, %v1196_v27  ;;  %v3907_v49 = vpack.c.bf16 %v1234_v42, %v1222_v41  ;;  %v1328_v24 = vld [vmem:[%s4969_s9 + $0x20c8] sm:$0xff]  ;;  %v1330_v26 = vld [vmem:[%s4969_s9 + $0x20d8] sm:$0xff]  ;;  %v1339_v42 = vld [vmem:[%s4969_s9 + $0x2120] sm:$0xff] }
 0x1c0   : > { %3884 = vmatprep.subr.bf16.mxu1 %v3883_v37  ;;  %2104 = vmatprep.mubr.f32.mxu0 %v4544_v54  ;;  %v3903_v37 = vpack.c.bf16 %v1210_v30, %v1198_v29  ;;  %v3731_v29 = vpack.c.bf16 %v1328_v24, %v1316_v23  ;;  %v1315_v30 = vld [vmem:[%s4969_s9 + $0x2060] sm:$0xff] }
 0x1c1   : > { %2335 = vmatprep.mubr.f32.mxu1 %v4544_v54  ;;  %2105 = vmatmul.mubr.f32.gmra.mrb[6].mxu0 %v4545_v57  ;;  %v1258_v54 = vld [vmem:[%s4969_s9 + $0x1e98] sm:$0xff] }
 0x1c2   : > { %3694 = vmatpush1.bf16.msra.mxu0 %v3693_v44  ;;  %2336 = vmatmul.mubr.f32.gmra.mrb[6].mxu1 %v4545_v57  ;;  %v3905_v44 = vpack.c.bf16 %v1209_v38, %v1197_v36  ;;  %v3719_v57 = vpack.c.bf16 %v1256_v52, %v1244_v51  ;;  %v3911_v61 = vpack.c.bf16 %v1258_v54, %v1246_v53  ;;  %v1352_v36 = vld [vmem:[%s4969_s9 + $0x2188] sm:$0xff]  ;;  %v1354_v38 = vld [vmem:[%s4969_s9 + $0x2198] sm:$0xff]  ;;  %v1363_v54 = vld [vmem:[%s4969_s9 + $0x21e0] sm:$0xff] }
 0x1c3   : > { %3886 = vmatpush1.bf16.msra.mxu1 %v3885_v45  ;;  %3696 = vmatprep.subr.bf16.mxu0 %v3695_v46  ;;  %v3715_v45 = vpack.c.bf16 %v1232_v40, %v1220_v39  ;;  %v1219_v46 = vld [vmem:[%s4969_s9 + $0x1d60] sm:$0xff]  ;;  %v3735_v41 = vpack.c.bf16 %v1352_v36, %v1340_v35  ;;  %v326_v35 = vld [vmem:[%s4969_s9 + $0x178] sm:$0xff] }
 0x1c4   : > { %3888 = vmatprep.subr.bf16.mxu1 %v3887_v50  ;;  %2175 = vmatprep.mubr.f32.mxu0 %v4546_v4  ;;  %v1233_v50 = vld [vmem:[%s4969_s9 + $0x1dd0] sm:$0xff]  ;;  %v3717_v55 = vpack.c.bf16 %v1231_v47, %v1219_v46  ;;  %v1364_v47 = vld [vmem:[%s4969_s9 + $0x21e8] sm:$0xff] }
 0x1c5   : > { %2406 = vmatprep.mubr.f32.mxu1 %v4546_v4  ;;  %v3909_v56 = vpack.c.bf16 %v1233_v50, %v1221_v48  ;;  %v1353_v46 = vld [vmem:[%s4969_s9 + $0x2190] sm:$0xff]  ;;  %v1376_v48 = vld [vmem:[%s4969_s9 + $0x2248] sm:$0xff]  ;;  %v1378_v50 = vld [vmem:[%s4969_s9 + $0x2258] sm:$0xff] }
 0x1c6   : > { %3698 = vmatpush1.bf16.msra.mxu0 %v3697_v58  ;;  %v1243_v58 = vld [vmem:[%s4969_s9 + $0x1e20] sm:$0xff]  ;;  %v3739_v53 = vpack.c.bf16 %v1376_v48, %v1364_v47  ;;  %v350_v47 = vld [vmem:[%s4969_s9 + $0x238] sm:$0xff] }
 0x1c7   : > { %3890 = vmatpush1.bf16.msra.mxu1 %v3889_v59  ;;  %3700 = vmatprep.subr.bf16.mxu0 %v3699_v60  ;;  %v1255_v59 = vld [vmem:[%s4969_s9 + $0x1e80] sm:$0xff]  ;;  %v1245_v60 = vld [vmem:[%s4969_s9 + $0x1e30] sm:$0xff] }
 0x1c8   : > { %3892 = vmatprep.subr.bf16.mxu1 %v3891_v0  ;;  %v1280_v0 = vld [vmem:[%s4969_s9 + $0x1f48] sm:$0xff]  ;;  %v3721_v3 = vpack.c.bf16 %v1255_v59, %v1243_v58  ;;  %v3913_v4 = vpack.c.bf16 %v1257_v62, %v1245_v60  ;;  %v1377_v58 = vld [vmem:[%s4969_s9 + $0x2250] sm:$0xff]  ;;  %v1402_v62 = vld [vmem:[%s4969_s9 + $0x2318] sm:$0xff] }
 0x1c9   : > { %v3723_v5 = vpack.c.bf16 %v1280_v0, %v1268_v63  ;;  %v1388_v59 = vld [vmem:[%s4969_s9 + $0x22a8] sm:$0xff] }
 0x1ca   : > { %3702 = vmatpush1.bf16.msra.mxu0 %v3701_v7  ;;  %v1279_v7 = vld [vmem:[%s4969_s9 + $0x1f40] sm:$0xff]  ;;  %v1400_v60 = vld [vmem:[%s4969_s9 + $0x2308] sm:$0xff] }
 0x1cb   : > { %3894 = vmatpush1.bf16.msra.mxu1 %v3893_v8  ;;  %3704 = vmatprep.subr.bf16.mxu0 %v3703_v9  ;;  %v1269_v8 = vld [vmem:[%s4969_s9 + $0x1ef0] sm:$0xff]  ;;  %v3915_v9 = vpack.c.bf16 %v1282_v2, %v1270_v1  ;;  %v3725_v15 = vpack.c.bf16 %v1279_v7, %v1267_v6  ;;  %v3743_v1 = vpack.c.bf16 %v1400_v60, %v1388_v59  ;;  %v1387_v2 = vld [vmem:[%s4969_s9 + $0x22a0] sm:$0xff]  ;;  %v1412_v7 = vld [vmem:[%s4969_s9 + $0x2368] sm:$0xff] }
 0x1cc   : > { %3896 = vmatprep.subr.bf16.mxu1 %v3895_v13  ;;  %v1294_v13 = vld [vmem:[%s4969_s9 + $0x1fb8] sm:$0xff]  ;;  %v3917_v16 = vpack.c.bf16 %v1281_v10, %v1269_v8  ;;  %v1401_v6 = vld [vmem:[%s4969_s9 + $0x2310] sm:$0xff]  ;;  %v1424_v8 = vld [vmem:[%s4969_s9 + $0x23c8] sm:$0xff] }
 0x1cd   : > { %v1426_v10 = vld [vmem:[%s4969_s9 + $0x23d8] sm:$0xff]  ;;  %v4549_v59 = vld [vmem:[#allocation2 + $0x50] sm:$0xff] }
 0x1ce   : > { %3706 = vmatpush1.bf16.msra.mxu0 %v3705_v19  ;;  %v1303_v19 = vld [vmem:[%s4969_s9 + $0x2000] sm:$0xff]  ;;  %v362_v60 = vld [vmem:[%s4969_s9 + $0x298] sm:$0xff] }
 0x1cf   : > { %3898 = vmatpush1.bf16.msra.mxu1 %v3897_v20  ;;  %3708 = vmatprep.subr.bf16.mxu0 %v3707_v21  ;;  %v1293_v20 = vld [vmem:[%s4969_s9 + $0x1fb0] sm:$0xff]  ;;  %v3919_v21 = vpack.c.bf16 %v1306_v14, %v1294_v13  ;;  %v3729_v27 = vpack.c.bf16 %v1303_v19, %v1291_v18  ;;  %v3747_v13 = vpack.c.bf16 %v1424_v8, %v1412_v7  ;;  %v1411_v14 = vld [vmem:[%s4969_s9 + $0x2360] sm:$0xff]  ;;  %v288_v19 = vld [vmem:[%s4969_s9 + $0x48] sm:$0xff] }
 0x1d0   : > { %3900 = vmatprep.subr.bf16.mxu1 %v3899_v25  ;;  %v1318_v25 = vld [vmem:[%s4969_s9 + $0x2078] sm:$0xff]  ;;  %v3921_v28 = vpack.c.bf16 %v1305_v22, %v1293_v20  ;;  %v1425_v18 = vld [vmem:[%s4969_s9 + $0x23d0] sm:$0xff]  ;;  %v300_v20 = vld [vmem:[%s4969_s9 + $0xa8] sm:$0xff] }
 0x1d1   : > { %v302_v22 = vld [vmem:[%s4969_s9 + $0xb8] sm:$0xff]  ;;  %v384_v7 = vld [vmem:[%s4969_s9 + $0x348] sm:$0xff] }
 0x1d2   : > { %3710 = vmatpush1.bf16.msra.mxu0 %v3709_v31  ;;  %v1327_v31 = vld [vmem:[%s4969_s9 + $0x20c0] sm:$0xff]  ;;  %v396_v8 = vld [vmem:[%s4969_s9 + $0x3a8] sm:$0xff] }
 0x1d3   : > { %3902 = vmatpush1.bf16.msra.mxu1 %v3901_v32  ;;  %3712 = vmatprep.subr.bf16.mxu0 %v3711_v33  ;;  %v1317_v32 = vld [vmem:[%s4969_s9 + $0x2070] sm:$0xff]  ;;  %v3923_v33 = vpack.c.bf16 %v1330_v26, %v1318_v25  ;;  %v3733_v39 = vpack.c.bf16 %v1327_v31, %v1315_v30  ;;  %v3943_v25 = vpack.c.bf16 %v300_v20, %v288_v19  ;;  %v287_v26 = vld [vmem:[%s4969_s9 + $0x40] sm:$0xff]  ;;  %v312_v31 = vld [vmem:[%s4969_s9 + $0x108] sm:$0xff] }
 0x1d4   : > { %3904 = vmatprep.subr.bf16.mxu1 %v3903_v37  ;;  %v1342_v37 = vld [vmem:[%s4969_s9 + $0x2138] sm:$0xff]  ;;  %v3925_v40 = vpack.c.bf16 %v1329_v34, %v1317_v32  ;;  %v301_v30 = vld [vmem:[%s4969_s9 + $0xb0] sm:$0xff]  ;;  %v324_v32 = vld [vmem:[%s4969_s9 + $0x168] sm:$0xff] }
 0x1d5   : > { %v314_v34 = vld [vmem:[%s4969_s9 + $0x118] sm:$0xff]  ;;  %v397_v20 = vld [vmem:[%s4969_s9 + $0x3b0] sm:$0xff] }
 0x1d6   : > { %3714 = vmatpush1.bf16.msra.mxu0 %v3713_v43  ;;  %v1351_v43 = vld [vmem:[%s4969_s9 + $0x2180] sm:$0xff] }
 0x1d7   : > { %3906 = vmatpush1.bf16.msra.mxu1 %v3905_v44  ;;  %3716 = vmatprep.subr.bf16.mxu0 %v3715_v45  ;;  %v1341_v44 = vld [vmem:[%s4969_s9 + $0x2130] sm:$0xff]  ;;  %v3927_v45 = vpack.c.bf16 %v1354_v38, %v1342_v37  ;;  %v3737_v51 = vpack.c.bf16 %v1351_v43, %v1339_v42  ;;  %v311_v37 = vld [vmem:[%s4969_s9 + $0x100] sm:$0xff]  ;;  %v336_v42 = vld [vmem:[%s4969_s9 + $0x1c8] sm:$0xff] }
 0x1d8   : > { %3908 = vmatprep.subr.bf16.mxu1 %v3907_v49  ;;  %v1366_v49 = vld [vmem:[%s4969_s9 + $0x21f8] sm:$0xff]  ;;  %v3929_v52 = vpack.c.bf16 %v1353_v46, %v1341_v44  ;;  %v323_v38 = vld [vmem:[%s4969_s9 + $0x160] sm:$0xff]  ;;  %v348_v43 = vld [vmem:[%s4969_s9 + $0x228] sm:$0xff] }
 0x1d9   : > { %v4547_v44 = vld [vmem:[#allocation2 + $0x20] sm:$0xff]  ;;  %v338_v46 = vld [vmem:[%s4969_s9 + $0x1d8] sm:$0xff]  ;;  %v3949_v48 = vpack.c.bf16 %v323_v38, %v311_v37  ;;  %v421_v37 = vld [vmem:[%s4969_s9 + $0x470] sm:$0xff] }
 0x1da   : > { %3718 = vmatpush1.bf16.msra.mxu0 %v3717_v55  ;;  %v1375_v55 = vld [vmem:[%s4969_s9 + $0x2240] sm:$0xff]  ;;  %v432_v38 = vld [vmem:[%s4969_s9 + $0x4c8] sm:$0xff] }
 0x1db   : > { %3910 = vmatpush1.bf16.msra.mxu1 %v3909_v56  ;;  %3720 = vmatprep.subr.bf16.mxu0 %v3719_v57  ;;  %v1365_v56 = vld [vmem:[%s4969_s9 + $0x21f0] sm:$0xff]  ;;  %v3931_v57 = vpack.c.bf16 %v1378_v50, %v1366_v49  ;;  %v3741_v63 = vpack.c.bf16 %v1375_v55, %v1363_v54  ;;  %v4548_v49 = vld [vmem:[#allocation2 + $0x58] sm:$0xff]  ;;  %v4143_v55 = vpack.c.bf16 %v350_v47, %v338_v46 }
 0x1dc   : > { %3912 = vmatprep.subr.bf16.mxu1 %v3911_v61  ;;  %v1390_v61 = vld [vmem:[%s4969_s9 + $0x22b8] sm:$0xff]  ;;  %v3933_v0 = vpack.c.bf16 %v1377_v58, %v1365_v56  ;;  %v337_v54 = vld [vmem:[%s4969_s9 + $0x1d0] sm:$0xff]  ;;  %v372_v58 = vld [vmem:[%s4969_s9 + $0x2e8] sm:$0xff] }
 0x1dd   : > { %v349_v56 = vld [vmem:[%s4969_s9 + $0x230] sm:$0xff] }
 0x1de   : > { %3722 = vmatpush1.bf16.msra.mxu0 %v3721_v3  ;;  %v1399_v3 = vld [vmem:[%s4969_s9 + $0x2300] sm:$0xff] }
 0x1df   : > { %3914 = vmatpush1.bf16.msra.mxu1 %v3913_v4  ;;  %3724 = vmatprep.subr.bf16.mxu0 %v3723_v5  ;;  %v1389_v4 = vld [vmem:[%s4969_s9 + $0x22b0] sm:$0xff]  ;;  %v3935_v5 = vpack.c.bf16 %v1402_v62, %v1390_v61  ;;  %v3745_v11 = vpack.c.bf16 %v1399_v3, %v1387_v2  ;;  %v374_v61 = vld [vmem:[%s4969_s9 + $0x2f8] sm:$0xff]  ;;  %v1435_v62 = vlaneseq  ;;  %v359_v2 = vld [vmem:[%s4969_s9 + $0x280] sm:$0xff] }
 0x1e0   : > { %3916 = vmatprep.subr.bf16.mxu1 %v3915_v9  ;;  %v1414_v9 = vld [vmem:[%s4969_s9 + $0x2378] sm:$0xff]  ;;  %v3937_v12 = vpack.c.bf16 %v1401_v6, %v1389_v4  ;;  %v371_v3 = vld [vmem:[%s4969_s9 + $0x2e0] sm:$0xff]  ;;  %v361_v4 = vld [vmem:[%s4969_s9 + $0x290] sm:$0xff] }
 0x1e1   : > { %v373_v6 = vld [vmem:[%s4969_s9 + $0x2f0] sm:$0xff] }
 0x1e2   : > { %3726 = vmatpush1.bf16.msra.mxu0 %v3725_v15  ;;  %v1423_v15 = vld [vmem:[%s4969_s9 + $0x23c0] sm:$0xff] }
 0x1e3   : > { %3918 = vmatpush1.bf16.msra.mxu1 %v3917_v16  ;;  %3728 = vmatprep.subr.bf16.mxu0 %v3727_v17  ;;  %v1413_v16 = vld [vmem:[%s4969_s9 + $0x2370] sm:$0xff]  ;;  %v3939_v17 = vpack.c.bf16 %v1426_v10, %v1414_v9  ;;  %v3749_v23 = vpack.c.bf16 %v1423_v15, %v1411_v14  ;;  %v4550_v9 = vld [vmem:[#allocation2 + $0x8] sm:$0xff]  ;;  %v386_v10 = vld [vmem:[%s4969_s9 + $0x358] sm:$0xff]  ;;  %v4149_v14 = vpack.c.bf16 %v373_v6, %v361_v4 }
 0x1e4   : > { %3920 = vmatprep.subr.bf16.mxu1 %v3919_v21  ;;  %v290_v21 = vld [vmem:[%s4969_s9 + $0x58] sm:$0xff]  ;;  %v3941_v24 = vpack.c.bf16 %v1425_v18, %v1413_v16  ;;  %v3959_v15 = vpack.c.bf16 %v396_v8, %v384_v7  ;;  %v383_v16 = vld [vmem:[%s4969_s9 + $0x340] sm:$0xff]  ;;  %v385_v18 = vld [vmem:[%s4969_s9 + $0x350] sm:$0xff] }
 0x1e5   : > { %v457_v8 = vld [vmem:[%s4969_s9 + $0x590] sm:$0xff] }
 0x1e6   : > { %3730 = vmatpush1.bf16.msra.mxu0 %v3729_v27  ;;  %v299_v27 = vld [vmem:[%s4969_s9 + $0xa0] sm:$0xff] }
 0x1e7   : > { %3922 = vmatpush1.bf16.msra.mxu1 %v3921_v28  ;;  %3732 = vmatprep.subr.bf16.mxu0 %v3731_v29  ;;  %v4135_v28 = vpack.c.bf16 %v302_v22, %v290_v21  ;;  %v289_v29 = vld [vmem:[%s4969_s9 + $0x50] sm:$0xff]  ;;  %v408_v21 = vld [vmem:[%s4969_s9 + $0x408] sm:$0xff] }
 0x1e8   : > { %3924 = vmatprep.subr.bf16.mxu1 %v3923_v33  ;;  %v3945_v33 = vpack.c.bf16 %v299_v27, %v287_v26  ;;  %v4137_v36 = vpack.c.bf16 %v301_v30, %v289_v29  ;;  %v420_v22 = vld [vmem:[%s4969_s9 + $0x468] sm:$0xff]  ;;  %v4153_v30 = vpack.c.bf16 %v397_v20, %v385_v18  ;;  %v482_v20 = vld [vmem:[%s4969_s9 + $0x658] sm:$0xff] }
 0x1e9   : > { %v1431_v27 = vld [vmem:[%s5793_s30] sm:$0xff] }
 0x1ea   : > { %3734 = vmatpush1.bf16.msra.mxu0 %v3733_v39  ;;  %v313_v39 = vld [vmem:[%s4969_s9 + $0x110] sm:$0xff] }
 0x1eb   : > { %3926 = vmatpush1.bf16.msra.mxu1 %v3925_v40  ;;  %3736 = vmatprep.subr.bf16.mxu0 %v3735_v41  ;;  %v3947_v40 = vpack.c.bf16 %v324_v32, %v312_v31  ;;  %v325_v41 = vld [vmem:[%s4969_s9 + $0x170] sm:$0xff]  ;;  %v3963_v32 = vpack.c.bf16 %v420_v22, %v408_v21  ;;  %v494_v21 = vld [vmem:[%s4969_s9 + $0x6b8] sm:$0xff] }
 0x1ec   : > { %3928 = vmatprep.subr.bf16.mxu1 %v3927_v45  ;;  %v4139_v45 = vpack.c.bf16 %v326_v35, %v314_v34  ;;  %v4141_v50 = vpack.c.bf16 %v325_v41, %v313_v39  ;;  %v419_v34 = vld [vmem:[%s4969_s9 + $0x460] sm:$0xff]  ;;  %v409_v35 = vld [vmem:[%s4969_s9 + $0x410] sm:$0xff]  ;;  %v444_v39 = vld [vmem:[%s4969_s9 + $0x528] sm:$0xff] }
 0x1ed   : > { %v434_v41 = vld [vmem:[%s4969_s9 + $0x4d8] sm:$0xff]  ;;  %v4157_v47 = vpack.c.bf16 %v421_v37, %v409_v35  ;;  %v491_v35 = vld [vmem:[%s4969_s9 + $0x6a0] sm:$0xff] }
 0x1ee   : > { %3738 = vmatpush1.bf16.msra.mxu0 %v3737_v51  ;;  %v3951_v51 = vpack.c.bf16 %v348_v43, %v336_v42  ;;  %v446_v42 = vld [vmem:[%s4969_s9 + $0x538] sm:$0xff] }
 0x1ef   : > { %3930 = vmatpush1.bf16.msra.mxu1 %v3929_v52  ;;  %3740 = vmatprep.subr.bf16.mxu0 %v3739_v53  ;;  %v335_v52 = vld [vmem:[%s4969_s9 + $0x1c0] sm:$0xff] }
 0x1f0   : > { %3932 = vmatprep.subr.bf16.mxu1 %v3931_v57  ;;  %v347_v53 = vld [vmem:[%s4969_s9 + $0x220] sm:$0xff]  ;;  %v360_v57 = vld [vmem:[%s4969_s9 + $0x288] sm:$0xff] }
 0x1f2   : > { %3742 = vmatpush1.bf16.msra.mxu0 %v3741_v63  ;;  %v3953_v63 = vpack.c.bf16 %v347_v53, %v335_v52  ;;  %v4159_v53 = vpack.c.bf16 %v446_v42, %v434_v41  ;;  %v516_v41 = vld [vmem:[%s4969_s9 + $0x768] sm:$0xff] }
 0x1f3   : > { %3934 = vmatpush1.bf16.msra.mxu1 %v3933_v0  ;;  %3744 = vmatprep.subr.bf16.mxu0 %v3743_v1  ;;  %v4145_v0 = vpack.c.bf16 %v349_v56, %v337_v54  ;;  %v3955_v1 = vpack.c.bf16 %v372_v58, %v360_v57  ;;  %v445_v54 = vld [vmem:[%s4969_s9 + $0x530] sm:$0xff]  ;;  %v468_v56 = vld [vmem:[%s4969_s9 + $0x5e8] sm:$0xff] }
 0x1f4   : > { %3936 = vmatprep.subr.bf16.mxu1 %v3935_v5  ;;  %v4147_v5 = vpack.c.bf16 %v374_v61, %v362_v60  ;;  %v458_v60 = vld [vmem:[%s4969_s9 + $0x598] sm:$0xff] }
 0x1f5   : > { %v470_v61 = vld [vmem:[%s4969_s9 + $0x5f8] sm:$0xff] }
 0x1f6   : > { %3746 = vmatpush1.bf16.msra.mxu0 %v3745_v11  ;;  %v398_v11 = vld [vmem:[%s4969_s9 + $0x3b8] sm:$0xff] }
 0x1f7   : > { %3938 = vmatpush1.bf16.msra.mxu1 %v3937_v12  ;;  %3748 = vmatprep.subr.bf16.mxu0 %v3747_v13  ;;  %v5780_v12 = vshrl.u32 %v1435_v62, 7  ;;  %v3957_v13 = vpack.c.bf16 %v371_v3, %v359_v2  ;;  %v4151_v19 = vpack.c.bf16 %v398_v11, %v386_v10  ;;  %v455_v2 = vld [vmem:[%s4969_s9 + $0x580] sm:$0xff] }
 0x1f8   : > { %3940 = vmatprep.subr.bf16.mxu1 %v3939_v17  ;;  %v395_v17 = vld [vmem:[%s4969_s9 + $0x3a0] sm:$0xff] }
 0x1f9   : > { %v3961_v26 = vpack.c.bf16 %v395_v17, %v383_v16  ;;  %v1441_v29 = vsub.s32 1, %v5780_v12  ;;  %v1449_v31 = vsub.s32 3, %v5780_v12  ;;  %v467_v3 = vld [vmem:[%s4969_s9 + $0x5e0] sm:$0xff] }
 0x1fa   : > { %3750 = vmatpush1.bf16.msra.mxu0 %v3749_v23  ;;  %v1437_v23 = vsub.s32 0, %v5780_v12 }
 0x1fb   : > { %3942 = vmatpush1.bf16.msra.mxu1 %v3941_v24  ;;  %3944 = vmatprep.subr.bf16.mxu0 %v3943_v25  ;;  %v410_v24 = vld [vmem:[%s4969_s9 + $0x418] sm:$0xff]  ;;  %v1450_v46 = vrot.slane %v1431_v27, %v1449_v31 }
 0x1fc   : > { %4136 = vmatprep.subr.bf16.mxu1 %v4135_v28  ;;  %v422_v25 = vld [vmem:[%s4969_s9 + $0x478] sm:$0xff]  ;;  %v1445_v28 = vsub.s32 2, %v5780_v12 }
 0x1fd   : > { %2176 = vmatmul.mubr.f32.vlgmr.msra.gmra.mrb[4].mxu0 %v4547_v44 }
 0x1fe   : > { %2407 = vmatmul.mubr.f32.vlgmr.msra.gmra.mrb[4].mxu1 %v4547_v44  ;;  %3946 = vmatpush1.bf16.msra.mxu0 %v3945_v33  ;;  %v407_v33 = vld [vmem:[%s4969_s9 + $0x400] sm:$0xff]  ;;  %v1446_v43 = vrot.slane %v1431_v27, %v1445_v28  ;;  %v1442_v44 = vrot.slane %v1431_v27, %v1441_v29 }
 0x1ff   : > { %4138 = vmatpush1.bf16.msra.mxu1 %v4137_v36  ;;  %2181 = vmatprep.mubr.f32.mxu0 %v4548_v49  ;;  %v4155_v36 = vpack.c.bf16 %v422_v25, %v410_v24 }
 0x200   : > { %2412 = vmatprep.mubr.f32.mxu1 %v4548_v49  ;;  %3948 = vmatprep.subr.bf16.mxu0 %v3947_v40  ;;  %v1438_v40 = vrot.slane %v1431_v27, %v1437_v23  ;;  %v431_v49 = vld [vmem:[%s4969_s9 + $0x4c0] sm:$0xff] }
 0x201   : > { %2182 = vmatmul.mubr.f32.gmra.mrb[6].mxu0 %v4549_v59  ;;  %4140 = vmatprep.subr.bf16.mxu1 %v4139_v45  ;;  %v3965_v45 = vpack.c.bf16 %v419_v34, %v407_v33  ;;  %v479_v34 = vld [vmem:[%s4969_s9 + $0x640] sm:$0xff] }
 0x202   : > { %2413 = vmatmul.mubr.f32.gmra.mrb[6].mxu1 %v4549_v59  ;;  %3950 = vmatpush1.bf16.msra.mxu0 %v3949_v48  ;;  %v3967_v48 = vpack.c.bf16 %v444_v39, %v432_v38  ;;  %v4167_v38 = vpack.c.bf16 %v494_v21, %v482_v20  ;;  %v493_v39 = vld [vmem:[%s4969_s9 + $0x6b0] sm:$0xff] }
 0x203   : > { %4142 = vmatpush1.bf16.msra.mxu1 %v4141_v50  ;;  %3952 = vmatprep.subr.bf16.mxu0 %v3951_v51  ;;  %v443_v50 = vld [vmem:[%s4969_s9 + $0x520] sm:$0xff]  ;;  %v433_v51 = vld [vmem:[%s4969_s9 + $0x4d0] sm:$0xff] }
 0x204   : > { %4144 = vmatprep.subr.bf16.mxu1 %v4143_v55  ;;  %2483 = vmatprep.mubr.f32.mxu0 %v4550_v9  ;;  %v456_v55 = vld [vmem:[%s4969_s9 + $0x588] sm:$0xff]  ;;  %v4161_v6 = vpack.c.bf16 %v445_v54, %v433_v51  ;;  %v515_v51 = vld [vmem:[%s4969_s9 + $0x760] sm:$0xff]  ;;  %v517_v54 = vld [vmem:[%s4969_s9 + $0x770] sm:$0xff] }
 0x205   : > { %2714 = vmatprep.mubr.f32.mxu1 %v4550_v9  ;;  %v3971_v7 = vpack.c.bf16 %v468_v56, %v456_v55  ;;  %v469_v9 = vld [vmem:[%s4969_s9 + $0x5f0] sm:$0xff]  ;;  %v528_v55 = vld [vmem:[%s4969_s9 + $0x7c8] sm:$0xff] }
 0x206   : > { %3954 = vmatpush1.bf16.msra.mxu0 %v3953_v63  ;;  %v4165_v27 = vpack.c.bf16 %v469_v9, %v457_v8  ;;  %v540_v56 = vld [vmem:[%s4969_s9 + $0x828] sm:$0xff] }
 0x207   : > { %4146 = vmatpush1.bf16.msra.mxu1 %v4145_v0  ;;  %3956 = vmatprep.subr.bf16.mxu0 %v3955_v1  ;;  %v3969_v1 = vpack.c.bf16 %v443_v50, %v431_v49  ;;  %v503_v50 = vld [vmem:[%s4969_s9 + $0x700] sm:$0xff] }
 0x208   : > { %4148 = vmatprep.subr.bf16.mxu1 %v4147_v5 }
 0x20a   : > { %3958 = vmatpush1.bf16.msra.mxu0 %v3957_v13  ;;  %v4163_v13 = vpack.c.bf16 %v470_v61, %v458_v60  ;;  %v3981_v60 = vpack.c.bf16 %v515_v51, %v503_v50  ;;  %v527_v61 = vld [vmem:[%s4969_s9 + $0x7c0] sm:$0xff] }
 0x20b   : > { %4150 = vmatpush1.bf16.msra.mxu1 %v4149_v14  ;;  %3960 = vmatprep.subr.bf16.mxu0 %v3959_v15  ;;  %v480_v14 = vld [vmem:[%s4969_s9 + $0x648] sm:$0xff] }
 0x20c   : > { %4152 = vmatprep.subr.bf16.mxu1 %v4151_v19  ;;  %v492_v15 = vld [vmem:[%s4969_s9 + $0x6a8] sm:$0xff]  ;;  %v3973_v19 = vpack.c.bf16 %v467_v3, %v455_v2  ;;  %v3983_v3 = vpack.c.bf16 %v540_v56, %v528_v55 }
 0x20d   : > { %v3975_v33 = vpack.c.bf16 %v492_v15, %v480_v14 }
 0x20e   : > { %3962 = vmatpush1.bf16.msra.mxu0 %v3961_v26 }
 0x20f   : > { %4154 = vmatpush1.bf16.msra.mxu1 %v4153_v30  ;;  %3964 = vmatprep.subr.bf16.mxu0 %v3963_v32 }
 0x210   : > { %v1715_v52 = vpop.f32.mrb[0].mxu0  ;;  %4156 = vmatprep.subr.bf16.mxu1 %v4155_v36  ;;  %v481_v36 = vld [vmem:[%s4969_s9 + $0x650] sm:$0xff] }
 0x211   : > { %v5821_v57 = vadd.f32 %v1715_v52, %v1438_v40  ;;  %v1946_v58 = vpop.f32.mrb[0].mxu1  ;;  %v1717_v59 = vpop.f32.mrb[1].mxu0  ;;  %v505_v52 = vld [vmem:[%s4969_s9 + $0x710] sm:$0xff] }
 0x212   : > { %v5825_v62 = vadd.f32 %v1946_v58, %v1446_v43  ;;  %v5827_v63 = vadd.f32 %v1717_v59, %v1442_v44  ;;  %v1948_v0 = vpop.f32.mrb[1].mxu1  ;;  %3966 = vmatpush1.bf16.msra.mxu0 %v3965_v45  ;;  %v518_v45 = vld [vmem:[%s4969_s9 + $0x778] sm:$0xff]  ;;  %v4173_v2 = vpack.c.bf16 %v517_v54, %v505_v52 }
 0x213   : > { %v2905_v4 = vmul.f32 0.70710677, %v5821_v57  ;;  %v5832_v5 = vadd.f32 %v1948_v0, %v1450_v46  ;;  %4158 = vmatpush1.bf16.msra.mxu1 %v4157_v47  ;;  %3968 = vmatprep.subr.bf16.mxu0 %v3967_v48  ;;  %v3977_v47 = vpack.c.bf16 %v491_v35, %v479_v34  ;;  %v4169_v48 = vpack.c.bf16 %v493_v39, %v481_v36  ;;  %v530_v58 = vld [vmem:[%s4969_s9 + $0x7d8] sm:$0xff]  ;;  %v539_v0 = vld [vmem:[%s4969_s9 + $0x820] sm:$0xff] }
 0x214   : > { %v2907_v10 = vmul.f32 0.70710677, %v5825_v62  ;;  %v2906_v11 = vmul.f32 0.70710677, %v5827_v63  ;;  %4160 = vmatprep.subr.bf16.mxu1 %v4159_v53  ;;  %v1721_v17 = vpop.f32.mrb[2].mxu0  ;;  %v542_v59 = vld [vmem:[%s4969_s9 + $0x838] sm:$0xff] }
 0x215   : > { %4490 = verf.f32 %v2905_v4  ;;  %v2908_v16 = vmul.f32 0.70710677, %v5832_v5  ;;  %v1952_v18 = vpop.f32.mrb[2].mxu1  ;;  %v5843_v22 = vadd.f32 %v1721_v17, %v1438_v40  ;;  %v1723_v25 = vpop.f32.mrb[3].mxu0  ;;  %v504_v40 = vld [vmem:[%s4969_s9 + $0x708] sm:$0xff]  ;;  %v529_v4 = vld [vmem:[%s4969_s9 + $0x7d0] sm:$0xff]  ;;  %v3985_v17 = vpack.c.bf16 %v539_v0, %v527_v61 }
 0x216   : > { %4492 = verf.f32 %v2907_v10  ;;  %v5845_v24 = vadd.f32 %v1952_v18, %v1446_v43  ;;  %v1954_v26 = vpop.f32.mrb[3].mxu1  ;;  %3970 = vmatpush1.bf16.msra.mxu0 %v3969_v1  ;;  %v5847_v30 = vadd.f32 %v1723_v25, %v1442_v44  ;;  %v506_v44 = vld [vmem:[%s4969_s9 + $0x718] sm:$0xff]  ;;  %v3979_v49 = vpack.c.bf16 %v516_v41, %v504_v40  ;;  %v563_v36 = vld [vmem:[%s4969_s9 + $0x8e0] sm:$0xff]  ;;  %v576_v40 = vld [vmem:[%s4969_s9 + $0x948] sm:$0xff] }
 0x217   : > { %4494 = verf.f32 %v2906_v11  ;;  %v5849_v32 = vadd.f32 %v1954_v26, %v1450_v46  ;;  %4162 = vmatpush1.bf16.msra.mxu1 %v4161_v6  ;;  %3972 = vmatprep.subr.bf16.mxu0 %v3971_v7  ;;  %v2917_v37 = vmul.f32 0.70710677, %v5843_v22  ;;  %v4171_v53 = vpack.c.bf16 %v518_v45, %v506_v44  ;;  %v541_v6 = vld [vmem:[%s4969_s9 + $0x830] sm:$0xff]  ;;  %v552_v11 = vld [vmem:[%s4969_s9 + $0x888] sm:$0xff]  ;;  %v554_v18 = vld [vmem:[%s4969_s9 + $0x898] sm:$0xff] }
 0x218   : > { %4496 = verf.f32 %v2908_v16  ;;  %4164 = vmatprep.subr.bf16.mxu1 %v4163_v13  ;;  %v2919_v42 = vmul.f32 0.70710677, %v5845_v24  ;;  %v2918_v43 = vmul.f32 0.70710677, %v5847_v30  ;;  %v2881_v8 = vmul.f32 0.5, %v5821_v57  ;;  %v564_v13 = vld [vmem:[%s4969_s9 + $0x8e8] sm:$0xff] }
 0x219   : > { %4498 = verf.f32 %v2917_v37  ;;  %v2920_v46 = vmul.f32 0.70710677, %v5849_v32  ;;  %v4175_v10 = vpack.c.bf16 %v542_v59, %v530_v58  ;;  %v2883_v15 = vmul.f32 0.5, %v5825_v62  ;;  %v553_v37 = vld [vmem:[%s4969_s9 + $0x890] sm:$0xff]  ;;  %v588_v41 = vld [vmem:[%s4969_s9 + $0x9a8] sm:$0xff]  ;;  %v587_v58 = vld [vmem:[%s4969_s9 + $0x9a0] sm:$0xff] }
 0x21a   : > { %3974 = vmatpush1.bf16.msra.mxu0 %v3973_v19  ;;  %4500 = verf.f32 %v2919_v42  ;;  %v566_v19 = vld [vmem:[%s4969_s9 + $0x8f8] sm:$0xff]  ;;  %v2882_v57 = vmul.f32 0.5, %v5827_v63  ;;  %v4177_v26 = vpack.c.bf16 %v541_v6, %v529_v4  ;;  %v2884_v62 = vmul.f32 0.5, %v5832_v5  ;;  %v577_v59 = vld [vmem:[%s4969_s9 + $0x950] sm:$0xff] }
 0x21b   : > { %4166 = vmatpush1.bf16.msra.mxu1 %v4165_v27  ;;  %3976 = vmatprep.subr.bf16.mxu0 %v3975_v33  ;;  %4502 = verf.f32 %v2918_v43  ;;  %v551_v27 = vld [vmem:[%s4969_s9 + $0x880] sm:$0xff]  ;;  %v3987_v35 = vpack.c.bf16 %v564_v13, %v552_v11  ;;  %v4179_v5 = vpack.c.bf16 %v566_v19, %v554_v18  ;;  %v2893_v44 = vmul.f32 0.5, %v5843_v22  ;;  %v602_v6 = vld [vmem:[%s4969_s9 + $0xa18] sm:$0xff]  ;;  %v636_v18 = vld [vmem:[%s4969_s9 + $0xb28] sm:$0xff] }
 0x21c   : > { %4168 = vmatprep.subr.bf16.mxu1 %v4167_v38  ;;  %4504 = verf.f32 %v2920_v46  ;;  %v565_v38 = vld [vmem:[%s4969_s9 + $0x8f0] sm:$0xff]  ;;  %v578_v46 = vld [vmem:[%s4969_s9 + $0x958] sm:$0xff]  ;;  %v3989_v51 = vpack.c.bf16 %v563_v36, %v551_v27  ;;  %v2894_v22 = vmul.f32 0.5, %v5847_v30  ;;  %v3991_v56 = vpack.c.bf16 %v588_v41, %v576_v40  ;;  %v600_v30 = vld [vmem:[%s4969_s9 + $0xa08] sm:$0xff] }
 0x21d   : > { %v4181_v52 = vpack.c.bf16 %v565_v38, %v553_v37  ;;  %v2896_v61 = vmul.f32 0.5, %v5849_v32  ;;  %v599_v11 = vld [vmem:[%s4969_s9 + $0xa00] sm:$0xff]  ;;  %v626_v19 = vld [vmem:[%s4969_s9 + $0xad8] sm:$0xff]  ;;  %v660_v36 = vld [vmem:[%s4969_s9 + $0xbe8] sm:$0xff] }
 0x21e   : > { %3978 = vmatpush1.bf16.msra.mxu0 %v3977_v47  ;;  %v590_v47 = vld [vmem:[%s4969_s9 + $0x9b8] sm:$0xff]  ;;  %v611_v13 = vld [vmem:[%s4969_s9 + $0xa60] sm:$0xff] }
 0x21f   : > { %v4491_v1 = vpop.eup %4490  ;;  %4170 = vmatpush1.bf16.msra.mxu1 %v4169_v48  ;;  %3980 = vmatprep.subr.bf16.mxu0 %v3979_v49  ;;  %v2895_v49 = vmul.f32 0.5, %v5845_v24  ;;  %v575_v24 = vld [vmem:[%s4969_s9 + $0x940] sm:$0xff]  ;;  %v650_v37 = vld [vmem:[%s4969_s9 + $0xb98] sm:$0xff] }
 0x220   : > { %v4493_v7 = vpop.eup %4492  ;;  %v2953_v9 = vadd.f32 1.0, %v4491_v1  ;;  %4172 = vmatprep.subr.bf16.mxu1 %v4171_v53  ;;  %v4183_v1 = vpack.c.bf16 %v590_v47, %v578_v46  ;;  %v3993_v32 = vpack.c.bf16 %v587_v58, %v575_v24  ;;  %v635_v27 = vld [vmem:[%s4969_s9 + $0xb20] sm:$0xff]  ;;  %v662_v38 = vld [vmem:[%s4969_s9 + $0xbf8] sm:$0xff]  ;;  %v684_v46 = vld [vmem:[%s4969_s9 + $0xca8] sm:$0xff] }
 0x221   : > { %v4495_v14 = vpop.eup %4494  ;;  %v2955_v16 = vadd.f32 1.0, %v4493_v7  ;;  %v614_v7 = vld [vmem:[%s4969_s9 + $0xa78] sm:$0xff]  ;;  %v647_v40 = vld [vmem:[%s4969_s9 + $0xb80] sm:$0xff]  ;;  %v708_v24 = vld [vmem:[%s4969_s9 + $0xd68] sm:$0xff] }
 0x222   : > { %v4497_v20 = vpop.eup %4496  ;;  %v2977_v21 = vmul.f32 %v2953_v9, %v2881_v8  ;;  %v2954_v25 = vadd.f32 1.0, %v4495_v14  ;;  %3982 = vmatpush1.bf16.msra.mxu0 %v3981_v60  ;;  %v601_v14 = vld [vmem:[%s4969_s9 + $0xa10] sm:$0xff]  ;;  %v659_v41 = vld [vmem:[%s4969_s9 + $0xbe0] sm:$0xff]  ;;  %v674_v47 = vld [vmem:[%s4969_s9 + $0xc58] sm:$0xff] }
 0x223   : > { %v2979_v33 = vmul.f32 %v2955_v16, %v2883_v15  ;;  %v2956_v34 = vadd.f32 1.0, %v4497_v20  ;;  %4174 = vmatpush1.bf16.msra.mxu1 %v4173_v2  ;;  %3984 = vmatprep.subr.bf16.mxu0 %v3983_v3  ;;  %v4499_v39 = vpop.eup %4498  ;;  %v589_v2 = vld [vmem:[%s4969_s9 + $0x9b0] sm:$0xff]  ;;  %v612_v3 = vld [vmem:[%s4969_s9 + $0xa68] sm:$0xff]  ;;  %v4187_v15 = vpack.c.bf16 %v614_v7, %v602_v6  ;;  %v638_v20 = vld [vmem:[%s4969_s9 + $0xb38] sm:$0xff] }
 0x224   : > { %3001 = vst [vmem:[%s5890_s8] sm:$0xff] %v2977_v21  ;;  %v2978_v63 = vmul.f32 %v2954_v25, %v2882_v57  ;;  %4176 = vmatprep.subr.bf16.mxu1 %v4175_v10  ;;  %v4501_v42 = vpop.eup %4500  ;;  %v2965_v45 = vadd.f32 1.0, %v4499_v39  ;;  %v4185_v9 = vpack.c.bf16 %v589_v2, %v577_v59  ;;  %v3995_v10 = vpack.c.bf16 %v612_v3, %v600_v30  ;;  %v613_v16 = vld [vmem:[%s4969_s9 + $0xa70] sm:$0xff]  ;;  %v698_v58 = vld [vmem:[%s4969_s9 + $0xd18] sm:$0xff]  ;;  %v707_v2 = vld [vmem:[%s4969_s9 + $0xd60] sm:$0xff] }
 0x225   : > { %3003 = vst [vmem:[%s5890_s8 + $0x10] sm:$0xff] %v2979_v33  ;;  %v2980_v43 = vmul.f32 %v2956_v34, %v2884_v62  ;;  %v4503_v48 = vpop.eup %4502  ;;  %v2967_v50 = vadd.f32 1.0, %v4501_v42  ;;  %v3997_v21 = vpack.c.bf16 %v611_v13, %v599_v11  ;;  %v4189_v57 = vpack.c.bf16 %v613_v16, %v601_v14  ;;  %v625_v33 = vld [vmem:[%s4969_s9 + $0xad0] sm:$0xff]  ;;  %v710_v59 = vld [vmem:[%s4969_s9 + $0xd78] sm:$0xff]  ;;  %v720_v6 = vld [vmem:[%s4969_s9 + $0xdc8] sm:$0xff] }
 0x226   : > { %3002 = vst [vmem:[%s5890_s8 + $0x8] sm:$0xff] %v2978_v63  ;;  %3986 = vmatpush1.bf16.msra.mxu0 %v3985_v17  ;;  %v4505_v53 = vpop.eup %4504  ;;  %v2989_v54 = vmul.f32 %v2965_v45, %v2893_v44  ;;  %v2966_v55 = vadd.f32 1.0, %v4503_v48  ;;  %v624_v17 = vld [vmem:[%s4969_s9 + $0xac8] sm:$0xff]  ;;  %v4191_v62 = vpack.c.bf16 %v638_v20, %v626_v19  ;;  %v637_v34 = vld [vmem:[%s4969_s9 + $0xb30] sm:$0xff]  ;;  %v686_v48 = vld [vmem:[%s4969_s9 + $0xcb8] sm:$0xff]  ;;  %v4203_v3 = vpack.c.bf16 %v710_v59, %v698_v58 }
 0x227   : > { %3004 = vst [vmem:[%s5890_s8 + $0x18] sm:$0xff] %v2980_v43  ;;  %4178 = vmatpush1.bf16.msra.mxu1 %v4177_v26  ;;  %3988 = vmatprep.subr.bf16.mxu0 %v3987_v35  ;;  %v2991_v60 = vmul.f32 %v2967_v50, %v2895_v49  ;;  %v2968_v0 = vadd.f32 1.0, %v4505_v53  ;;  %v3999_v25 = vpack.c.bf16 %v636_v18, %v624_v17  ;;  %v623_v26 = vld [vmem:[%s4969_s9 + $0xac0] sm:$0xff]  ;;  %v648_v35 = vld [vmem:[%s4969_s9 + $0xb88] sm:$0xff]  ;;  %v649_v42 = vld [vmem:[%s4969_s9 + $0xb90] sm:$0xff] }
 0x228   : > { %4180 = vmatprep.subr.bf16.mxu1 %v4179_v5  ;;  %3013 = vst [vmem:[%s5890_s8 + $0x60] sm:$0xff] %v2989_v54  ;;  %v2990_v4 = vmul.f32 %v2966_v55, %v2894_v22  ;;  %v4001_v39 = vpack.c.bf16 %v635_v27, %v623_v26  ;;  %v4193_v63 = vpack.c.bf16 %v637_v34, %v625_v33  ;;  %v661_v44 = vld [vmem:[%s4969_s9 + $0xbf0] sm:$0xff]  ;;  %v672_v45 = vld [vmem:[%s4969_s9 + $0xc48] sm:$0xff]  ;;  %v683_v53 = vld [vmem:[%s4969_s9 + $0xca0] sm:$0xff] }
 0x229   : > { %3015 = vst [vmem:[%s5890_s8 + $0x70] sm:$0xff] %v2991_v60  ;;  %v2992_v8 = vmul.f32 %v2968_v0, %v2896_v61  ;;  %v4003_v5 = vpack.c.bf16 %v660_v36, %v648_v35  ;;  %v4195_v43 = vpack.c.bf16 %v662_v38, %v650_v37  ;;  %v4005_v49 = vpack.c.bf16 %v659_v41, %v647_v40  ;;  %v673_v54 = vld [vmem:[%s4969_s9 + $0xc50] sm:$0xff]  ;;  %v732_v7 = vld [vmem:[%s4969_s9 + $0xe28] sm:$0xff]  ;;  %v719_v14 = vld [vmem:[%s4969_s9 + $0xdc0] sm:$0xff] }
 0x22a   : > { %3990 = vmatpush1.bf16.msra.mxu0 %v3989_v51  ;;  %3014 = vst [vmem:[%s5890_s8 + $0x68] sm:$0xff] %v2990_v4  ;;  %v4197_v50 = vpack.c.bf16 %v661_v44, %v649_v42  ;;  %v4007_v51 = vpack.c.bf16 %v684_v46, %v672_v45  ;;  %v4199_v22 = vpack.c.bf16 %v686_v48, %v674_v47  ;;  %v685_v55 = vld [vmem:[%s4969_s9 + $0xcb0] sm:$0xff]  ;;  %v744_v19 = vld [vmem:[%s4969_s9 + $0xe88] sm:$0xff]  ;;  %v743_v34 = vld [vmem:[%s4969_s9 + $0xe80] sm:$0xff] }
 0x22b   : > { %4182 = vmatpush1.bf16.msra.mxu1 %v4181_v52  ;;  %3992 = vmatprep.subr.bf16.mxu0 %v3991_v56  ;;  %3016 = vst [vmem:[%s5890_s8 + $0x78] sm:$0xff] %v2992_v8  ;;  %v671_v52 = vld [vmem:[%s4969_s9 + $0xc40] sm:$0xff]  ;;  %v696_v56 = vld [vmem:[%s4969_s9 + $0xd08] sm:$0xff]  ;;  %v4201_v61 = vpack.c.bf16 %v685_v55, %v673_v54  ;;  %v697_v30 = vld [vmem:[%s4969_s9 + $0xd10] sm:$0xff]  ;;  %v4015_v13 = vpack.c.bf16 %v732_v7, %v720_v6 }
 0x22c   : > { %4184 = vmatprep.subr.bf16.mxu1 %v4183_v1  ;;  %v4009_v60 = vpack.c.bf16 %v683_v53, %v671_v52  ;;  %v4011_v0 = vpack.c.bf16 %v708_v24, %v696_v56  ;;  %v695_v1 = vld [vmem:[%s4969_s9 + $0xd00] sm:$0xff]  ;;  %v709_v4 = vld [vmem:[%s4969_s9 + $0xd70] sm:$0xff]  ;;  %v756_v20 = vld [vmem:[%s4969_s9 + $0xee8] sm:$0xff] }
 0x22d   : > { %v4551_v8 = vld [vmem:[#allocation2] sm:$0xff]  ;;  %v4205_v11 = vpack.c.bf16 %v709_v4, %v697_v30  ;;  %v721_v16 = vld [vmem:[%s4969_s9 + $0xdd0] sm:$0xff]  ;;  %v770_v40 = vld [vmem:[%s4969_s9 + $0xf58] sm:$0xff] }
 0x22e   : > { %3994 = vmatpush1.bf16.msra.mxu0 %v3993_v32  ;;  %v722_v32 = vld [vmem:[%s4969_s9 + $0xdd8] sm:$0xff]  ;;  %v733_v18 = vld [vmem:[%s4969_s9 + $0xe30] sm:$0xff]  ;;  %v755_v35 = vld [vmem:[%s4969_s9 + $0xee0] sm:$0xff] }
 0x22f   : > { %4186 = vmatpush1.bf16.msra.mxu1 %v4185_v9  ;;  %3996 = vmatprep.subr.bf16.mxu0 %v3995_v10  ;;  %v734_v9 = vld [vmem:[%s4969_s9 + $0xe38] sm:$0xff]  ;;  %v4013_v10 = vpack.c.bf16 %v707_v2, %v695_v1  ;;  %v4553_v26 = vld [vmem:[#allocation2 + $0x30] sm:$0xff]  ;;  %v4209_v33 = vpack.c.bf16 %v733_v18, %v721_v16  ;;  %v4021_v42 = vpack.c.bf16 %v755_v35, %v743_v34  ;;  %v767_v45 = vld [vmem:[%s4969_s9 + $0xf40] sm:$0xff] }
 0x230   : > { %4188 = vmatprep.subr.bf16.mxu1 %v4187_v15  ;;  %v731_v15 = vld [vmem:[%s4969_s9 + $0xe20] sm:$0xff]  ;;  %v4207_v17 = vpack.c.bf16 %v734_v9, %v722_v32  ;;  %v745_v36 = vld [vmem:[%s4969_s9 + $0xe90] sm:$0xff]  ;;  %v782_v41 = vld [vmem:[%s4969_s9 + $0xfb8] sm:$0xff] }
 0x231   : > { %v4017_v27 = vpack.c.bf16 %v731_v15, %v719_v14  ;;  %v757_v38 = vld [vmem:[%s4969_s9 + $0xef0] sm:$0xff]  ;;  %v779_v46 = vld [vmem:[%s4969_s9 + $0xfa0] sm:$0xff]  ;;  %v4215_v48 = vpack.c.bf16 %v782_v41, %v770_v40  ;;  %v794_v52 = vld [vmem:[%s4969_s9 + $0x1018] sm:$0xff] }
 0x232   : > { %3998 = vmatpush1.bf16.msra.mxu0 %v3997_v21  ;;  %v4552_v21 = vld [vmem:[#allocation2 + $0x38] sm:$0xff]  ;;  %v769_v47 = vld [vmem:[%s4969_s9 + $0xf50] sm:$0xff]  ;;  %v4025_v54 = vpack.c.bf16 %v779_v46, %v767_v45  ;;  %v791_v56 = vld [vmem:[%s4969_s9 + $0x1000] sm:$0xff] }
 0x233   : > { %4190 = vmatpush1.bf16.msra.mxu1 %v4189_v57  ;;  %4000 = vmatprep.subr.bf16.mxu0 %v3999_v25  ;;  %v746_v57 = vld [vmem:[%s4969_s9 + $0xe98] sm:$0xff]  ;;  %v803_v24 = vld [vmem:[%s4969_s9 + $0x1060] sm:$0xff]  ;;  %v793_v58 = vld [vmem:[%s4969_s9 + $0x1010] sm:$0xff] }
 0x234   : > { %4192 = vmatprep.subr.bf16.mxu1 %v4191_v62  ;;  %v758_v25 = vld [vmem:[%s4969_s9 + $0xef8] sm:$0xff]  ;;  %v4019_v62 = vpack.c.bf16 %v756_v20, %v744_v19  ;;  %v4029_v30 = vpack.c.bf16 %v803_v24, %v791_v56  ;;  %v815_v6 = vld [vmem:[%s4969_s9 + $0x10c0] sm:$0xff]  ;;  %v829_v9 = vld [vmem:[%s4969_s9 + $0x1130] sm:$0xff] }
 0x235   : > { %v4211_v37 = vpack.c.bf16 %v758_v25, %v746_v57  ;;  %v806_v53 = vld [vmem:[%s4969_s9 + $0x1078] sm:$0xff]  ;;  %v827_v7 = vld [vmem:[%s4969_s9 + $0x1120] sm:$0xff]  ;;  %v841_v20 = vld [vmem:[%s4969_s9 + $0x1190] sm:$0xff] }
 0x236   : > { %4002 = vmatpush1.bf16.msra.mxu0 %v4001_v39  ;;  %v768_v39 = vld [vmem:[%s4969_s9 + $0xf48] sm:$0xff]  ;;  %v4219_v59 = vpack.c.bf16 %v806_v53, %v794_v52  ;;  %v818_v1 = vld [vmem:[%s4969_s9 + $0x10d8] sm:$0xff]  ;;  %v4033_v15 = vpack.c.bf16 %v827_v7, %v815_v6  ;;  %v839_v18 = vld [vmem:[%s4969_s9 + $0x1180] sm:$0xff] }
 0x237   : > { %4194 = vmatpush1.bf16.msra.mxu1 %v4193_v63  ;;  %4004 = vmatprep.subr.bf16.mxu0 %v4003_v5  ;;  %v780_v63 = vld [vmem:[%s4969_s9 + $0xfa8] sm:$0xff]  ;;  %v4554_v5 = vld [vmem:[#allocation2 + $0x18] sm:$0xff]  ;;  %v851_v19 = vld [vmem:[%s4969_s9 + $0x11e0] sm:$0xff] }
 0x238   : > { %4196 = vmatprep.subr.bf16.mxu1 %v4195_v43  ;;  %v4213_v43 = vpack.c.bf16 %v757_v38, %v745_v36  ;;  %v4023_v44 = vpack.c.bf16 %v780_v63, %v768_v39  ;;  %v830_v2 = vld [vmem:[%s4969_s9 + $0x1138] sm:$0xff]  ;;  %v853_v57 = vld [vmem:[%s4969_s9 + $0x11f0] sm:$0xff]  ;;  %v864_v25 = vld [vmem:[%s4969_s9 + $0x1248] sm:$0xff] }
 0x239   : > { %v4223_v32 = vpack.c.bf16 %v830_v2, %v818_v1  ;;  %v854_v14 = vld [vmem:[%s4969_s9 + $0x11f8] sm:$0xff]  ;;  %v4229_v34 = vpack.c.bf16 %v853_v57, %v841_v20  ;;  %v863_v36 = vld [vmem:[%s4969_s9 + $0x1240] sm:$0xff]  ;;  %v865_v38 = vld [vmem:[%s4969_s9 + $0x1250] sm:$0xff] }
 0x23a   : > { %4006 = vmatpush1.bf16.msra.mxu0 %v4005_v49  ;;  %v781_v49 = vld [vmem:[%s4969_s9 + $0xfb0] sm:$0xff]  ;;  %v900_v40 = vld [vmem:[%s4969_s9 + $0x1368] sm:$0xff]  ;;  %v890_v41 = vld [vmem:[%s4969_s9 + $0x1318] sm:$0xff] }
 0x23b   : > { %4198 = vmatpush1.bf16.msra.mxu1 %v4197_v50  ;;  %4008 = vmatprep.subr.bf16.mxu0 %v4007_v51  ;;  %v792_v50 = vld [vmem:[%s4969_s9 + $0x1008] sm:$0xff]  ;;  %v877_v63 = vld [vmem:[%s4969_s9 + $0x12b0] sm:$0xff]  ;;  %v887_v46 = vld [vmem:[%s4969_s9 + $0x1300] sm:$0xff] }
 0x23c   : > { %4200 = vmatprep.subr.bf16.mxu1 %v4199_v22  ;;  %v804_v51 = vld [vmem:[%s4969_s9 + $0x1068] sm:$0xff]  ;;  %v4217_v22 = vpack.c.bf16 %v781_v49, %v769_v47  ;;  %v899_v47 = vld [vmem:[%s4969_s9 + $0x1360] sm:$0xff]  ;;  %v914_v53 = vld [vmem:[%s4969_s9 + $0x13d8] sm:$0xff] }
 0x23d   : > { %2484 = vmatmul.mubr.f32.vlgmr.msra.gmra.mrb[8].mxu0 %v4551_v8  ;;  %v4027_v55 = vpack.c.bf16 %v804_v51, %v792_v50  ;;  %v901_v50 = vld [vmem:[%s4969_s9 + $0x1370] sm:$0xff]  ;;  %v912_v51 = vld [vmem:[%s4969_s9 + $0x13c8] sm:$0xff]  ;;  %v911_v24 = vld [vmem:[%s4969_s9 + $0x13c0] sm:$0xff] }
 0x23e   : > { %4010 = vmatpush1.bf16.msra.mxu0 %v4009_v60  ;;  %2715 = vmatmul.mubr.f32.vlgmr.msra.gmra.mrb[8].mxu1 %v4551_v8  ;;  %v805_v60 = vld [vmem:[%s4969_s9 + $0x1070] sm:$0xff]  ;;  %v924_v52 = vld [vmem:[%s4969_s9 + $0x1428] sm:$0xff]  ;;  %v938_v2 = vld [vmem:[%s4969_s9 + $0x1498] sm:$0xff] }
 0x23f   : > { %4202 = vmatpush1.bf16.msra.mxu1 %v4201_v61  ;;  %4012 = vmatprep.subr.bf16.mxu0 %v4011_v0  ;;  %v816_v61 = vld [vmem:[%s4969_s9 + $0x10c8] sm:$0xff]  ;;  %v817_v8 = vld [vmem:[%s4969_s9 + $0x10d0] sm:$0xff]  ;;  %v4047_v56 = vpack.c.bf16 %v924_v52, %v912_v51  ;;  %v935_v7 = vld [vmem:[%s4969_s9 + $0x1480] sm:$0xff] }
 0x240   : > { %4204 = vmatprep.subr.bf16.mxu1 %v4203_v3  ;;  %2489 = vmatprep.mubr.f32.mxu0 %v4552_v21  ;;  %v828_v0 = vld [vmem:[%s4969_s9 + $0x1128] sm:$0xff]  ;;  %v4221_v3 = vpack.c.bf16 %v805_v60, %v793_v58  ;;  %v4225_v16 = vpack.c.bf16 %v829_v9, %v817_v8  ;;  %v923_v58 = vld [vmem:[%s4969_s9 + $0x1420] sm:$0xff]  ;;  %v1021_v51 = vld [vmem:[%s4969_s9 + $0x1730] sm:$0xff] }
 0x241   : > { %2720 = vmatprep.mubr.f32.mxu1 %v4552_v21  ;;  %2490 = vmatmul.mubr.f32.gmra.mrb[10].mxu0 %v4553_v26  ;;  %v4031_v4 = vpack.c.bf16 %v828_v0, %v816_v61  ;;  %v925_v61 = vld [vmem:[%s4969_s9 + $0x1430] sm:$0xff]  ;;  %v936_v0 = vld [vmem:[%s4969_s9 + $0x1488] sm:$0xff]  ;;  %v947_v8 = vld [vmem:[%s4969_s9 + $0x14e0] sm:$0xff] }
 0x242   : > { %4014 = vmatpush1.bf16.msra.mxu0 %v4013_v10  ;;  %2721 = vmatmul.mubr.f32.gmra.mrb[10].mxu1 %v4553_v26  ;;  %v840_v10 = vld [vmem:[%s4969_s9 + $0x1188] sm:$0xff]  ;;  %v971_v20 = vld [vmem:[%s4969_s9 + $0x15a0] sm:$0xff] }
 0x243   : > { %4206 = vmatpush1.bf16.msra.mxu1 %v4205_v11  ;;  %4016 = vmatprep.subr.bf16.mxu0 %v4015_v13  ;;  %v852_v11 = vld [vmem:[%s4969_s9 + $0x11e8] sm:$0xff]  ;;  %v842_v13 = vld [vmem:[%s4969_s9 + $0x1198] sm:$0xff] }
 0x244   : > { %4208 = vmatprep.subr.bf16.mxu1 %v4207_v17  ;;  %2560 = vmatprep.mubr.f32.mxu0 %v4554_v5  ;;  %v4035_v17 = vpack.c.bf16 %v852_v11, %v840_v10  ;;  %v4227_v21 = vpack.c.bf16 %v854_v14, %v842_v13  ;;  %v876_v26 = vld [vmem:[%s4969_s9 + $0x12a8] sm:$0xff]  ;;  %v949_v10 = vld [vmem:[%s4969_s9 + $0x14f0] sm:$0xff]  ;;  %v962_v14 = vld [vmem:[%s4969_s9 + $0x1558] sm:$0xff] }
 0x245   : > { %2791 = vmatprep.mubr.f32.mxu1 %v4554_v5  ;;  %v4039_v35 = vpack.c.bf16 %v876_v26, %v864_v25  ;;  %v888_v5 = vld [vmem:[%s4969_s9 + $0x1308] sm:$0xff]  ;;  %v973_v25 = vld [vmem:[%s4969_s9 + $0x15b0] sm:$0xff] }
 0x246   : > { %4018 = vmatpush1.bf16.msra.mxu0 %v4017_v27  ;;  %v866_v27 = vld [vmem:[%s4969_s9 + $0x1258] sm:$0xff]  ;;  %v4043_v45 = vpack.c.bf16 %v900_v40, %v888_v5  ;;  %v948_v1 = vld [vmem:[%s4969_s9 + $0x14e8] sm:$0xff]  ;;  %v997_v5 = vld [vmem:[%s4969_s9 + $0x1670] sm:$0xff] }
 0x247   : > { %4210 = vmatpush1.bf16.msra.mxu1 %v4209_v33  ;;  %4020 = vmatprep.subr.bf16.mxu0 %v4019_v62  ;;  %v878_v33 = vld [vmem:[%s4969_s9 + $0x12b8] sm:$0xff]  ;;  %v4037_v62 = vpack.c.bf16 %v851_v19, %v839_v18  ;;  %v4051_v6 = vpack.c.bf16 %v948_v1, %v936_v0  ;;  %v960_v11 = vld [vmem:[%s4969_s9 + $0x1548] sm:$0xff]  ;;  %v959_v19 = vld [vmem:[%s4969_s9 + $0x1540] sm:$0xff] }
 0x248   : > { %4212 = vmatprep.subr.bf16.mxu1 %v4211_v37  ;;  %v875_v37 = vld [vmem:[%s4969_s9 + $0x12a0] sm:$0xff]  ;;  %v4231_v39 = vpack.c.bf16 %v878_v33, %v866_v27  ;;  %v972_v13 = vld [vmem:[%s4969_s9 + $0x15a8] sm:$0xff]  ;;  %v986_v33 = vld [vmem:[%s4969_s9 + $0x1618] sm:$0xff] }
 0x249   : > { %v4055_v18 = vpack.c.bf16 %v972_v13, %v960_v11  ;;  %v984_v26 = vld [vmem:[%s4969_s9 + $0x1608] sm:$0xff]  ;;  %v1045_v0 = vld [vmem:[%s4969_s9 + $0x17f0] sm:$0xff] }
 0x24a   : > { %4022 = vmatpush1.bf16.msra.mxu0 %v4021_v42  ;;  %v902_v42 = vld [vmem:[%s4969_s9 + $0x1378] sm:$0xff]  ;;  %v996_v27 = vld [vmem:[%s4969_s9 + $0x1668] sm:$0xff]  ;;  %v1069_v11 = vld [vmem:[%s4969_s9 + $0x18b0] sm:$0xff] }
 0x24b   : > { %4214 = vmatpush1.bf16.msra.mxu1 %v4213_v43  ;;  %4024 = vmatprep.subr.bf16.mxu0 %v4023_v44  ;;  %v4041_v43 = vpack.c.bf16 %v875_v37, %v863_v36  ;;  %v4233_v44 = vpack.c.bf16 %v877_v63, %v865_v38  ;;  %v4235_v49 = vpack.c.bf16 %v902_v42, %v890_v41  ;;  %v983_v37 = vld [vmem:[%s4969_s9 + $0x1600] sm:$0xff]  ;;  %v1008_v40 = vld [vmem:[%s4969_s9 + $0x16c8] sm:$0xff]  ;;  %v1010_v42 = vld [vmem:[%s4969_s9 + $0x16d8] sm:$0xff] }
 0x24c   : > { %4216 = vmatprep.subr.bf16.mxu1 %v4215_v48  ;;  %v889_v48 = vld [vmem:[%s4969_s9 + $0x1310] sm:$0xff]  ;;  %v4059_v36 = vpack.c.bf16 %v996_v27, %v984_v26  ;;  %v995_v38 = vld [vmem:[%s4969_s9 + $0x1660] sm:$0xff]  ;;  %v1020_v41 = vld [vmem:[%s4969_s9 + $0x1728] sm:$0xff] }
 0x24d   : > { %v1032_v52 = vld [vmem:[%s4969_s9 + $0x1788] sm:$0xff]  ;;  %v1093_v26 = vld [vmem:[%s4969_s9 + $0x1970] sm:$0xff] }
 0x24e   : > { %4026 = vmatpush1.bf16.msra.mxu0 %v4025_v54  ;;  %v926_v54 = vld [vmem:[%s4969_s9 + $0x1438] sm:$0xff]  ;;  %v1056_v1 = vld [vmem:[%s4969_s9 + $0x1848] sm:$0xff] }
 0x24f   : > { %4218 = vmatpush1.bf16.msra.mxu1 %v4217_v22  ;;  %4028 = vmatprep.subr.bf16.mxu0 %v4027_v55  ;;  %v4045_v22 = vpack.c.bf16 %v899_v47, %v887_v46  ;;  %v4237_v55 = vpack.c.bf16 %v901_v50, %v889_v48  ;;  %v4239_v60 = vpack.c.bf16 %v926_v54, %v914_v53  ;;  %v1007_v47 = vld [vmem:[%s4969_s9 + $0x16c0] sm:$0xff]  ;;  %v1044_v53 = vld [vmem:[%s4969_s9 + $0x17e8] sm:$0xff]  ;;  %v1034_v54 = vld [vmem:[%s4969_s9 + $0x1798] sm:$0xff] }
 0x250   : > { %4220 = vmatprep.subr.bf16.mxu1 %v4219_v59  ;;  %v913_v59 = vld [vmem:[%s4969_s9 + $0x13d0] sm:$0xff]  ;;  %v4063_v46 = vpack.c.bf16 %v1020_v41, %v1008_v40  ;;  %v1019_v48 = vld [vmem:[%s4969_s9 + $0x1720] sm:$0xff]  ;;  %v1080_v13 = vld [vmem:[%s4969_s9 + $0x1908] sm:$0xff] }
 0x251   : > { %v1104_v27 = vld [vmem:[%s4969_s9 + $0x19c8] sm:$0xff]  ;;  %v1117_v41 = vld [vmem:[%s4969_s9 + $0x1a30] sm:$0xff] }
 0x252   : > { %4030 = vmatpush1.bf16.msra.mxu0 %v4029_v30  ;;  %v950_v30 = vld [vmem:[%s4969_s9 + $0x14f8] sm:$0xff] }
 0x253   : > { %4222 = vmatpush1.bf16.msra.mxu1 %v4221_v3  ;;  %4032 = vmatprep.subr.bf16.mxu0 %v4031_v4  ;;  %v4049_v3 = vpack.c.bf16 %v923_v58, %v911_v24  ;;  %v4241_v4 = vpack.c.bf16 %v925_v61, %v913_v59  ;;  %v4243_v9 = vpack.c.bf16 %v950_v30, %v938_v2  ;;  %v1031_v58 = vld [vmem:[%s4969_s9 + $0x1780] sm:$0xff]  ;;  %v1068_v2 = vld [vmem:[%s4969_s9 + $0x18a8] sm:$0xff]  ;;  %v1058_v30 = vld [vmem:[%s4969_s9 + $0x1858] sm:$0xff] }
 0x254   : > { %4224 = vmatprep.subr.bf16.mxu1 %v4223_v32  ;;  %v937_v32 = vld [vmem:[%s4969_s9 + $0x1490] sm:$0xff]  ;;  %v4067_v24 = vpack.c.bf16 %v1044_v53, %v1032_v52  ;;  %v1043_v59 = vld [vmem:[%s4969_s9 + $0x17e0] sm:$0xff] }
 0x255   : > { %v1139_v52 = vld [vmem:[%s4969_s9 + $0x1ae0] sm:$0xff]  ;;  %v1129_v53 = vld [vmem:[%s4969_s9 + $0x1a90] sm:$0xff] }
 0x256   : > { %4034 = vmatpush1.bf16.msra.mxu0 %v4033_v15  ;;  %v974_v15 = vld [vmem:[%s4969_s9 + $0x15b8] sm:$0xff] }
 0x257   : > { %4226 = vmatpush1.bf16.msra.mxu1 %v4225_v16  ;;  %4036 = vmatprep.subr.bf16.mxu0 %v4035_v17  ;;  %v4053_v16 = vpack.c.bf16 %v947_v8, %v935_v7  ;;  %v4245_v17 = vpack.c.bf16 %v949_v10, %v937_v32  ;;  %v4247_v57 = vpack.c.bf16 %v974_v15, %v962_v14  ;;  %v1055_v8 = vld [vmem:[%s4969_s9 + $0x1840] sm:$0xff]  ;;  %v1092_v14 = vld [vmem:[%s4969_s9 + $0x1968] sm:$0xff]  ;;  %v1082_v15 = vld [vmem:[%s4969_s9 + $0x1918] sm:$0xff] }
 0x258   : > { %4228 = vmatprep.subr.bf16.mxu1 %v4227_v21  ;;  %v961_v21 = vld [vmem:[%s4969_s9 + $0x1550] sm:$0xff]  ;;  %v4071_v7 = vpack.c.bf16 %v1068_v2, %v1056_v1  ;;  %v1067_v32 = vld [vmem:[%s4969_s9 + $0x18a0] sm:$0xff] }
 0x259   : > { %v1151_v1 = vld [vmem:[%s4969_s9 + $0x1b40] sm:$0xff] }
 0x25a   : > { %4038 = vmatpush1.bf16.msra.mxu0 %v4037_v62  ;;  %v998_v62 = vld [vmem:[%s4969_s9 + $0x1678] sm:$0xff]  ;;  %v1163_v2 = vld [vmem:[%s4969_s9 + $0x1ba0] sm:$0xff] }
 0x25b   : > { %4230 = vmatpush1.bf16.msra.mxu1 %v4229_v34  ;;  %4040 = vmatprep.subr.bf16.mxu0 %v4039_v35  ;;  %v4057_v34 = vpack.c.bf16 %v971_v20, %v959_v19  ;;  %v4249_v35 = vpack.c.bf16 %v973_v25, %v961_v21  ;;  %v4251_v63 = vpack.c.bf16 %v998_v62, %v986_v33  ;;  %v1079_v20 = vld [vmem:[%s4969_s9 + $0x1900] sm:$0xff]  ;;  %v1116_v33 = vld [vmem:[%s4969_s9 + $0x1a28] sm:$0xff]  ;;  %v4555_v62 = vld [vmem:[#allocation2 + $0x10] sm:$0xff] }
 0x25c   : > { %4232 = vmatprep.subr.bf16.mxu1 %v4231_v39  ;;  %v985_v39 = vld [vmem:[%s4969_s9 + $0x1610] sm:$0xff]  ;;  %v4075_v19 = vpack.c.bf16 %v1092_v14, %v1080_v13  ;;  %v1091_v21 = vld [vmem:[%s4969_s9 + $0x1960] sm:$0xff] }
 0x25d   : > { %v1175_v13 = vld [vmem:[%s4969_s9 + $0x1c00] sm:$0xff] }
 0x25e   : > { %4042 = vmatpush1.bf16.msra.mxu0 %v4041_v43  ;;  %v1022_v43 = vld [vmem:[%s4969_s9 + $0x1738] sm:$0xff]  ;;  %v1187_v14 = vld [vmem:[%s4969_s9 + $0x1c60] sm:$0xff] }
 0x25f   : > { %4234 = vmatpush1.bf16.msra.mxu1 %v4233_v44  ;;  %4044 = vmatprep.subr.bf16.mxu0 %v4043_v45  ;;  %v4061_v44 = vpack.c.bf16 %v995_v38, %v983_v37  ;;  %v4253_v45 = vpack.c.bf16 %v997_v5, %v985_v39  ;;  %v4255_v50 = vpack.c.bf16 %v1022_v43, %v1010_v42  ;;  %v1103_v39 = vld [vmem:[%s4969_s9 + $0x19c0] sm:$0xff]  ;;  %v1105_v5 = vld [vmem:[%s4969_s9 + $0x19d0] sm:$0xff]  ;;  %v1128_v42 = vld [vmem:[%s4969_s9 + $0x1a88] sm:$0xff] }
 0x260   : > { %4236 = vmatprep.subr.bf16.mxu1 %v4235_v49  ;;  %v1009_v49 = vld [vmem:[%s4969_s9 + $0x16d0] sm:$0xff]  ;;  %v4079_v38 = vpack.c.bf16 %v1116_v33, %v1104_v27  ;;  %v1140_v43 = vld [vmem:[%s4969_s9 + $0x1ae8] sm:$0xff]  ;;  %v1199_v27 = vld [vmem:[%s4969_s9 + $0x1cc0] sm:$0xff] }
 0x261   : > { %v1211_v33 = vld [vmem:[%s4969_s9 + $0x1d20] sm:$0xff] }
 0x262   : > { %4046 = vmatpush1.bf16.msra.mxu0 %v4045_v22  ;;  %v1046_v22 = vld [vmem:[%s4969_s9 + $0x17f8] sm:$0xff] }
 0x263   : > { %4238 = vmatpush1.bf16.msra.mxu1 %v4237_v55  ;;  %4048 = vmatprep.subr.bf16.mxu0 %v4047_v56  ;;  %v4065_v55 = vpack.c.bf16 %v1019_v48, %v1007_v47  ;;  %v4257_v56 = vpack.c.bf16 %v1021_v51, %v1009_v49  ;;  %v4259_v61 = vpack.c.bf16 %v1046_v22, %v1034_v54  ;;  %v4557_v47 = vld [vmem:[#allocation2 + $0x40] sm:$0xff]  ;;  %v1141_v22 = vld [vmem:[%s4969_s9 + $0x1af0] sm:$0xff] }
 0x264   : > { %4240 = vmatprep.subr.bf16.mxu1 %v4239_v60  ;;  %v1033_v60 = vld [vmem:[%s4969_s9 + $0x1790] sm:$0xff]  ;;  %v4273_v49 = vpack.c.bf16 %v1117_v41, %v1105_v5  ;;  %v1127_v51 = vld [vmem:[%s4969_s9 + $0x1a80] sm:$0xff] }
 0x265   : > { %v1223_v41 = vld [vmem:[%s4969_s9 + $0x1d80] sm:$0xff] }
 0x266   : > { %4050 = vmatpush1.bf16.msra.mxu0 %v4049_v3  ;;  %v1070_v3 = vld [vmem:[%s4969_s9 + $0x18b8] sm:$0xff] }
 0x267   : > { %4242 = vmatpush1.bf16.msra.mxu1 %v4241_v4  ;;  %4052 = vmatprep.subr.bf16.mxu0 %v4051_v6  ;;  %v4069_v4 = vpack.c.bf16 %v1043_v59, %v1031_v58  ;;  %v4261_v6 = vpack.c.bf16 %v1045_v0, %v1033_v60  ;;  %v4263_v10 = vpack.c.bf16 %v1070_v3, %v1058_v30  ;;  %v1154_v58 = vld [vmem:[%s4969_s9 + $0x1b58] sm:$0xff]  ;;  %v1153_v30 = vld [vmem:[%s4969_s9 + $0x1b50] sm:$0xff] }
 0x268   : > { %4244 = vmatprep.subr.bf16.mxu1 %v4243_v9  ;;  %v1057_v9 = vld [vmem:[%s4969_s9 + $0x1850] sm:$0xff]  ;;  %v1166_v59 = vld [vmem:[%s4969_s9 + $0x1bb8] sm:$0xff]  ;;  %v4085_v60 = vpack.c.bf16 %v1139_v52, %v1127_v51 }
 0x269   : > { %v4279_v3 = vpack.c.bf16 %v1166_v59, %v1154_v58  ;;  %v1284_v58 = vld [vmem:[%s4969_s9 + $0x1f68] sm:$0xff]  ;;  %v1274_v59 = vld [vmem:[%s4969_s9 + $0x1f18] sm:$0xff] }
 0x26a   : > { %4054 = vmatpush1.bf16.msra.mxu0 %v4053_v16  ;;  %v1094_v16 = vld [vmem:[%s4969_s9 + $0x1978] sm:$0xff] }
 0x26b   : > { %4246 = vmatpush1.bf16.msra.mxu1 %v4245_v17  ;;  %4056 = vmatprep.subr.bf16.mxu0 %v4055_v18  ;;  %v4073_v17 = vpack.c.bf16 %v1067_v32, %v1055_v8  ;;  %v4265_v18 = vpack.c.bf16 %v1069_v11, %v1057_v9  ;;  %v4267_v25 = vpack.c.bf16 %v1094_v16, %v1082_v15  ;;  %v1178_v8 = vld [vmem:[%s4969_s9 + $0x1c18] sm:$0xff]  ;;  %v1177_v15 = vld [vmem:[%s4969_s9 + $0x1c10] sm:$0xff] }
 0x26c   : > { %4248 = vmatprep.subr.bf16.mxu1 %v4247_v57  ;;  %v1081_v57 = vld [vmem:[%s4969_s9 + $0x1910] sm:$0xff]  ;;  %v1190_v32 = vld [vmem:[%s4969_s9 + $0x1c78] sm:$0xff]  ;;  %v4089_v9 = vpack.c.bf16 %v1163_v2, %v1151_v1  ;;  %v1271_v2 = vld [vmem:[%s4969_s9 + $0x1f00] sm:$0xff] }
 0x26d   : > { %v4269_v37 = vpack.c.bf16 %v1093_v26, %v1081_v57  ;;  %v4283_v16 = vpack.c.bf16 %v1190_v32, %v1178_v8  ;;  %v4093_v57 = vpack.c.bf16 %v1187_v14, %v1175_v13  ;;  %v1308_v8 = vld [vmem:[%s4969_s9 + $0x2028] sm:$0xff]  ;;  %v1298_v32 = vld [vmem:[%s4969_s9 + $0x1fd8] sm:$0xff]  ;;  %v1295_v14 = vld [vmem:[%s4969_s9 + $0x1fc0] sm:$0xff] }
 0x26e   : > { %4058 = vmatpush1.bf16.msra.mxu0 %v4057_v34  ;;  %v1106_v34 = vld [vmem:[%s4969_s9 + $0x19d8] sm:$0xff] }
 0x26f   : > { %4250 = vmatpush1.bf16.msra.mxu1 %v4249_v35  ;;  %4060 = vmatprep.subr.bf16.mxu0 %v4059_v36  ;;  %v1118_v35 = vld [vmem:[%s4969_s9 + $0x1a38] sm:$0xff]  ;;  %v4077_v36 = vpack.c.bf16 %v1091_v21, %v1079_v20 }
 0x270   : > { %4252 = vmatprep.subr.bf16.mxu1 %v4251_v63  ;;  %v1115_v63 = vld [vmem:[%s4969_s9 + $0x1a20] sm:$0xff]  ;;  %v4271_v40 = vpack.c.bf16 %v1118_v35, %v1106_v34  ;;  %v1202_v20 = vld [vmem:[%s4969_s9 + $0x1cd8] sm:$0xff]  ;;  %v1213_v35 = vld [vmem:[%s4969_s9 + $0x1d30] sm:$0xff] }
 0x271   : > { %v4081_v48 = vpack.c.bf16 %v1115_v63, %v1103_v39  ;;  %v1214_v21 = vld [vmem:[%s4969_s9 + $0x1d38] sm:$0xff]  ;;  %v4097_v63 = vpack.c.bf16 %v1211_v33, %v1199_v27  ;;  %v1319_v33 = vld [vmem:[%s4969_s9 + $0x2080] sm:$0xff] }
 0x272   : > { %4062 = vmatpush1.bf16.msra.mxu0 %v4061_v44  ;;  %v4556_v44 = vld [vmem:[#allocation2 + $0x48] sm:$0xff]  ;;  %v4287_v34 = vpack.c.bf16 %v1214_v21, %v1202_v20  ;;  %v1238_v39 = vld [vmem:[%s4969_s9 + $0x1df8] sm:$0xff] }
 0x273   : > { %4254 = vmatpush1.bf16.msra.mxu1 %v4253_v45  ;;  %4064 = vmatprep.subr.bf16.mxu0 %v4063_v46  ;;  %v1130_v45 = vld [vmem:[%s4969_s9 + $0x1a98] sm:$0xff]  ;;  %v1332_v20 = vld [vmem:[%s4969_s9 + $0x20e8] sm:$0xff] }
 0x274   : > { %4256 = vmatprep.subr.bf16.mxu1 %v4255_v50  ;;  %v1142_v46 = vld [vmem:[%s4969_s9 + $0x1af8] sm:$0xff]  ;;  %v4083_v50 = vpack.c.bf16 %v1140_v43, %v1128_v42  ;;  %v1235_v42 = vld [vmem:[%s4969_s9 + $0x1de0] sm:$0xff]  ;;  %v1225_v43 = vld [vmem:[%s4969_s9 + $0x1d90] sm:$0xff] }
 0x275   : > { %v4275_v54 = vpack.c.bf16 %v1142_v46, %v1130_v45  ;;  %v1237_v45 = vld [vmem:[%s4969_s9 + $0x1df0] sm:$0xff]  ;;  %v1248_v46 = vld [vmem:[%s4969_s9 + $0x1e48] sm:$0xff]  ;;  %v1322_v21 = vld [vmem:[%s4969_s9 + $0x2098] sm:$0xff] }
 0x276   : > { %4066 = vmatpush1.bf16.msra.mxu0 %v4065_v55  ;;  %v1152_v55 = vld [vmem:[%s4969_s9 + $0x1b48] sm:$0xff]  ;;  %v4293_v51 = vpack.c.bf16 %v1237_v45, %v1225_v43  ;;  %v1355_v43 = vld [vmem:[%s4969_s9 + $0x21a0] sm:$0xff] }
 0x277   : > { %4258 = vmatpush1.bf16.msra.mxu1 %v4257_v56  ;;  %4068 = vmatprep.subr.bf16.mxu0 %v4067_v24  ;;  %v1164_v56 = vld [vmem:[%s4969_s9 + $0x1ba8] sm:$0xff] }
 0x278   : > { %4260 = vmatprep.subr.bf16.mxu1 %v4259_v61  ;;  %v4558_v24 = vld [vmem:[#allocation2 + $0x28] sm:$0xff]  ;;  %v4277_v61 = vpack.c.bf16 %v1141_v22, %v1129_v53  ;;  %v4087_v0 = vpack.c.bf16 %v1164_v56, %v1152_v55  ;;  %v1247_v53 = vld [vmem:[%s4969_s9 + $0x1e40] sm:$0xff]  ;;  %v1249_v22 = vld [vmem:[%s4969_s9 + $0x1e50] sm:$0xff] }
 0x279   : > { %v1261_v56 = vld [vmem:[%s4969_s9 + $0x1eb0] sm:$0xff] }
 0x27a   : > { %4070 = vmatpush1.bf16.msra.mxu0 %v4069_v4  ;;  %v1165_v4 = vld [vmem:[%s4969_s9 + $0x1bb0] sm:$0xff] }
 0x27b   : > { %4262 = vmatpush1.bf16.msra.mxu1 %v4261_v6  ;;  %4072 = vmatprep.subr.bf16.mxu0 %v4071_v7  ;;  %v1176_v6 = vld [vmem:[%s4969_s9 + $0x1c08] sm:$0xff] }
 0x27c   : > { %4264 = vmatprep.subr.bf16.mxu1 %v4263_v10  ;;  %v1188_v7 = vld [vmem:[%s4969_s9 + $0x1c68] sm:$0xff]  ;;  %v4281_v10 = vpack.c.bf16 %v1165_v4, %v1153_v30  ;;  %v1283_v30 = vld [vmem:[%s4969_s9 + $0x1f60] sm:$0xff] }
 0x27d   : > { %2561 = vmatmul.mubr.f32.vlgmr.msra.gmra.mrb[8].mxu0 %v4555_v62  ;;  %v4091_v11 = vpack.c.bf16 %v1188_v7, %v1176_v6  ;;  %v1285_v6 = vld [vmem:[%s4969_s9 + $0x1f70] sm:$0xff]  ;;  %v1296_v7 = vld [vmem:[%s4969_s9 + $0x1fc8] sm:$0xff] }
 0x27e   : > { %4074 = vmatpush1.bf16.msra.mxu0 %v4073_v17  ;;  %2792 = vmatmul.mubr.f32.vlgmr.msra.gmra.mrb[8].mxu1 %v4555_v62  ;;  %v1189_v17 = vld [vmem:[%s4969_s9 + $0x1c70] sm:$0xff]  ;;  %v4111_v13 = vpack.c.bf16 %v1308_v8, %v1296_v7  ;;  %v1416_v8 = vld [vmem:[%s4969_s9 + $0x2388] sm:$0xff] }
 0x27f   : > { %4266 = vmatpush1.bf16.msra.mxu1 %v4265_v18  ;;  %4076 = vmatprep.subr.bf16.mxu0 %v4075_v19  ;;  %v1200_v18 = vld [vmem:[%s4969_s9 + $0x1cc8] sm:$0xff]  ;;  %v1201_v62 = vld [vmem:[%s4969_s9 + $0x1cd0] sm:$0xff] }
 0x280   : > { %4268 = vmatprep.subr.bf16.mxu1 %v4267_v25  ;;  %2566 = vmatprep.mubr.f32.mxu0 %v4556_v44  ;;  %v1212_v19 = vld [vmem:[%s4969_s9 + $0x1d28] sm:$0xff]  ;;  %v4285_v25 = vpack.c.bf16 %v1189_v17, %v1177_v15  ;;  %v4289_v5 = vpack.c.bf16 %v1213_v35, %v1201_v62  ;;  %v1307_v15 = vld [vmem:[%s4969_s9 + $0x2020] sm:$0xff]  ;;  %v1405_v7 = vld [vmem:[%s4969_s9 + $0x2330] sm:$0xff] }
 0x281   : > { %2797 = vmatprep.mubr.f32.mxu1 %v4556_v44  ;;  %2567 = vmatmul.mubr.f32.gmra.mrb[10].mxu0 %v4557_v47  ;;  %v4095_v26 = vpack.c.bf16 %v1212_v19, %v1200_v18  ;;  %v1309_v18 = vld [vmem:[%s4969_s9 + $0x2030] sm:$0xff]  ;;  %v1320_v19 = vld [vmem:[%s4969_s9 + $0x2088] sm:$0xff]  ;;  %v1331_v62 = vld [vmem:[%s4969_s9 + $0x20e0] sm:$0xff] }
 0x282   : > { %4078 = vmatpush1.bf16.msra.mxu0 %v4077_v36  ;;  %2798 = vmatmul.mubr.f32.gmra.mrb[10].mxu1 %v4557_v47  ;;  %v1224_v36 = vld [vmem:[%s4969_s9 + $0x1d88] sm:$0xff]  ;;  %v4115_v27 = vpack.c.bf16 %v1332_v20, %v1320_v19  ;;  %v1429_v19 = vld [vmem:[%s4969_s9 + $0x23f0] sm:$0xff] }
 0x283   : > { %4270 = vmatpush1.bf16.msra.mxu1 %v4269_v37  ;;  %4080 = vmatprep.subr.bf16.mxu0 %v4079_v38  ;;  %v1236_v37 = vld [vmem:[%s4969_s9 + $0x1de8] sm:$0xff]  ;;  %v1226_v38 = vld [vmem:[%s4969_s9 + $0x1d98] sm:$0xff] }
 0x284   : > { %4272 = vmatprep.subr.bf16.mxu1 %v4271_v40  ;;  %2637 = vmatprep.mubr.f32.mxu0 %v4558_v24  ;;  %v4099_v40 = vpack.c.bf16 %v1236_v37, %v1224_v36  ;;  %v4291_v44 = vpack.c.bf16 %v1238_v39, %v1226_v38  ;;  %v1260_v47 = vld [vmem:[%s4969_s9 + $0x1ea8] sm:$0xff]  ;;  %v1333_v36 = vld [vmem:[%s4969_s9 + $0x20f0] sm:$0xff]  ;;  %v1346_v39 = vld [vmem:[%s4969_s9 + $0x2158] sm:$0xff] }
 0x285   : > { %2868 = vmatprep.mubr.f32.mxu1 %v4558_v24  ;;  %v4103_v52 = vpack.c.bf16 %v1260_v47, %v1248_v46  ;;  %v1272_v24 = vld [vmem:[%s4969_s9 + $0x1f08] sm:$0xff]  ;;  %v1357_v46 = vld [vmem:[%s4969_s9 + $0x21b0] sm:$0xff] }
 0x286   : > { %4082 = vmatpush1.bf16.msra.mxu0 %v4081_v48  ;;  %v1250_v48 = vld [vmem:[%s4969_s9 + $0x1e58] sm:$0xff]  ;;  %v4107_v1 = vpack.c.bf16 %v1284_v58, %v1272_v24  ;;  %v1344_v37 = vld [vmem:[%s4969_s9 + $0x2148] sm:$0xff]  ;;  %v1381_v24 = vld [vmem:[%s4969_s9 + $0x2270] sm:$0xff] }
 0x287   : > { %4274 = vmatpush1.bf16.msra.mxu1 %v4273_v49  ;;  %4084 = vmatprep.subr.bf16.mxu0 %v4083_v50  ;;  %v1262_v49 = vld [vmem:[%s4969_s9 + $0x1eb8] sm:$0xff]  ;;  %v4101_v50 = vpack.c.bf16 %v1235_v42, %v1223_v41  ;;  %v1356_v38 = vld [vmem:[%s4969_s9 + $0x21a8] sm:$0xff]  ;;  %v1343_v42 = vld [vmem:[%s4969_s9 + $0x2140] sm:$0xff] }
 0x288   : > { %4276 = vmatprep.subr.bf16.mxu1 %v4275_v54  ;;  %v1259_v54 = vld [vmem:[%s4969_s9 + $0x1ea0] sm:$0xff]  ;;  %v4295_v55 = vpack.c.bf16 %v1262_v49, %v1250_v48  ;;  %v4119_v41 = vpack.c.bf16 %v1356_v38, %v1344_v37  ;;  %v1368_v47 = vld [vmem:[%s4969_s9 + $0x2208] sm:$0xff]  ;;  %v1370_v49 = vld [vmem:[%s4969_s9 + $0x2218] sm:$0xff] }
 0x289   : > { %v1380_v48 = vld [vmem:[%s4969_s9 + $0x2268] sm:$0xff] }
 0x28a   : > { %4086 = vmatpush1.bf16.msra.mxu0 %v4085_v60  ;;  %v1286_v60 = vld [vmem:[%s4969_s9 + $0x1f78] sm:$0xff]  ;;  %v1392_v58 = vld [vmem:[%s4969_s9 + $0x22c8] sm:$0xff] }
 0x28b   : > { %4278 = vmatpush1.bf16.msra.mxu1 %v4277_v61  ;;  %4088 = vmatprep.subr.bf16.mxu0 %v4087_v0  ;;  %v4105_v61 = vpack.c.bf16 %v1259_v54, %v1247_v53  ;;  %v4297_v0 = vpack.c.bf16 %v1261_v56, %v1249_v22  ;;  %v4299_v4 = vpack.c.bf16 %v1286_v60, %v1274_v59  ;;  %v1367_v54 = vld [vmem:[%s4969_s9 + $0x2200] sm:$0xff]  ;;  %v1404_v59 = vld [vmem:[%s4969_s9 + $0x2328] sm:$0xff]  ;;  %v1394_v60 = vld [vmem:[%s4969_s9 + $0x22d8] sm:$0xff] }
 0x28c   : > { %4280 = vmatprep.subr.bf16.mxu1 %v4279_v3  ;;  %v1273_v3 = vld [vmem:[%s4969_s9 + $0x1f10] sm:$0xff]  ;;  %v4123_v53 = vpack.c.bf16 %v1380_v48, %v1368_v47  ;;  %v1379_v22 = vld [vmem:[%s4969_s9 + $0x2260] sm:$0xff] }
 0x28e   : > { %4090 = vmatpush1.bf16.msra.mxu0 %v4089_v9  ;;  %v1310_v9 = vld [vmem:[%s4969_s9 + $0x2038] sm:$0xff] }
 0x28f   : > { %4282 = vmatpush1.bf16.msra.mxu1 %v4281_v10  ;;  %4092 = vmatprep.subr.bf16.mxu0 %v4091_v11  ;;  %v4109_v10 = vpack.c.bf16 %v1283_v30, %v1271_v2  ;;  %v4301_v11 = vpack.c.bf16 %v1285_v6, %v1273_v3  ;;  %v4303_v17 = vpack.c.bf16 %v1310_v9, %v1298_v32  ;;  %v1391_v30 = vld [vmem:[%s4969_s9 + $0x22c0] sm:$0xff]  ;;  %v1428_v32 = vld [vmem:[%s4969_s9 + $0x23e8] sm:$0xff]  ;;  %v1418_v9 = vld [vmem:[%s4969_s9 + $0x2398] sm:$0xff] }
 0x290   : > { %4284 = vmatprep.subr.bf16.mxu1 %v4283_v16  ;;  %v1297_v16 = vld [vmem:[%s4969_s9 + $0x1fd0] sm:$0xff]  ;;  %v4127_v2 = vpack.c.bf16 %v1404_v59, %v1392_v58  ;;  %v1403_v3 = vld [vmem:[%s4969_s9 + $0x2320] sm:$0xff] }
 0x292   : > { %4094 = vmatpush1.bf16.msra.mxu0 %v4093_v57  ;;  %v1334_v57 = vld [vmem:[%s4969_s9 + $0x20f8] sm:$0xff] }
 0x293   : > { %4286 = vmatpush1.bf16.msra.mxu1 %v4285_v25  ;;  %4096 = vmatprep.subr.bf16.mxu0 %v4095_v26  ;;  %v4113_v25 = vpack.c.bf16 %v1307_v15, %v1295_v14  ;;  %v4305_v26 = vpack.c.bf16 %v1309_v18, %v1297_v16  ;;  %v4307_v35 = vpack.c.bf16 %v1334_v57, %v1322_v21  ;;  %v1415_v15 = vld [vmem:[%s4969_s9 + $0x2380] sm:$0xff]  ;;  %v1417_v18 = vld [vmem:[%s4969_s9 + $0x2390] sm:$0xff] }
 0x294   : > { %4288 = vmatprep.subr.bf16.mxu1 %v4287_v34  ;;  %v1321_v34 = vld [vmem:[%s4969_s9 + $0x2090] sm:$0xff]  ;;  %v4131_v14 = vpack.c.bf16 %v1428_v32, %v1416_v8  ;;  %v1427_v16 = vld [vmem:[%s4969_s9 + $0x23e0] sm:$0xff]  ;;  %v4325_v21 = vpack.c.bf16 %v1429_v19, %v1417_v18 }
 0x295   : > { %v4133_v20 = vpack.c.bf16 %v1427_v16, %v1415_v15  ;;  %v4559_v57 = vld [vmem:[#allocation2 + $0x20] sm:$0xff] }
 0x296   : > { %4098 = vmatpush1.bf16.msra.mxu0 %v4097_v63  ;;  %v1358_v63 = vld [vmem:[%s4969_s9 + $0x21b8] sm:$0xff] }
 0x297   : > { %4290 = vmatpush1.bf16.msra.mxu1 %v4289_v5  ;;  %4100 = vmatprep.subr.bf16.mxu0 %v4099_v40  ;;  %v4117_v5 = vpack.c.bf16 %v1331_v62, %v1319_v33  ;;  %v4309_v40 = vpack.c.bf16 %v1333_v36, %v1321_v34  ;;  %v4311_v45 = vpack.c.bf16 %v1358_v63, %v1346_v39  ;;  %v1461_v33 = vsub.s32 6, %v5780_v12 }
 0x298   : > { %4292 = vmatprep.subr.bf16.mxu1 %v4291_v44  ;;  %v1345_v44 = vld [vmem:[%s4969_s9 + $0x2150] sm:$0xff]  ;;  %v1457_v62 = vsub.s32 5, %v5780_v12  ;;  %v1465_v34 = vsub.s32 7, %v5780_v12 }
 0x29a   : > { %4102 = vmatpush1.bf16.msra.mxu0 %v4101_v50  ;;  %v1382_v50 = vld [vmem:[%s4969_s9 + $0x2278] sm:$0xff] }
 0x29b   : > { %4294 = vmatpush1.bf16.msra.mxu1 %v4293_v51  ;;  %4104 = vmatprep.subr.bf16.mxu0 %v4103_v52  ;;  %v4121_v51 = vpack.c.bf16 %v1355_v43, %v1343_v42  ;;  %v4313_v52 = vpack.c.bf16 %v1357_v46, %v1345_v44  ;;  %v4315_v56 = vpack.c.bf16 %v1382_v50, %v1370_v49 }
 0x29c   : > { %4296 = vmatprep.subr.bf16.mxu1 %v4295_v55  ;;  %v1369_v55 = vld [vmem:[%s4969_s9 + $0x2210] sm:$0xff] }
 0x29e   : > { %4106 = vmatpush1.bf16.msra.mxu0 %v4105_v61  ;;  %v1406_v61 = vld [vmem:[%s4969_s9 + $0x2338] sm:$0xff] }
 0x29f   : > { %4298 = vmatpush1.bf16.msra.mxu1 %v4297_v0  ;;  %4108 = vmatprep.subr.bf16.mxu0 %v4107_v1  ;;  %v4125_v0 = vpack.c.bf16 %v1379_v22, %v1367_v54  ;;  %v4317_v1 = vpack.c.bf16 %v1381_v24, %v1369_v55  ;;  %v4319_v6 = vpack.c.bf16 %v1406_v61, %v1394_v60 }
 0x2a0   : > { %4300 = vmatprep.subr.bf16.mxu1 %v4299_v4  ;;  %v1393_v4 = vld [vmem:[%s4969_s9 + $0x22d0] sm:$0xff] }
 0x2a2   : > { %4110 = vmatpush1.bf16.msra.mxu0 %v4109_v10  ;;  %v1430_v10 = vld [vmem:[%s4969_s9 + $0x23f8] sm:$0xff] }
 0x2a3   : > { %4302 = vmatpush1.bf16.msra.mxu1 %v4301_v11  ;;  %4112 = vmatprep.subr.bf16.mxu0 %v4111_v13  ;;  %v4129_v11 = vpack.c.bf16 %v1403_v3, %v1391_v30  ;;  %v4321_v13 = vpack.c.bf16 %v1405_v7, %v1393_v4 }
 0x2a4   : > { %4304 = vmatprep.subr.bf16.mxu1 %v4303_v17  ;;  %v4323_v17 = vpack.c.bf16 %v1430_v10, %v1418_v9 }
 0x2a6   : > { %4114 = vmatpush1.bf16.msra.mxu0 %v4113_v25  ;;  %v4560_v25 = vld [vmem:[#allocation2 + $0x58] sm:$0xff] }
 0x2a7   : > { %4306 = vmatpush1.bf16.msra.mxu1 %v4305_v26  ;;  %4116 = vmatprep.subr.bf16.mxu0 %v4115_v27  ;;  %v4561_v26 = vld [vmem:[#allocation2 + $0x50] sm:$0xff]  ;;  %v1453_v27 = vsub.s32 4, %v5780_v12 }
 0x2a8   : > { %4308 = vmatprep.subr.bf16.mxu1 %v4307_v35  ;;  %v4562_v35 = vld [vmem:[%s5793_s30] sm:$0xff] }
 0x2a9   : > { %v1454_v36 = vrot.slane %v4562_v35, %v1453_v27  ;;  %v1462_v37 = vrot.slane %v4562_v35, %v1461_v33  ;;  %v1458_v38 = vrot.slane %v4562_v35, %v1457_v62  ;;  %v1466_v39 = vrot.slane %v4562_v35, %v1465_v34 }
 0x2aa   : > { %4118 = vmatpush1.bf16.msra.mxu0 %v4117_v5 }
 0x2ab   : > { %4310 = vmatpush1.bf16.msra.mxu1 %v4309_v40  ;;  %4120 = vmatprep.subr.bf16.mxu0 %v4119_v41 }
 0x2ac   : > { %4312 = vmatprep.subr.bf16.mxu1 %v4311_v45 }
 0x2ae   : > { %4122 = vmatpush1.bf16.msra.mxu0 %v4121_v51 }
 0x2af   : > { %4314 = vmatpush1.bf16.msra.mxu1 %v4313_v52  ;;  %4124 = vmatprep.subr.bf16.mxu0 %v4123_v53 }
 0x2b0   : > { %4316 = vmatprep.subr.bf16.mxu1 %v4315_v56 }
 0x2b2   : > { %4126 = vmatpush1.bf16.msra.mxu0 %v4125_v0 }
 0x2b3   : > { %4318 = vmatpush1.bf16.msra.mxu1 %v4317_v1  ;;  %4128 = vmatprep.subr.bf16.mxu0 %v4127_v2 }
 0x2b4   : > { %4320 = vmatprep.subr.bf16.mxu1 %v4319_v6 }
 0x2b6   : > { %4130 = vmatpush1.bf16.msra.mxu0 %v4129_v11 }
 0x2b7   : > { %4322 = vmatpush1.bf16.msra.mxu1 %v4321_v13  ;;  %4132 = vmatprep.subr.bf16.mxu0 %v4131_v14 }
 0x2b8   : > { %4324 = vmatprep.subr.bf16.mxu1 %v4323_v17 }
 0x2ba   : > { %4134 = vmatpush1.bf16.msra.mxu0 %v4133_v20 }
 0x2bb   : > { %4326 = vmatpush1.bf16.msra.mxu1 %v4325_v21 }
 0x2bd   : > { %2638 = vmatmul.mubr.f32.vlgmr.msra.gmra.mrb[8].mxu0 %v4559_v57 }
 0x2be   : > { %2869 = vmatmul.mubr.f32.vlgmr.msra.gmra.mrb[8].mxu1 %v4559_v57  ;;  %2643 = vmatprep.mubr.f32.mxu0 %v4560_v25 }
 0x2bf   : > { %2874 = vmatprep.mubr.f32.mxu1 %v4560_v25 }
 0x2c1   : > { %2644 = vmatmul.mubr.f32.gmra.mrb[10].mxu0 %v4561_v26 }
 0x2c2   : > { %2875 = vmatmul.mubr.f32.gmra.mrb[10].mxu1 %v4561_v26 }
 0x2d0   : > { %v2177_v63 = vpop.f32.mrb[4].mxu0 }
 0x2d1   : > { %v4335_v5 = vadd.f32 %v2177_v63, %v1454_v36  ;;  %v2408_v40 = vpop.f32.mrb[4].mxu1  ;;  %v2179_v41 = vpop.f32.mrb[5].mxu0 }
 0x2d2   : > { %v4339_v42 = vadd.f32 %v2408_v40, %v1462_v37  ;;  %v4336_v43 = vadd.f32 %v2179_v41, %v1458_v38  ;;  %v2410_v44 = vpop.f32.mrb[5].mxu1 }
 0x2d3   : > { %v2909_v45 = vmul.f32 0.70710677, %v4335_v5  ;;  %v4340_v46 = vadd.f32 %v2410_v44, %v1466_v39  ;;  %v2885_v1 = vmul.f32 0.5, %v4335_v5 }
 0x2d4   : > { %v2911_v47 = vmul.f32 0.70710677, %v4339_v42  ;;  %v2910_v48 = vmul.f32 0.70710677, %v4336_v43  ;;  %v2183_v50 = vpop.f32.mrb[6].mxu0  ;;  %v2887_v3 = vmul.f32 0.5, %v4339_v42 }
 0x2d5   : > { %4506 = verf.f32 %v2909_v45  ;;  %v2912_v49 = vmul.f32 0.70710677, %v4340_v46  ;;  %v2414_v51 = vpop.f32.mrb[6].mxu1  ;;  %v4337_v52 = vadd.f32 %v2183_v50, %v1454_v36  ;;  %v2185_v54 = vpop.f32.mrb[7].mxu0  ;;  %v2886_v8 = vmul.f32 0.5, %v4336_v43 }
 0x2d6   : > { %4508 = verf.f32 %v2911_v47  ;;  %v4341_v53 = vadd.f32 %v2414_v51, %v1462_v37  ;;  %v2416_v22 = vpop.f32.mrb[7].mxu1  ;;  %v4338_v55 = vadd.f32 %v2185_v54, %v1458_v38  ;;  %v2888_v10 = vmul.f32 0.5, %v4340_v46  ;;  %v1432_v37 = vld [vmem:[%s5793_s30 + $0x8] sm:$0xf] }
 0x2d7   : > { %4510 = verf.f32 %v2910_v48  ;;  %v4342_v56 = vadd.f32 %v2416_v22, %v1466_v39  ;;  %v2921_v24 = vmul.f32 0.70710677, %v4337_v52  ;;  %v2897_v17 = vmul.f32 0.5, %v4337_v52 }
 0x2d8   : > { %4512 = verf.f32 %v2912_v49  ;;  %v2923_v58 = vmul.f32 0.70710677, %v4341_v53  ;;  %v2922_v59 = vmul.f32 0.70710677, %v4338_v55  ;;  %v2899_v20 = vmul.f32 0.5, %v4341_v53 }
 0x2d9   : > { %4514 = verf.f32 %v2921_v24  ;;  %v2924_v60 = vmul.f32 0.70710677, %v4342_v56  ;;  %v2898_v26 = vmul.f32 0.5, %v4338_v55  ;;  %v2900_v62 = vmul.f32 0.5, %v4342_v56 }
 0x2da   : > { %4516 = verf.f32 %v2923_v58  ;;  %v1470_v38 = vrot.slane %v1432_v37, %v1437_v23  ;;  %v1478_v39 = vrot.slane %v1432_v37, %v1445_v28  ;;  %v1474_v63 = vrot.slane %v1432_v37, %v1441_v29 }
 0x2db   : > { %4518 = verf.f32 %v2922_v59  ;;  %v1482_v5 = vrot.slane %v1432_v37, %v1449_v31 }
 0x2dc   : > { %4520 = verf.f32 %v2924_v60 }
 0x2df   : > { %v4507_v61 = vpop.eup %4506 }
 0x2e0   : > { %v4509_v0 = vpop.eup %4508  ;;  %v2957_v2 = vadd.f32 1.0, %v4507_v61 }
 0x2e1   : > { %v4511_v30 = vpop.eup %4510  ;;  %v2959_v4 = vadd.f32 1.0, %v4509_v0 }
 0x2e2   : > { %v4513_v6 = vpop.eup %4512  ;;  %v2981_v7 = vmul.f32 %v2957_v2, %v2885_v1  ;;  %v2958_v32 = vadd.f32 1.0, %v4511_v30 }
 0x2e3   : > { %v2983_v9 = vmul.f32 %v2959_v4, %v2887_v3  ;;  %v2960_v11 = vadd.f32 1.0, %v4513_v6  ;;  %v4515_v13 = vpop.eup %4514 }
 0x2e4   : > { %3005 = vst [vmem:[%s5890_s8 + $0x20] sm:$0xff] %v2981_v7  ;;  %v2982_v14 = vmul.f32 %v2958_v32, %v2886_v8  ;;  %v4517_v15 = vpop.eup %4516  ;;  %v2969_v18 = vadd.f32 1.0, %v4515_v13 }
 0x2e5   : > { %3007 = vst [vmem:[%s5890_s8 + $0x30] sm:$0xff] %v2983_v9  ;;  %v2984_v16 = vmul.f32 %v2960_v11, %v2888_v10  ;;  %v4519_v19 = vpop.eup %4518  ;;  %v2971_v21 = vadd.f32 1.0, %v4517_v15 }
 0x2e6   : > { %3006 = vst [vmem:[%s5890_s8 + $0x28] sm:$0xff] %v2982_v14  ;;  %v4521_v57 = vpop.eup %4520  ;;  %v2993_v25 = vmul.f32 %v2969_v18, %v2897_v17  ;;  %v2970_v27 = vadd.f32 1.0, %v4519_v19 }
 0x2e7   : > { %3008 = vst [vmem:[%s5890_s8 + $0x38] sm:$0xff] %v2984_v16  ;;  %v2995_v33 = vmul.f32 %v2971_v21, %v2899_v20  ;;  %v2972_v34 = vadd.f32 1.0, %v4521_v57 }
 0x2e8   : > { %3017 = vst [vmem:[%s5890_s8 + $0x80] sm:$0xff] %v2993_v25  ;;  %v2994_v35 = vmul.f32 %v2970_v27, %v2898_v26 }
 0x2e9   : > { %3019 = vst [vmem:[%s5890_s8 + $0x90] sm:$0xff] %v2995_v33  ;;  %v2996_v36 = vmul.f32 %v2972_v34, %v2900_v62 }
 0x2ea   : > { %3018 = vst [vmem:[%s5890_s8 + $0x88] sm:$0xff] %v2994_v35 }
 0x2eb   : > { %3020 = vst [vmem:[%s5890_s8 + $0x98] sm:$0xff] %v2996_v36 }
 0x390   : > { %v2639_v40 = vpop.f32.mrb[8].mxu0 }
 0x391   : > { %v4343_v41 = vadd.f32 %v2639_v40, %v1470_v38  ;;  %v2870_v42 = vpop.f32.mrb[8].mxu1  ;;  %v2641_v43 = vpop.f32.mrb[9].mxu0 }
 0x392   : > { %v4347_v44 = vadd.f32 %v2870_v42, %v1478_v39  ;;  %v4344_v45 = vadd.f32 %v2641_v43, %v1474_v63  ;;  %v2872_v46 = vpop.f32.mrb[9].mxu1 }
 0x393   : > { %v2913_v47 = vmul.f32 0.70710677, %v4343_v41  ;;  %v4348_v48 = vadd.f32 %v2872_v46, %v1482_v5  ;;  %v2889_v60 = vmul.f32 0.5, %v4343_v41 }
 0x394   : > { %v2915_v49 = vmul.f32 0.70710677, %v4347_v44  ;;  %v2914_v23 = vmul.f32 0.70710677, %v4344_v45  ;;  %v2645_v28 = vpop.f32.mrb[10].mxu0  ;;  %v2891_v1 = vmul.f32 0.5, %v4347_v44 }
 0x395   : > { %4522 = verf.f32 %v2913_v47  ;;  %v2916_v50 = vmul.f32 0.70710677, %v4348_v48  ;;  %v2876_v51 = vpop.f32.mrb[10].mxu1  ;;  %v4345_v29 = vadd.f32 %v2645_v28, %v1470_v38  ;;  %v2647_v12 = vpop.f32.mrb[11].mxu0  ;;  %v2890_v4 = vmul.f32 0.5, %v4344_v45 }
 0x396   : > { %4524 = verf.f32 %v2915_v49  ;;  %v4349_v52 = vadd.f32 %v2876_v51, %v1478_v39  ;;  %v2878_v31 = vpop.f32.mrb[11].mxu1  ;;  %v4346_v53 = vadd.f32 %v2647_v12, %v1474_v63  ;;  %v2892_v8 = vmul.f32 0.5, %v4348_v48 }
 0x397   : > { %4526 = verf.f32 %v2914_v23  ;;  %v4350_v54 = vadd.f32 %v2878_v31, %v1482_v5  ;;  %v2925_v22 = vmul.f32 0.70710677, %v4345_v29  ;;  %v2901_v14 = vmul.f32 0.5, %v4345_v29 }
 0x398   : > { %4528 = verf.f32 %v2916_v50  ;;  %v2927_v55 = vmul.f32 0.70710677, %v4349_v52  ;;  %v2926_v56 = vmul.f32 0.70710677, %v4346_v53  ;;  %v2903_v17 = vmul.f32 0.5, %v4349_v52 }
 0x399   : > { %4530 = verf.f32 %v2925_v22  ;;  %v2928_v24 = vmul.f32 0.70710677, %v4350_v54  ;;  %v2902_v21 = vmul.f32 0.5, %v4346_v53  ;;  %v2904_v26 = vmul.f32 0.5, %v4350_v54 }
 0x39a   : > { %4532 = verf.f32 %v2927_v55 }
 0x39b   : > { %4534 = verf.f32 %v2926_v56 }
 0x39c   : > { %4536 = verf.f32 %v2928_v24 }
 0x39f   : > { %v4523_v58 = vpop.eup %4522 }
 0x3a0   : > { %v4525_v59 = vpop.eup %4524  ;;  %v2961_v61 = vadd.f32 1.0, %v4523_v58 }
 0x3a1   : > { %v4527_v0 = vpop.eup %4526  ;;  %v2963_v2 = vadd.f32 1.0, %v4525_v59 }
 0x3a2   : > { %v4529_v30 = vpop.eup %4528  ;;  %v2985_v3 = vmul.f32 %v2961_v61, %v2889_v60  ;;  %v2962_v6 = vadd.f32 1.0, %v4527_v0 }
 0x3a3   : > { %v2987_v7 = vmul.f32 %v2963_v2, %v2891_v1  ;;  %v2964_v32 = vadd.f32 1.0, %v4529_v30  ;;  %v4531_v9 = vpop.eup %4530 }
 0x3a4   : > { %3009 = vst [vmem:[%s5890_s8 + $0x40] sm:$0xff] %v2985_v3  ;;  %v2986_v10 = vmul.f32 %v2962_v6, %v2890_v4  ;;  %v4533_v11 = vpop.eup %4532  ;;  %v2973_v15 = vadd.f32 1.0, %v4531_v9 }
 0x3a5   : > { %3011 = vst [vmem:[%s5890_s8 + $0x50] sm:$0xff] %v2987_v7  ;;  %v2988_v13 = vmul.f32 %v2964_v32, %v2892_v8  ;;  %v4535_v16 = vpop.eup %4534  ;;  %v2975_v18 = vadd.f32 1.0, %v4533_v11 }
 0x3a6   : > { %3010 = vst [vmem:[%s5890_s8 + $0x48] sm:$0xff] %v2986_v10  ;;  %v4537_v19 = vpop.eup %4536  ;;  %v2997_v20 = vmul.f32 %v2973_v15, %v2901_v14  ;;  %v2974_v57 = vadd.f32 1.0, %v4535_v16 }
 0x3a7   : > { %3012 = vst [vmem:[%s5890_s8 + $0x58] sm:$0xff] %v2988_v13  ;;  %v2999_v25 = vmul.f32 %v2975_v18, %v2903_v17  ;;  %v2976_v27 = vadd.f32 1.0, %v4537_v19 }
 0x3a8   : > { %3021 = vst [vmem:[%s5890_s8 + $0xa0] sm:$0xff] %v2997_v20  ;;  %v2998_v33 = vmul.f32 %v2974_v57, %v2902_v21 }
 0x3a9   : > { %3023 = vst [vmem:[%s5890_s8 + $0xb0] sm:$0xff] %v2999_v25  ;;  %v3000_v62 = vmul.f32 %v2976_v27, %v2904_v26 }
 0x3aa   : > { %3022 = vst [vmem:[%s5890_s8 + $0xa8] sm:$0xff] %v2998_v33 }
 0x3ab   : > { %3024 = vst [vmem:[%s5890_s8 + $0xb8] sm:$0xff] %v3000_v62 }
 0x3ac   : > { %4664 = shalt.err (!%p4661_p8)
}
 0x3ad   : > { %s4665_s18 = scalar_lea.hbm %s6223_s21, 3072  ;;  %s4669_s6 = scalar_lea.hbm %s6281_s3, 6144 }
 0x3ae   : > { %p4666_p10 = scmp.ne.s32.totalorder %s6223_s21, %s4665_s18  ;;  %p4670_p3 = scmp.lt.u32.totalorder %s6223_s21, %s6281_s3 }
 0x3af   : > { %p4671_p2 = scmp.lt.u32.totalorder %s4669_s6, %s4665_s18  ;;  %p4673_p4 = scmp.lt.u32.totalorder %s4665_s18, %s6223_s21 }
 0x3b0   : > { %p4667_p13 = pnand %p4666_p10, %p6306_p6 }
 0x3b1   : > { %p4672_p11 = por %p4671_p2, %p4670_p3 }
 0x3b2   : > { %p4668_p7 = pneg %p4667_p13 }
 0x3b3   : > { %p4674_p1 = por %p4673_p4, %p4672_p11 }
 0x3b5   : > { %p4675_p12 = pnand %p4674_p1, %p4668_p7 }
 0x3b7   : > { %4678 = shalt.err (!%p4675_p12)
}
 0x3b8   : > { %s4748_s30 = smov 1536   ;;  %s4749_s7 = smov 3072  }
 0x3b9   : > { %s4750_s8 = smov 96  }
 0x3ba   : > { %4412 = dma.vmem_to_hbm [thread:$0]  (%p6306_p6), %s6226_s27, 3072, %s6223_s21, %s3026_s23, %s4748_s30, %s4749_s7, %s4750_s8  }
 0x3bb PF: > { %s3057_s25 = sand.u32 1, %s4717_s12   ;;  %p6307_p0 = scmp.ne.s32.totalorder %s6296_s4, 0 }
 0x3bc   : > { %p6308_p9 = scmp.ge.s32.totalorder %s4737_s17, 2  ;;  %s3058_s15 = scalar_lea.sflag [#allocation4], %s3057_s25 }
 0x3be   : > { %p4426_p5 = pnand %p6308_p9, %p6307_p0 }
 0x3c0   : > { %4712 = dma.done.wait (!%p4426_p5), %s3058_s15, 3072  }
 0x3c1   : > { %4714 = vsyncadd (!%p4426_p5), %s3058_s15, 4294964224  ;;  %s20_s17 = sadd.s32 1, %s4737_s17   ;;  %s6309_s28 = sld [smem:[#allocation12_spill]] }
 0x3c2   : > { %p17_p8 = scmp.ge.s32.totalorder %s20_s17, 4   ;;  %s6310_s12 = smov %s4721_s13 }
 0x3c3   : > { %s6311_s13 = smov %s4725_s14  ;;  %s6312_s14 = smov %s4819_s24 }
 0x3c4   : > { %s6313_s15 = smov %s4733_s16  ;;  %19 = sbr.rel (!%p17_p8) target bundleno = 9 (0x9), region = 94 }
 0x3c7   : > { %s6314_s16 = smov %s6309_s28 }
 0x3cb   :  { %3063 = vsyncpa [#allocation3], 1 }
 0x3cc   :  { %3065 = vsyncpa [#allocation3 + $0x1], 1 }
 0x3cd   :  { %3066 = vsyncpa [#allocation6], 1 }
 0x3ce   :  { %3068 = vsyncpa [#allocation6 + $0x1], 1 }
 0x3cf   :  { %3069 = vsyncpa [#allocation4], 1 }
 0x3d0   :  { %3071 = vsyncpa [#allocation4 + $0x1], 1 }

</bundles_post_ra>
